<compile_context>
chip_gen: v7x
topology: tpu7x:2x2x1
jax: 0.10.0
libtpu: 0.0.40
codegen_flags: <defaults>
</compile_context>

<pallas_src>
import functools

import jax
import jax.numpy as jnp
import numpy as np
from jax.experimental import pallas as pl
from jax.experimental.pallas import tpu as pltpu

C_OUT = 16       # conv1 out_channels
EPS = 1e-5       # BatchNorm1d eps
BT = 32          # batch rows per stage-1 grid step
TK = 1024        # fc1 reduction tile (F_pad is always a multiple of 16*128=2048)
                 # TODO(synk): on v6e (128 MiB VMEM) TK=2048 or a deeper w1
                 # stream (pl.Buffered(3)) halves the K-step count.
MLP_BM = 128     # batch tile for the MLP kernel ("parallel" grid axis)
_HI = jax.lax.Precision.HIGHEST


def _round_up(x, m):
    return (x + m - 1) // m * m


def _stage1_kernel(x_ref, w_ref, shift_ref, o_ref, *, lp_real):
    # x_ref    : (2, BT, Lpp)  [0]=even samples, [1]=odd samples (zero padded)
    # w_ref    : (C_OUT, 3)    conv weights with BN scale folded in
    # shift_ref: (C_OUT, 1)    folded conv-bias + BN shift
    # o_ref    : (BT, C_OUT, Lpp)  conv+BN+pool+ReLU, stored in o_ref.dtype
    xe = x_ref[0]                           # (BT, Lpp) f32
    xo = x_ref[1]                           # (BT, Lpp) f32
    bt, lpp = xe.shape
    lane = jax.lax.broadcasted_iota(jnp.int32, (bt, lpp), 1)

    # zero-padded neighbours (Conv1d padding=1); rolls vectorized over batch.
    # roll(shift=1)      -> result[p] = x[p-1]   (mask p == 0)
    # roll(shift=lpp-1)  -> result[p] = x[p+1]   (mask the last *real* position)
    xo_prev = jnp.where(lane == 0, 0.0, pltpu.roll(xo, shift=1, axis=1))
    xe_next = jnp.where(lane == lp_real - 1, 0.0,
                        pltpu.roll(xe, shift=lpp - 1, axis=1))

    w = w_ref[...]                          # (C_OUT, 3)
    w0, w1, w2 = w[:, 0:1], w[:, 1:2], w[:, 2:3]   # (C_OUT, 1) each
    shift = shift_ref[...]                  # (C_OUT, 1)

    for r in range(bt):                     # static, unrolled over the batch tile
        # Broadcast each (1, Lpp) row to C_OUT sublanes once and reuse across
        # both conv phases (instead of six implicit (C_OUT,1)x(1,Lpp) products).
        xe_b = jnp.broadcast_to(xe[r:r + 1, :], (C_OUT, lpp))
        xo_b = jnp.broadcast_to(xo[r:r + 1, :], (C_OUT, lpp))
        xop_b = jnp.broadcast_to(xo_prev[r:r + 1, :], (C_OUT, lpp))
        xen_b = jnp.broadcast_to(xe_next[r:r + 1, :], (C_OUT, lpp))
        # conv + folded BN at even / odd length positions
        y_even = w0 * xop_b + w1 * xe_b + w2 * xo_b + shift    # (C_OUT, Lpp)
        y_odd = w0 * xe_b + w1 * xo_b + w2 * xen_b + shift
        # MaxPool1d(kernel=2, stride=2) then ReLU, store in compute dtype.
        o_ref[r] = jnp.maximum(jnp.maximum(y_even, y_odd), 0.0).astype(o_ref.dtype)


def _mlp_kernel(h_ref, w1_ref, b1_ref, w2_ref, b2_ref, w3_ref, b3_ref,
                o_ref, acc_ref, *, exact):
    k = pl.program_id(1)

    @pl.when(k == 0)
    def _():
        # fold the fc1 bias into the accumulator init
        acc_ref[...] = jnp.broadcast_to(b1_ref[...], acc_ref.shape)

    if exact:
        # f32 weights + HIGHEST precision: validation path only.
        acc_ref[...] += jnp.dot(h_ref[...], w1_ref[...], precision=_HI,
                                preferred_element_type=jnp.float32)
    else:
        # Native low-precision MXU matmul (bf16 x bf16 -> f32 accumulate).
        acc_ref[...] += jnp.dot(h_ref[...], w1_ref[...],
                                preferred_element_type=jnp.float32)

    @pl.when(k == pl.num_programs(1) - 1)
    def _():
        # TODO(synk): Dropout (p=0.5) is identity at inference; the reference
        # forward even calls self.dropout2 which is never constructed.
        a1 = jnp.maximum(acc_ref[...], 0.0)
        if exact:
            a2 = jnp.dot(a1, w2_ref[...], precision=_HI,
                         preferred_element_type=jnp.float32)
            a2 = jnp.maximum(a2 + b2_ref[...], 0.0)
            o_ref[...] = jnp.dot(a2, w3_ref[...], precision=_HI,
                                 preferred_element_type=jnp.float32) + b3_ref[...]
        else:
            a2 = jnp.dot(a1.astype(w2_ref.dtype), w2_ref[...],
                         preferred_element_type=jnp.float32)
            a2 = jnp.maximum(a2 + b2_ref[...], 0.0)
            o_ref[...] = jnp.dot(a2.astype(w3_ref.dtype), w3_ref[...],
                                 preferred_element_type=jnp.float32) + b3_ref[...]


def shallow_cnn_forward(x, params, *, weight_dtype=jnp.bfloat16):
    """x: (B, 1, L) float32, NCL layout like PyTorch.

    weight_dtype is the fc-weight streaming / intermediate-activation dtype
    (bf16 default; f32 gives the exact validation path)."""
    B, c_in, L = x.shape
    assert c_in == 1 and L % 2 == 0
    exact = np.dtype(weight_dtype) == np.float32
    Lp = L // 2
    Lpp = _round_up(Lp, 128)          # lane-aligned pooled length
    B_pad = _round_up(B, BT)
    F_pad = C_OUT * Lpp

    # Fold BatchNorm (eval mode, running stats) + conv bias into conv weights.
    scale = params["bn_gamma"] / jnp.sqrt(params["bn_var"] + EPS)                 # (16,)
    w_eff = params["conv_w"][:, 0, :] * scale[:, None]                            # (16, 3)
    shift = ((params["conv_b"] - params["bn_mean"]) * scale
             + params["bn_beta"])[:, None]                                        # (16, 1)

    # Even/odd phase split + batch/lane zero-padding (pure reshape/pad glue).
    x2 = x[:, 0, :].reshape(B, Lp, 2)
    xeo = jnp.stack([x2[:, :, 0], x2[:, :, 1]], axis=0)                # (2, B, Lp)
    xeo = jnp.pad(xeo, ((0, 0), (0, B_pad - B), (0, Lpp - Lp)))        # (2, Bp, Lpp)

    stage1 = pl.pallas_call(
        functools.partial(_stage1_kernel, lp_real=Lp),
        out_shape=jax.ShapeDtypeStruct((B_pad, C_OUT, Lpp), weight_dtype),
        grid_spec=pltpu.PrefetchScalarGridSpec(
            num_scalar_prefetch=0,
            grid=(B_pad // BT,),
            in_specs=[
                pl.BlockSpec((2, BT, Lpp), lambda b: (0, b, 0)),
                pl.BlockSpec((C_OUT, 3), lambda b: (0, 0)),
                pl.BlockSpec((C_OUT, 1), lambda b: (0, 0)),
            ],
            out_specs=pl.BlockSpec((BT, C_OUT, Lpp), lambda b: (b, 0, 0)),
        ),
        compiler_params=pltpu.CompilerParams(dimension_semantics=("parallel",)),
    )
    feat = stage1(xeo, w_eff, shift)                 # (Bp, 16, Lpp) weight_dtype

    # Flatten exactly like torch .view(B, -1) (channel-major); trailing-dim
    # merge is a free row-major reshape.
    h = feat.reshape(B_pad, F_pad)

    # fc weights: transpose, re-lay fc1 rows onto the padded flatten, cast.
    # TODO(synk): the (Lpp-Lp) zero rows (~11% at the real L=1848 shape) are
    # still streamed; compacting them would shave ~10% of the fc1 weight DMA.
    H1 = params["fc1_w"].shape[0]
    H2 = params["fc2_w"].shape[0]
    w1t = params["fc1_w"].T.reshape(C_OUT, Lp, H1)                     # (16, Lp, H1)
    w1t = jnp.pad(w1t, ((0, 0), (0, Lpp - Lp), (0, 0)))                # zero rows on pad
    w1t = w1t.reshape(F_pad, H1).astype(weight_dtype)
    w2t = params["fc2_w"].T.astype(weight_dtype)                       # (H1, H2)
    w3t = params["fc3_w"].T.astype(weight_dtype)                       # (H2, 1)
    b1 = params["fc1_b"].reshape(1, H1).astype(jnp.float32)
    b2 = params["fc2_b"].reshape(1, H2).astype(jnp.float32)
    b3 = params["fc3_b"].reshape(1, 1).astype(jnp.float32)

    tk = min(TK, F_pad)
    assert F_pad % tk == 0
    nk = F_pad // tk
    bm = MLP_BM if B_pad % MLP_BM == 0 else BT        # B_pad is a multiple of BT
    nm = B_pad // bm

    nbytes = lambda a: int(a.size) * a.dtype.itemsize
    cost = pl.CostEstimate(
        flops=2 * B_pad * (F_pad * H1 + H1 * H2 + H2),
        transcendentals=0,
        bytes_accessed=int(nm * nbytes(w1t) + nbytes(w2t) + nbytes(w3t)
                           + nbytes(h) + B_pad * 4),
    )

    mlp = pl.pallas_call(
        functools.partial(_mlp_kernel, exact=exact),
        out_shape=jax.ShapeDtypeStruct((B_pad, 1), jnp.float32),
        grid_spec=pltpu.PrefetchScalarGridSpec(
            num_scalar_prefetch=0,
            grid=(nm, nk),                                      # (M parallel, K reduce)
            in_specs=[
                pl.BlockSpec((bm, tk), lambda m, k: (m, k)),    # activations
                pl.BlockSpec((tk, H1), lambda m, k: (k, 0)),    # fc1 weight stream
                pl.BlockSpec((1, H1), lambda m, k: (0, 0)),     # resident
                pl.BlockSpec((H1, H2), lambda m, k: (0, 0)),    # resident
                pl.BlockSpec((1, H2), lambda m, k: (0, 0)),     # resident
                pl.BlockSpec((H2, 1), lambda m, k: (0, 0)),     # resident
                pl.BlockSpec((1, 1), lambda m, k: (0, 0)),      # resident
            ],
            out_specs=pl.BlockSpec((bm, 1), lambda m, k: (m, 0)),
            scratch_shapes=[pltpu.VMEM((bm, H1), jnp.float32)],
        ),
        compiler_params=pltpu.CompilerParams(
            dimension_semantics=("parallel", "arbitrary"),
            # bf16 path needs ~18 MB at the real (H1=2048) shapes, above v5e's
            # 16 MiB default scoped budget; f32 validation path needs ~35 MB.
            vmem_limit_bytes=48 * 1024 * 1024,
        ),
        cost_estimate=cost,
    )
    out = mlp(h, w1t, b1, w2t, b2, w3t, b3)
    return out[:B]


def reference_forward(x, params, fc_weight_dtype=None):
    """Pure-jnp reference replicating the PyTorch forward (eval mode).

    With fc_weight_dtype set, it mirrors the kernel's low-precision choices:
    bf16 activations/weights for the fc matmuls with f32 accumulation."""
    B, _, L = x.shape
    xp = jnp.pad(x[:, 0, :], ((0, 0), (1, 1)))                     # (B, L+2)
    w = params["conv_w"][:, 0, :]                                  # (16, 3)
    y = (w[None, :, 0, None] * xp[:, None, 0:L]
         + w[None, :, 1, None] * xp[:, None, 1:L + 1]
         + w[None, :, 2, None] * xp[:, None, 2:L + 2])
    y = y + params["conv_b"][None, :, None]
    scale = params["bn_gamma"] / jnp.sqrt(params["bn_var"] + EPS)
    y = (y - params["bn_mean"][None, :, None]) * scale[None, :, None] \
        + params["bn_beta"][None, :, None]
    y = y.reshape(B, C_OUT, L // 2, 2).max(axis=-1)
    y = jnp.maximum(y, 0.0)
    h = y.reshape(B, -1)
    w1, w2, w3 = params["fc1_w"].T, params["fc2_w"].T, params["fc3_w"].T
    b1, b2, b3 = params["fc1_b"], params["fc2_b"], params["fc3_b"]
    if fc_weight_dtype is None:
        a1 = jnp.maximum(jnp.dot(h, w1, precision=_HI) + b1, 0.0)
        a2 = jnp.maximum(jnp.dot(a1, w2, precision=_HI) + b2, 0.0)
        return jnp.dot(a2, w3, precision=_HI) + b3
    dt = fc_weight_dtype
    h, w1, w2, w3 = h.astype(dt), w1.astype(dt), w2.astype(dt), w3.astype(dt)
    a1 = jnp.maximum(jnp.dot(h, w1, preferred_element_type=jnp.float32) + b1, 0.0)
    a2 = jnp.maximum(jnp.dot(a1.astype(dt), w2,
                             preferred_element_type=jnp.float32) + b2, 0.0)
    return jnp.dot(a2.astype(dt), w3, preferred_element_type=jnp.float32) + b3


if __name__ == "__main__":
    # Small shapes consistent with the module structure.  The real module uses
    # L=1848 -> flatten 16*924=14784, fc1=2048, fc2=1024; shrink to
    # L=256 -> flatten 2048, fc1=512, fc2=256 and B=12 (exercises batch padding
    # and a 2-step fc1 K-tiled grid).
    B, L = 12, 256
    H1, H2 = 512, 256
    F = C_OUT * (L // 2)

    key = jax.random.PRNGKey(0)
    ks = jax.random.split(key, 13)
    params = {
        "conv_w": jax.random.normal(ks[0], (C_OUT, 1, 3), jnp.float32) * 0.5,
        "conv_b": jax.random.normal(ks[1], (C_OUT,), jnp.float32) * 0.1,
        "bn_gamma": jax.random.uniform(ks[2], (C_OUT,), jnp.float32, 0.5, 1.5),
        "bn_beta": jax.random.normal(ks[3], (C_OUT,), jnp.float32) * 0.1,
        "bn_mean": jax.random.normal(ks[4], (C_OUT,), jnp.float32) * 0.1,
        "bn_var": jax.random.uniform(ks[5], (C_OUT,), jnp.float32, 0.5, 1.5),
        "fc1_w": jax.random.normal(ks[6], (H1, F), jnp.float32) / np.sqrt(F),
        "fc1_b": jax.random.normal(ks[7], (H1,), jnp.float32) * 0.01,
        "fc2_w": jax.random.normal(ks[8], (H2, H1), jnp.float32) / np.sqrt(H1),
        "fc2_b": jax.random.normal(ks[9], (H2,), jnp.float32) * 0.01,
        "fc3_w": jax.random.normal(ks[10], (1, H2), jnp.float32) / np.sqrt(H2),
        "fc3_b": jax.random.normal(ks[11], (1,), jnp.float32) * 0.01,
    }
    x = jax.random.normal(ks[12], (B, 1, L), jnp.float32)

    # 1) Exact f32 path vs the pure-f32 PyTorch-semantics reference.
    out_f32 = jax.block_until_ready(
        shallow_cnn_forward(x, params, weight_dtype=jnp.float32))
    ref_f32 = jax.block_until_ready(reference_forward(x, params))
    np.testing.assert_allclose(np.asarray(out_f32), np.asarray(ref_f32),
                               rtol=1e-4, atol=1e-4)

    # 2) Bandwidth-optimized path: bf16 activations + native bf16 MXU matmuls
    #    with f32 accumulation, vs a reference mirroring the same dtype choices
    #    (only the accumulation order differs).
    out_bf16 = jax.block_until_ready(
        shallow_cnn_forward(x, params, weight_dtype=jnp.bfloat16))
    ref_bf16 = jax.block_until_ready(
        reference_forward(x, params, fc_weight_dtype=jnp.bfloat16))
    np.testing.assert_allclose(np.asarray(out_bf16), np.asarray(ref_bf16),
                               rtol=5e-3, atol=5e-3)

    print("KERNEL_OK")
</pallas_src>

<mosaic_0001>
module attributes {stable_mosaic.version = 11 : i64} {
  func.func @_stage1_kernel(%arg0: i32, %arg1: memref<2x32x128xf32, #tpu.memory_space<vmem>>, %arg2: memref<16x3xf32, #tpu.memory_space<vmem>>, %arg3: memref<16x1xf32, #tpu.memory_space<vmem>>, %arg4: memref<32x16x128xf32, #tpu.memory_space<vmem>>) attributes {dimension_semantics = [#tpu.dimension_semantics<parallel>], iteration_bounds = array<i64: 1>, scalar_prefetch = 0 : i64, scratch_operands = 0 : i64, tpu.core_type = #tpu.core_type<tc>, window_params = [{transform_indices = @transform_0, window_bounds = array<i64: 2, 32, 128>}, {pipeline_mode = #tpu.pipeline_mode<synchronous>, transform_indices = @transform_1, window_bounds = array<i64: 16, 3>}, {pipeline_mode = #tpu.pipeline_mode<synchronous>, transform_indices = @transform_2, window_bounds = array<i64: 16, 1>}, {transform_indices = @transform_3, window_bounds = array<i64: 32, 16, 128>}]} {
    %c0 = arith.constant 0 : index
    %c0_0 = arith.constant 0 : index
    %c0_1 = arith.constant 0 : index
    %0 = vector.load %arg1[%c0, %c0_0, %c0_1] : memref<2x32x128xf32, #tpu.memory_space<vmem>>, vector<1x32x128xf32>
    %1 = vector.shape_cast %0 : vector<1x32x128xf32> to vector<32x128xf32>
    %c1 = arith.constant 1 : index
    %c0_2 = arith.constant 0 : index
    %c0_3 = arith.constant 0 : index
    %2 = vector.load %arg1[%c1, %c0_2, %c0_3] : memref<2x32x128xf32, #tpu.memory_space<vmem>>, vector<1x32x128xf32>
    %3 = vector.shape_cast %2 : vector<1x32x128xf32> to vector<32x128xf32>
    %4 = tpu.iota {dimensions = array<i32: 1>} : vector<32x128xi32>
    %c0_i32 = arith.constant 0 : i32
    %5 = vector.broadcast %c0_i32 : i32 to vector<32x128xi32>
    %6 = arith.cmpi eq, %4, %5 : vector<32x128xi32>
    %c1_i32 = arith.constant 1 : i32
    %7 = tpu.dynamic_rotate %3 by %c1_i32 dim 1 : vector<32x128xf32>, i32 -> vector<32x128xf32>
    %cst = arith.constant 0.000000e+00 : f32
    %8 = vector.broadcast %cst : f32 to vector<32x128xf32>
    %9 = arith.select %6, %8, %7 : vector<32x128xi1>, vector<32x128xf32>
    %c127_i32 = arith.constant 127 : i32
    %10 = vector.broadcast %c127_i32 : i32 to vector<32x128xi32>
    %11 = arith.cmpi eq, %4, %10 : vector<32x128xi32>
    %c127_i32_4 = arith.constant 127 : i32
    %12 = tpu.dynamic_rotate %1 by %c127_i32_4 dim 1 : vector<32x128xf32>, i32 -> vector<32x128xf32>
    %cst_5 = arith.constant 0.000000e+00 : f32
    %13 = vector.broadcast %cst_5 : f32 to vector<32x128xf32>
    %14 = arith.select %11, %13, %12 : vector<32x128xi1>, vector<32x128xf32>
    %c0_6 = arith.constant 0 : index
    %c0_7 = arith.constant 0 : index
    %15 = vector.load %arg2[%c0_6, %c0_7] : memref<16x3xf32, #tpu.memory_space<vmem>>, vector<16x3xf32>
    %16 = vector.extract_strided_slice %15 {offsets = [0, 0], sizes = [16, 1], strides = [1, 1]} : vector<16x3xf32> to vector<16x1xf32>
    %17 = vector.extract_strided_slice %15 {offsets = [0, 1], sizes = [16, 1], strides = [1, 1]} : vector<16x3xf32> to vector<16x1xf32>
    %18 = vector.extract_strided_slice %15 {offsets = [0, 2], sizes = [16, 1], strides = [1, 1]} : vector<16x3xf32> to vector<16x1xf32>
    %c0_8 = arith.constant 0 : index
    %c0_9 = arith.constant 0 : index
    %19 = vector.load %arg3[%c0_8, %c0_9] : memref<16x1xf32, #tpu.memory_space<vmem>>, vector<16x1xf32>
    %20 = vector.extract_strided_slice %1 {offsets = [0, 0], sizes = [1, 128], strides = [1, 1]} : vector<32x128xf32> to vector<1x128xf32>
    %21 = vector.shape_cast %20 : vector<1x128xf32> to vector<1x128xf32>
    %22 = vector.broadcast %21 : vector<1x128xf32> to vector<16x128xf32>
    %23 = vector.extract_strided_slice %3 {offsets = [0, 0], sizes = [1, 128], strides = [1, 1]} : vector<32x128xf32> to vector<1x128xf32>
    %24 = vector.shape_cast %23 : vector<1x128xf32> to vector<1x128xf32>
    %25 = vector.broadcast %24 : vector<1x128xf32> to vector<16x128xf32>
    %26 = vector.extract_strided_slice %9 {offsets = [0, 0], sizes = [1, 128], strides = [1, 1]} : vector<32x128xf32> to vector<1x128xf32>
    %27 = vector.shape_cast %26 : vector<1x128xf32> to vector<1x128xf32>
    %28 = vector.broadcast %27 : vector<1x128xf32> to vector<16x128xf32>
    %29 = vector.extract_strided_slice %14 {offsets = [0, 0], sizes = [1, 128], strides = [1, 1]} : vector<32x128xf32> to vector<1x128xf32>
    %30 = vector.shape_cast %29 : vector<1x128xf32> to vector<1x128xf32>
    %31 = vector.broadcast %30 : vector<1x128xf32> to vector<16x128xf32>
    %32 = vector.broadcast %16 : vector<16x1xf32> to vector<16x128xf32>
    %33 = arith.mulf %32, %28 : vector<16x128xf32>
    %34 = vector.broadcast %17 : vector<16x1xf32> to vector<16x128xf32>
    %35 = arith.mulf %34, %22 : vector<16x128xf32>
    %36 = arith.addf %33, %35 : vector<16x128xf32>
    %37 = vector.broadcast %18 : vector<16x1xf32> to vector<16x128xf32>
    %38 = arith.mulf %37, %25 : vector<16x128xf32>
    %39 = arith.addf %36, %38 : vector<16x128xf32>
    %40 = vector.broadcast %19 : vector<16x1xf32> to vector<16x128xf32>
    %41 = arith.addf %39, %40 : vector<16x128xf32>
    %42 = vector.broadcast %16 : vector<16x1xf32> to vector<16x128xf32>
    %43 = arith.mulf %42, %22 : vector<16x128xf32>
    %44 = vector.broadcast %17 : vector<16x1xf32> to vector<16x128xf32>
    %45 = arith.mulf %44, %25 : vector<16x128xf32>
    %46 = arith.addf %43, %45 : vector<16x128xf32>
    %47 = vector.broadcast %18 : vector<16x1xf32> to vector<16x128xf32>
    %48 = arith.mulf %47, %31 : vector<16x128xf32>
    %49 = arith.addf %46, %48 : vector<16x128xf32>
    %50 = vector.broadcast %19 : vector<16x1xf32> to vector<16x128xf32>
    %51 = arith.addf %49, %50 : vector<16x128xf32>
    %52 = arith.maximumf %41, %51 : vector<16x128xf32>
    %cst_10 = arith.constant 0.000000e+00 : f32
    %53 = vector.broadcast %cst_10 : f32 to vector<16x128xf32>
    %54 = arith.maximumf %52, %53 : vector<16x128xf32>
    %c0_11 = arith.constant 0 : index
    %c0_12 = arith.constant 0 : index
    %c0_13 = arith.constant 0 : index
    %55 = vector.load %arg4[%c0_11, %c0_12, %c0_13] : memref<32x16x128xf32, #tpu.memory_space<vmem>>, vector<1x16x128xf32>
    %56 = vector.shape_cast %55 : vector<1x16x128xf32> to vector<16x128xf32>
    %57 = vector.shape_cast %54 : vector<16x128xf32> to vector<1x16x128xf32>
    tpu.vector_store %arg4[%c0_11, %c0_12, %c0_13], %57 {strides = array<i32>} : memref<32x16x128xf32, #tpu.memory_space<vmem>>, vector<1x16x128xf32>,
    %58 = vector.extract_strided_slice %1 {offsets = [1, 0], sizes = [1, 128], strides = [1, 1]} : vector<32x128xf32> to vector<1x128xf32>
    %59 = vector.shape_cast %58 : vector<1x128xf32> to vector<1x128xf32>
    %60 = vector.broadcast %59 : vector<1x128xf32> to vector<16x128xf32>
    %61 = vector.extract_strided_slice %3 {offsets = [1, 0], sizes = [1, 128], strides = [1, 1]} : vector<32x128xf32> to vector<1x128xf32>
    %62 = vector.shape_cast %61 : vector<1x128xf32> to vector<1x128xf32>
    %63 = vector.broadcast %62 : vector<1x128xf32> to vector<16x128xf32>
    %64 = vector.extract_strided_slice %9 {offsets = [1, 0], sizes = [1, 128], strides = [1, 1]} : vector<32x128xf32> to vector<1x128xf32>
    %65 = vector.shape_cast %64 : vector<1x128xf32> to vector<1x128xf32>
    %66 = vector.broadcast %65 : vector<1x128xf32> to vector<16x128xf32>
    %67 = vector.extract_strided_slice %14 {offsets = [1, 0], sizes = [1, 128], strides = [1, 1]} : vector<32x128xf32> to vector<1x128xf32>
    %68 = vector.shape_cast %67 : vector<1x128xf32> to vector<1x128xf32>
    %69 = vector.broadcast %68 : vector<1x128xf32> to vector<16x128xf32>
    %70 = vector.broadcast %16 : vector<16x1xf32> to vector<16x128xf32>
    %71 = arith.mulf %70, %66 : vector<16x128xf32>
    %72 = vector.broadcast %17 : vector<16x1xf32> to vector<16x128xf32>
    %73 = arith.mulf %72, %60 : vector<16x128xf32>
    %74 = arith.addf %71, %73 : vector<16x128xf32>
    %75 = vector.broadcast %18 : vector<16x1xf32> to vector<16x128xf32>
    %76 = arith.mulf %75, %63 : vector<16x128xf32>
    %77 = arith.addf %74, %76 : vector<16x128xf32>
    %78 = vector.broadcast %19 : vector<16x1xf32> to vector<16x128xf32>
    %79 = arith.addf %77, %78 : vector<16x128xf32>
    %80 = vector.broadcast %16 : vector<16x1xf32> to vector<16x128xf32>
    %81 = arith.mulf %80, %60 : vector<16x128xf32>
    %82 = vector.broadcast %17 : vector<16x1xf32> to vector<16x128xf32>
    %83 = arith.mulf %82, %63 : vector<16x128xf32>
    %84 = arith.addf %81, %83 : vector<16x128xf32>
    %85 = vector.broadcast %18 : vector<16x1xf32> to vector<16x128xf32>
    %86 = arith.mulf %85, %69 : vector<16x128xf32>
    %87 = arith.addf %84, %86 : vector<16x128xf32>
    %88 = vector.broadcast %19 : vector<16x1xf32> to vector<16x128xf32>
    %89 = arith.addf %87, %88 : vector<16x128xf32>
    %90 = arith.maximumf %79, %89 : vector<16x128xf32>
    %cst_14 = arith.constant 0.000000e+00 : f32
    %91 = vector.broadcast %cst_14 : f32 to vector<16x128xf32>
    %92 = arith.maximumf %90, %91 : vector<16x128xf32>
    %c1_15 = arith.constant 1 : index
    %c0_16 = arith.constant 0 : index
    %c0_17 = arith.constant 0 : index
    %93 = vector.load %arg4[%c1_15, %c0_16, %c0_17] : memref<32x16x128xf32, #tpu.memory_space<vmem>>, vector<1x16x128xf32>
    %94 = vector.shape_cast %93 : vector<1x16x128xf32> to vector<16x128xf32>
    %95 = vector.shape_cast %92 : vector<16x128xf32> to vector<1x16x128xf32>
    tpu.vector_store %arg4[%c1_15, %c0_16, %c0_17], %95 {strides = array<i32>} : memref<32x16x128xf32, #tpu.memory_space<vmem>>, vector<1x16x128xf32>,
    %96 = vector.extract_strided_slice %1 {offsets = [2, 0], sizes = [1, 128], strides = [1, 1]} : vector<32x128xf32> to vector<1x128xf32>
    %97 = vector.shape_cast %96 : vector<1x128xf32> to vector<1x128xf32>
    %98 = vector.broadcast %97 : vector<1x128xf32> to vector<16x128xf32>
    %99 = vector.extract_strided_slice %3 {offsets = [2, 0], sizes = [1, 128], strides = [1, 1]} : vector<32x128xf32> to vector<1x128xf32>
    %100 = vector.shape_cast %99 : vector<1x128xf32> to vector<1x128xf32>
    %101 = vector.broadcast %100 : vector<1x128xf32> to vector<16x128xf32>
    %102 = vector.extract_strided_slice %9 {offsets = [2, 0], sizes = [1, 128], strides = [1, 1]} : vector<32x128xf32> to vector<1x128xf32>
    %103 = vector.shape_cast %102 : vector<1x128xf32> to vector<1x128xf32>
    %104 = vector.broadcast %103 : vector<1x128xf32> to vector<16x128xf32>
    %105 = vector.extract_strided_slice %14 {offsets = [2, 0], sizes = [1, 128], strides = [1, 1]} : vector<32x128xf32> to vector<1x128xf32>
    %106 = vector.shape_cast %105 : vector<1x128xf32> to vector<1x128xf32>
    %107 = vector.broadcast %106 : vector<1x128xf32> to vector<16x128xf32>
    %108 = vector.broadcast %16 : vector<16x1xf32> to vector<16x128xf32>
    %109 = arith.mulf %108, %104 : vector<16x128xf32>
    %110 = vector.broadcast %17 : vector<16x1xf32> to vector<16x128xf32>
    %111 = arith.mulf %110, %98 : vector<16x128xf32>
    %112 = arith.addf %109, %111 : vector<16x128xf32>
    %113 = vector.broadcast %18 : vector<16x1xf32> to vector<16x128xf32>
    %114 = arith.mulf %113, %101 : vector<16x128xf32>
    %115 = arith.addf %112, %114 : vector<16x128xf32>
    %116 = vector.broadcast %19 : vector<16x1xf32> to vector<16x128xf32>
    %117 = arith.addf %115, %116 : vector<16x128xf32>
    %118 = vector.broadcast %16 : vector<16x1xf32> to vector<16x128xf32>
    %119 = arith.mulf %118, %98 : vector<16x128xf32>
    %120 = vector.broadcast %17 : vector<16x1xf32> to vector<16x128xf32>
    %121 = arith.mulf %120, %101 : vector<16x128xf32>
    %122 = arith.addf %119, %121 : vector<16x128xf32>
    %123 = vector.broadcast %18 : vector<16x1xf32> to vector<16x128xf32>
    %124 = arith.mulf %123, %107 : vector<16x128xf32>
    %125 = arith.addf %122, %124 : vector<16x128xf32>
    %126 = vector.broadcast %19 : vector<16x1xf32> to vector<16x128xf32>
    %127 = arith.addf %125, %126 : vector<16x128xf32>
    %128 = arith.maximumf %117, %127 : vector<16x128xf32>
    %cst_18 = arith.constant 0.000000e+00 : f32
    %129 = vector.broadcast %cst_18 : f32 to vector<16x128xf32>
    %130 = arith.maximumf %128, %129 : vector<16x128xf32>
    %c2 = arith.constant 2 : index
    %c0_19 = arith.constant 0 : index
    %c0_20 = arith.constant 0 : index
    %131 = vector.load %arg4[%c2, %c0_19, %c0_20] : memref<32x16x128xf32, #tpu.memory_space<vmem>>, vector<1x16x128xf32>
    %132 = vector.shape_cast %131 : vector<1x16x128xf32> to vector<16x128xf32>
    %133 = vector.shape_cast %130 : vector<16x128xf32> to vector<1x16x128xf32>
    tpu.vector_store %arg4[%c2, %c0_19, %c0_20], %133 {strides = array<i32>} : memref<32x16x128xf32, #tpu.memory_space<vmem>>, vector<1x16x128xf32>,
    %134 = vector.extract_strided_slice %1 {offsets = [3, 0], sizes = [1, 128], strides = [1, 1]} : vector<32x128xf32> to vector<1x128xf32>
    %135 = vector.shape_cast %134 : vector<1x128xf32> to vector<1x128xf32>
    %136 = vector.broadcast %135 : vector<1x128xf32> to vector<16x128xf32>
    %137 = vector.extract_strided_slice %3 {offsets = [3, 0], sizes = [1, 128], strides = [1, 1]} : vector<32x128xf32> to vector<1x128xf32>
    %138 = vector.shape_cast %137 : vector<1x128xf32> to vector<1x128xf32>
    %139 = vector.broadcast %138 : vector<1x128xf32> to vector<16x128xf32>
    %140 = vector.extract_strided_slice %9 {offsets = [3, 0], sizes = [1, 128], strides = [1, 1]} : vector<32x128xf32> to vector<1x128xf32>
    %141 = vector.shape_cast %140 : vector<1x128xf32> to vector<1x128xf32>
    %142 = vector.broadcast %141 : vector<1x128xf32> to vector<16x128xf32>
    %143 = vector.extract_strided_slice %14 {offsets = [3, 0], sizes = [1, 128], strides = [1, 1]} : vector<32x128xf32> to vector<1x128xf32>
    %144 = vector.shape_cast %143 : vector<1x128xf32> to vector<1x128xf32>
    %145 = vector.broadcast %144 : vector<1x128xf32> to vector<16x128xf32>
    %146 = vector.broadcast %16 : vector<16x1xf32> to vector<16x128xf32>
    %147 = arith.mulf %146, %142 : vector<16x128xf32>
    %148 = vector.broadcast %17 : vector<16x1xf32> to vector<16x128xf32>
    %149 = arith.mulf %148, %136 : vector<16x128xf32>
    %150 = arith.addf %147, %149 : vector<16x128xf32>
    %151 = vector.broadcast %18 : vector<16x1xf32> to vector<16x128xf32>
    %152 = arith.mulf %151, %139 : vector<16x128xf32>
    %153 = arith.addf %150, %152 : vector<16x128xf32>
    %154 = vector.broadcast %19 : vector<16x1xf32> to vector<16x128xf32>
    %155 = arith.addf %153, %154 : vector<16x128xf32>
    %156 = vector.broadcast %16 : vector<16x1xf32> to vector<16x128xf32>
    %157 = arith.mulf %156, %136 : vector<16x128xf32>
    %158 = vector.broadcast %17 : vector<16x1xf32> to vector<16x128xf32>
    %159 = arith.mulf %158, %139 : vector<16x128xf32>
    %160 = arith.addf %157, %159 : vector<16x128xf32>
    %161 = vector.broadcast %18 : vector<16x1xf32> to vector<16x128xf32>
    %162 = arith.mulf %161, %145 : vector<16x128xf32>
    %163 = arith.addf %160, %162 : vector<16x128xf32>
    %164 = vector.broadcast %19 : vector<16x1xf32> to vector<16x128xf32>
    %165 = arith.addf %163, %164 : vector<16x128xf32>
    %166 = arith.maximumf %155, %165 : vector<16x128xf32>
    %cst_21 = arith.constant 0.000000e+00 : f32
    %167 = vector.broadcast %cst_21 : f32 to vector<16x128xf32>
    %168 = arith.maximumf %166, %167 : vector<16x128xf32>
    %c3 = arith.constant 3 : index
    %c0_22 = arith.constant 0 : index
    %c0_23 = arith.constant 0 : index
    %169 = vector.load %arg4[%c3, %c0_22, %c0_23] : memref<32x16x128xf32, #tpu.memory_space<vmem>>, vector<1x16x128xf32>
    %170 = vector.shape_cast %169 : vector<1x16x128xf32> to vector<16x128xf32>
    %171 = vector.shape_cast %168 : vector<16x128xf32> to vector<1x16x128xf32>
    tpu.vector_store %arg4[%c3, %c0_22, %c0_23], %171 {strides = array<i32>} : memref<32x16x128xf32, #tpu.memory_space<vmem>>, vector<1x16x128xf32>,
    %172 = vector.extract_strided_slice %1 {offsets = [4, 0], sizes = [1, 128], strides = [1, 1]} : vector<32x128xf32> to vector<1x128xf32>
    %173 = vector.shape_cast %172 : vector<1x128xf32> to vector<1x128xf32>
    %174 = vector.broadcast %173 : vector<1x128xf32> to vector<16x128xf32>
    %175 = vector.extract_strided_slice %3 {offsets = [4, 0], sizes = [1, 128], strides = [1, 1]} : vector<32x128xf32> to vector<1x128xf32>
    %176 = vector.shape_cast %175 : vector<1x128xf32> to vector<1x128xf32>
    %177 = vector.broadcast %176 : vector<1x128xf32> to vector<16x128xf32>
    %178 = vector.extract_strided_slice %9 {offsets = [4, 0], sizes = [1, 128], strides = [1, 1]} : vector<32x128xf32> to vector<1x128xf32>
    %179 = vector.shape_cast %178 : vector<1x128xf32> to vector<1x128xf32>
    %180 = vector.broadcast %179 : vector<1x128xf32> to vector<16x128xf32>
    %181 = vector.extract_strided_slice %14 {offsets = [4, 0], sizes = [1, 128], strides = [1, 1]} : vector<32x128xf32> to vector<1x128xf32>
    %182 = vector.shape_cast %181 : vector<1x128xf32> to vector<1x128xf32>
    %183 = vector.broadcast %182 : vector<1x128xf32> to vector<16x128xf32>
    %184 = vector.broadcast %16 : vector<16x1xf32> to vector<16x128xf32>
    %185 = arith.mulf %184, %180 : vector<16x128xf32>
    %186 = vector.broadcast %17 : vector<16x1xf32> to vector<16x128xf32>
    %187 = arith.mulf %186, %174 : vector<16x128xf32>
    %188 = arith.addf %185, %187 : vector<16x128xf32>
    %189 = vector.broadcast %18 : vector<16x1xf32> to vector<16x128xf32>
    %190 = arith.mulf %189, %177 : vector<16x128xf32>
    %191 = arith.addf %188, %190 : vector<16x128xf32>
    %192 = vector.broadcast %19 : vector<16x1xf32> to vector<16x128xf32>
    %193 = arith.addf %191, %192 : vector<16x128xf32>
    %194 = vector.broadcast %16 : vector<16x1xf32> to vector<16x128xf32>
    %195 = arith.mulf %194, %174 : vector<16x128xf32>
    %196 = vector.broadcast %17 : vector<16x1xf32> to vector<16x128xf32>
    %197 = arith.mulf %196, %177 : vector<16x128xf32>
    %198 = arith.addf %195, %197 : vector<16x128xf32>
    %199 = vector.broadcast %18 : vector<16x1xf32> to vector<16x128xf32>
    %200 = arith.mulf %199, %183 : vector<16x128xf32>
    %201 = arith.addf %198, %200 : vector<16x128xf32>
    %202 = vector.broadcast %19 : vector<16x1xf32> to vector<16x128xf32>
    %203 = arith.addf %201, %202 : vector<16x128xf32>
    %204 = arith.maximumf %193, %203 : vector<16x128xf32>
    %cst_24 = arith.constant 0.000000e+00 : f32
    %205 = vector.broadcast %cst_24 : f32 to vector<16x128xf32>
    %206 = arith.maximumf %204, %205 : vector<16x128xf32>
    %c4 = arith.constant 4 : index
    %c0_25 = arith.constant 0 : index
    %c0_26 = arith.constant 0 : index
    %207 = vector.load %arg4[%c4, %c0_25, %c0_26] : memref<32x16x128xf32, #tpu.memory_space<vmem>>, vector<1x16x128xf32>
    %208 = vector.shape_cast %207 : vector<1x16x128xf32> to vector<16x128xf32>
    %209 = vector.shape_cast %206 : vector<16x128xf32> to vector<1x16x128xf32>
    tpu.vector_store %arg4[%c4, %c0_25, %c0_26], %209 {strides = array<i32>} : memref<32x16x128xf32, #tpu.memory_space<vmem>>, vector<1x16x128xf32>,
    %210 = vector.extract_strided_slice %1 {offsets = [5, 0], sizes = [1, 128], strides = [1, 1]} : vector<32x128xf32> to vector<1x128xf32>
    %211 = vector.shape_cast %210 : vector<1x128xf32> to vector<1x128xf32>
    %212 = vector.broadcast %211 : vector<1x128xf32> to vector<16x128xf32>
    %213 = vector.extract_strided_slice %3 {offsets = [5, 0], sizes = [1, 128], strides = [1, 1]} : vector<32x128xf32> to vector<1x128xf32>
    %214 = vector.shape_cast %213 : vector<1x128xf32> to vector<1x128xf32>
    %215 = vector.broadcast %214 : vector<1x128xf32> to vector<16x128xf32>
    %216 = vector.extract_strided_slice %9 {offsets = [5, 0], sizes = [1, 128], strides = [1, 1]} : vector<32x128xf32> to vector<1x128xf32>
    %217 = vector.shape_cast %216 : vector<1x128xf32> to vector<1x128xf32>
    %218 = vector.broadcast %217 : vector<1x128xf32> to vector<16x128xf32>
    %219 = vector.extract_strided_slice %14 {offsets = [5, 0], sizes = [1, 128], strides = [1, 1]} : vector<32x128xf32> to vector<1x128xf32>
    %220 = vector.shape_cast %219 : vector<1x128xf32> to vector<1x128xf32>
    %221 = vector.broadcast %220 : vector<1x128xf32> to vector<16x128xf32>
    %222 = vector.broadcast %16 : vector<16x1xf32> to vector<16x128xf32>
    %223 = arith.mulf %222, %218 : vector<16x128xf32>
    %224 = vector.broadcast %17 : vector<16x1xf32> to vector<16x128xf32>
    %225 = arith.mulf %224, %212 : vector<16x128xf32>
    %226 = arith.addf %223, %225 : vector<16x128xf32>
    %227 = vector.broadcast %18 : vector<16x1xf32> to vector<16x128xf32>
    %228 = arith.mulf %227, %215 : vector<16x128xf32>
    %229 = arith.addf %226, %228 : vector<16x128xf32>
    %230 = vector.broadcast %19 : vector<16x1xf32> to vector<16x128xf32>
    %231 = arith.addf %229, %230 : vector<16x128xf32>
    %232 = vector.broadcast %16 : vector<16x1xf32> to vector<16x128xf32>
    %233 = arith.mulf %232, %212 : vector<16x128xf32>
    %234 = vector.broadcast %17 : vector<16x1xf32> to vector<16x128xf32>
    %235 = arith.mulf %234, %215 : vector<16x128xf32>
    %236 = arith.addf %233, %235 : vector<16x128xf32>
    %237 = vector.broadcast %18 : vector<16x1xf32> to vector<16x128xf32>
    %238 = arith.mulf %237, %221 : vector<16x128xf32>
    %239 = arith.addf %236, %238 : vector<16x128xf32>
    %240 = vector.broadcast %19 : vector<16x1xf32> to vector<16x128xf32>
    %241 = arith.addf %239, %240 : vector<16x128xf32>
    %242 = arith.maximumf %231, %241 : vector<16x128xf32>
    %cst_27 = arith.constant 0.000000e+00 : f32
    %243 = vector.broadcast %cst_27 : f32 to vector<16x128xf32>
    %244 = arith.maximumf %242, %243 : vector<16x128xf32>
    %c5 = arith.constant 5 : index
    %c0_28 = arith.constant 0 : index
    %c0_29 = arith.constant 0 : index
    %245 = vector.load %arg4[%c5, %c0_28, %c0_29] : memref<32x16x128xf32, #tpu.memory_space<vmem>>, vector<1x16x128xf32>
    %246 = vector.shape_cast %245 : vector<1x16x128xf32> to vector<16x128xf32>
    %247 = vector.shape_cast %244 : vector<16x128xf32> to vector<1x16x128xf32>
    tpu.vector_store %arg4[%c5, %c0_28, %c0_29], %247 {strides = array<i32>} : memref<32x16x128xf32, #tpu.memory_space<vmem>>, vector<1x16x128xf32>,
    %248 = vector.extract_strided_slice %1 {offsets = [6, 0], sizes = [1, 128], strides = [1, 1]} : vector<32x128xf32> to vector<1x128xf32>
    %249 = vector.shape_cast %248 : vector<1x128xf32> to vector<1x128xf32>
    %250 = vector.broadcast %249 : vector<1x128xf32> to vector<16x128xf32>
    %251 = vector.extract_strided_slice %3 {offsets = [6, 0], sizes = [1, 128], strides = [1, 1]} : vector<32x128xf32> to vector<1x128xf32>
    %252 = vector.shape_cast %251 : vector<1x128xf32> to vector<1x128xf32>
    %253 = vector.broadcast %252 : vector<1x128xf32> to vector<16x128xf32>
    %254 = vector.extract_strided_slice %9 {offsets = [6, 0], sizes = [1, 128], strides = [1, 1]} : vector<32x128xf32> to vector<1x128xf32>
    %255 = vector.shape_cast %254 : vector<1x128xf32> to vector<1x128xf32>
    %256 = vector.broadcast %255 : vector<1x128xf32> to vector<16x128xf32>
    %257 = vector.extract_strided_slice %14 {offsets = [6, 0], sizes = [1, 128], strides = [1, 1]} : vector<32x128xf32> to vector<1x128xf32>
    %258 = vector.shape_cast %257 : vector<1x128xf32> to vector<1x128xf32>
    %259 = vector.broadcast %258 : vector<1x128xf32> to vector<16x128xf32>
    %260 = vector.broadcast %16 : vector<16x1xf32> to vector<16x128xf32>
    %261 = arith.mulf %260, %256 : vector<16x128xf32>
    %262 = vector.broadcast %17 : vector<16x1xf32> to vector<16x128xf32>
    %263 = arith.mulf %262, %250 : vector<16x128xf32>
    %264 = arith.addf %261, %263 : vector<16x128xf32>
    %265 = vector.broadcast %18 : vector<16x1xf32> to vector<16x128xf32>
    %266 = arith.mulf %265, %253 : vector<16x128xf32>
    %267 = arith.addf %264, %266 : vector<16x128xf32>
    %268 = vector.broadcast %19 : vector<16x1xf32> to vector<16x128xf32>
    %269 = arith.addf %267, %268 : vector<16x128xf32>
    %270 = vector.broadcast %16 : vector<16x1xf32> to vector<16x128xf32>
    %271 = arith.mulf %270, %250 : vector<16x128xf32>
    %272 = vector.broadcast %17 : vector<16x1xf32> to vector<16x128xf32>
    %273 = arith.mulf %272, %253 : vector<16x128xf32>
    %274 = arith.addf %271, %273 : vector<16x128xf32>
    %275 = vector.broadcast %18 : vector<16x1xf32> to vector<16x128xf32>
    %276 = arith.mulf %275, %259 : vector<16x128xf32>
    %277 = arith.addf %274, %276 : vector<16x128xf32>
    %278 = vector.broadcast %19 : vector<16x1xf32> to vector<16x128xf32>
    %279 = arith.addf %277, %278 : vector<16x128xf32>
    %280 = arith.maximumf %269, %279 : vector<16x128xf32>
    %cst_30 = arith.constant 0.000000e+00 : f32
    %281 = vector.broadcast %cst_30 : f32 to vector<16x128xf32>
    %282 = arith.maximumf %280, %281 : vector<16x128xf32>
    %c6 = arith.constant 6 : index
    %c0_31 = arith.constant 0 : index
    %c0_32 = arith.constant 0 : index
    %283 = vector.load %arg4[%c6, %c0_31, %c0_32] : memref<32x16x128xf32, #tpu.memory_space<vmem>>, vector<1x16x128xf32>
    %284 = vector.shape_cast %283 : vector<1x16x128xf32> to vector<16x128xf32>
    %285 = vector.shape_cast %282 : vector<16x128xf32> to vector<1x16x128xf32>
    tpu.vector_store %arg4[%c6, %c0_31, %c0_32], %285 {strides = array<i32>} : memref<32x16x128xf32, #tpu.memory_space<vmem>>, vector<1x16x128xf32>,
    %286 = vector.extract_strided_slice %1 {offsets = [7, 0], sizes = [1, 128], strides = [1, 1]} : vector<32x128xf32> to vector<1x128xf32>
    %287 = vector.shape_cast %286 : vector<1x128xf32> to vector<1x128xf32>
    %288 = vector.broadcast %287 : vector<1x128xf32> to vector<16x128xf32>
    %289 = vector.extract_strided_slice %3 {offsets = [7, 0], sizes = [1, 128], strides = [1, 1]} : vector<32x128xf32> to vector<1x128xf32>
    %290 = vector.shape_cast %289 : vector<1x128xf32> to vector<1x128xf32>
    %291 = vector.broadcast %290 : vector<1x128xf32> to vector<16x128xf32>
    %292 = vector.extract_strided_slice %9 {offsets = [7, 0], sizes = [1, 128], strides = [1, 1]} : vector<32x128xf32> to vector<1x128xf32>
    %293 = vector.shape_cast %292 : vector<1x128xf32> to vector<1x128xf32>
    %294 = vector.broadcast %293 : vector<1x128xf32> to vector<16x128xf32>
    %295 = vector.extract_strided_slice %14 {offsets = [7, 0], sizes = [1, 128], strides = [1, 1]} : vector<32x128xf32> to vector<1x128xf32>
    %296 = vector.shape_cast %295 : vector<1x128xf32> to vector<1x128xf32>
    %297 = vector.broadcast %296 : vector<1x128xf32> to vector<16x128xf32>
    %298 = vector.broadcast %16 : vector<16x1xf32> to vector<16x128xf32>
    %299 = arith.mulf %298, %294 : vector<16x128xf32>
    %300 = vector.broadcast %17 : vector<16x1xf32> to vector<16x128xf32>
    %301 = arith.mulf %300, %288 : vector<16x128xf32>
    %302 = arith.addf %299, %301 : vector<16x128xf32>
    %303 = vector.broadcast %18 : vector<16x1xf32> to vector<16x128xf32>
    %304 = arith.mulf %303, %291 : vector<16x128xf32>
    %305 = arith.addf %302, %304 : vector<16x128xf32>
    %306 = vector.broadcast %19 : vector<16x1xf32> to vector<16x128xf32>
    %307 = arith.addf %305, %306 : vector<16x128xf32>
    %308 = vector.broadcast %16 : vector<16x1xf32> to vector<16x128xf32>
    %309 = arith.mulf %308, %288 : vector<16x128xf32>
    %310 = vector.broadcast %17 : vector<16x1xf32> to vector<16x128xf32>
    %311 = arith.mulf %310, %291 : vector<16x128xf32>
    %312 = arith.addf %309, %311 : vector<16x128xf32>
    %313 = vector.broadcast %18 : vector<16x1xf32> to vector<16x128xf32>
    %314 = arith.mulf %313, %297 : vector<16x128xf32>
    %315 = arith.addf %312, %314 : vector<16x128xf32>
    %316 = vector.broadcast %19 : vector<16x1xf32> to vector<16x128xf32>
    %317 = arith.addf %315, %316 : vector<16x128xf32>
    %318 = arith.maximumf %307, %317 : vector<16x128xf32>
    %cst_33 = arith.constant 0.000000e+00 : f32
    %319 = vector.broadcast %cst_33 : f32 to vector<16x128xf32>
    %320 = arith.maximumf %318, %319 : vector<16x128xf32>
    %c7 = arith.constant 7 : index
    %c0_34 = arith.constant 0 : index
    %c0_35 = arith.constant 0 : index
    %321 = vector.load %arg4[%c7, %c0_34, %c0_35] : memref<32x16x128xf32, #tpu.memory_space<vmem>>, vector<1x16x128xf32>
    %322 = vector.shape_cast %321 : vector<1x16x128xf32> to vector<16x128xf32>
    %323 = vector.shape_cast %320 : vector<16x128xf32> to vector<1x16x128xf32>
    tpu.vector_store %arg4[%c7, %c0_34, %c0_35], %323 {strides = array<i32>} : memref<32x16x128xf32, #tpu.memory_space<vmem>>, vector<1x16x128xf32>,
    %324 = vector.extract_strided_slice %1 {offsets = [8, 0], sizes = [1, 128], strides = [1, 1]} : vector<32x128xf32> to vector<1x128xf32>
    %325 = vector.shape_cast %324 : vector<1x128xf32> to vector<1x128xf32>
    %326 = vector.broadcast %325 : vector<1x128xf32> to vector<16x128xf32>
    %327 = vector.extract_strided_slice %3 {offsets = [8, 0], sizes = [1, 128], strides = [1, 1]} : vector<32x128xf32> to vector<1x128xf32>
    %328 = vector.shape_cast %327 : vector<1x128xf32> to vector<1x128xf32>
    %329 = vector.broadcast %328 : vector<1x128xf32> to vector<16x128xf32>
    %330 = vector.extract_strided_slice %9 {offsets = [8, 0], sizes = [1, 128], strides = [1, 1]} : vector<32x128xf32> to vector<1x128xf32>
    %331 = vector.shape_cast %330 : vector<1x128xf32> to vector<1x128xf32>
    %332 = vector.broadcast %331 : vector<1x128xf32> to vector<16x128xf32>
    %333 = vector.extract_strided_slice %14 {offsets = [8, 0], sizes = [1, 128], strides = [1, 1]} : vector<32x128xf32> to vector<1x128xf32>
    %334 = vector.shape_cast %333 : vector<1x128xf32> to vector<1x128xf32>
    %335 = vector.broadcast %334 : vector<1x128xf32> to vector<16x128xf32>
    %336 = vector.broadcast %16 : vector<16x1xf32> to vector<16x128xf32>
    %337 = arith.mulf %336, %332 : vector<16x128xf32>
    %338 = vector.broadcast %17 : vector<16x1xf32> to vector<16x128xf32>
    %339 = arith.mulf %338, %326 : vector<16x128xf32>
    %340 = arith.addf %337, %339 : vector<16x128xf32>
    %341 = vector.broadcast %18 : vector<16x1xf32> to vector<16x128xf32>
    %342 = arith.mulf %341, %329 : vector<16x128xf32>
    %343 = arith.addf %340, %342 : vector<16x128xf32>
    %344 = vector.broadcast %19 : vector<16x1xf32> to vector<16x128xf32>
    %345 = arith.addf %343, %344 : vector<16x128xf32>
    %346 = vector.broadcast %16 : vector<16x1xf32> to vector<16x128xf32>
    %347 = arith.mulf %346, %326 : vector<16x128xf32>
    %348 = vector.broadcast %17 : vector<16x1xf32> to vector<16x128xf32>
    %349 = arith.mulf %348, %329 : vector<16x128xf32>
    %350 = arith.addf %347, %349 : vector<16x128xf32>
    %351 = vector.broadcast %18 : vector<16x1xf32> to vector<16x128xf32>
    %352 = arith.mulf %351, %335 : vector<16x128xf32>
    %353 = arith.addf %350, %352 : vector<16x128xf32>
    %354 = vector.broadcast %19 : vector<16x1xf32> to vector<16x128xf32>
    %355 = arith.addf %353, %354 : vector<16x128xf32>
    %356 = arith.maximumf %345, %355 : vector<16x128xf32>
    %cst_36 = arith.constant 0.000000e+00 : f32
    %357 = vector.broadcast %cst_36 : f32 to vector<16x128xf32>
    %358 = arith.maximumf %356, %357 : vector<16x128xf32>
    %c8 = arith.constant 8 : index
    %c0_37 = arith.constant 0 : index
    %c0_38 = arith.constant 0 : index
    %359 = vector.load %arg4[%c8, %c0_37, %c0_38] : memref<32x16x128xf32, #tpu.memory_space<vmem>>, vector<1x16x128xf32>
    %360 = vector.shape_cast %359 : vector<1x16x128xf32> to vector<16x128xf32>
    %361 = vector.shape_cast %358 : vector<16x128xf32> to vector<1x16x128xf32>
    tpu.vector_store %arg4[%c8, %c0_37, %c0_38], %361 {strides = array<i32>} : memref<32x16x128xf32, #tpu.memory_space<vmem>>, vector<1x16x128xf32>,
    %362 = vector.extract_strided_slice %1 {offsets = [9, 0], sizes = [1, 128], strides = [1, 1]} : vector<32x128xf32> to vector<1x128xf32>
    %363 = vector.shape_cast %362 : vector<1x128xf32> to vector<1x128xf32>
    %364 = vector.broadcast %363 : vector<1x128xf32> to vector<16x128xf32>
    %365 = vector.extract_strided_slice %3 {offsets = [9, 0], sizes = [1, 128], strides = [1, 1]} : vector<32x128xf32> to vector<1x128xf32>
    %366 = vector.shape_cast %365 : vector<1x128xf32> to vector<1x128xf32>
    %367 = vector.broadcast %366 : vector<1x128xf32> to vector<16x128xf32>
    %368 = vector.extract_strided_slice %9 {offsets = [9, 0], sizes = [1, 128], strides = [1, 1]} : vector<32x128xf32> to vector<1x128xf32>
    %369 = vector.shape_cast %368 : vector<1x128xf32> to vector<1x128xf32>
    %370 = vector.broadcast %369 : vector<1x128xf32> to vector<16x128xf32>
    %371 = vector.extract_strided_slice %14 {offsets = [9, 0], sizes = [1, 128], strides = [1, 1]} : vector<32x128xf32> to vector<1x128xf32>
    %372 = vector.shape_cast %371 : vector<1x128xf32> to vector<1x128xf32>
    %373 = vector.broadcast %372 : vector<1x128xf32> to vector<16x128xf32>
    %374 = vector.broadcast %16 : vector<16x1xf32> to vector<16x128xf32>
    %375 = arith.mulf %374, %370 : vector<16x128xf32>
    %376 = vector.broadcast %17 : vector<16x1xf32> to vector<16x128xf32>
    %377 = arith.mulf %376, %364 : vector<16x128xf32>
    %378 = arith.addf %375, %377 : vector<16x128xf32>
    %379 = vector.broadcast %18 : vector<16x1xf32> to vector<16x128xf32>
    %380 = arith.mulf %379, %367 : vector<16x128xf32>
    %381 = arith.addf %378, %380 : vector<16x128xf32>
    %382 = vector.broadcast %19 : vector<16x1xf32> to vector<16x128xf32>
    %383 = arith.addf %381, %382 : vector<16x128xf32>
    %384 = vector.broadcast %16 : vector<16x1xf32> to vector<16x128xf32>
    %385 = arith.mulf %384, %364 : vector<16x128xf32>
    %386 = vector.broadcast %17 : vector<16x1xf32> to vector<16x128xf32>
    %387 = arith.mulf %386, %367 : vector<16x128xf32>
    %388 = arith.addf %385, %387 : vector<16x128xf32>
    %389 = vector.broadcast %18 : vector<16x1xf32> to vector<16x128xf32>
    %390 = arith.mulf %389, %373 : vector<16x128xf32>
    %391 = arith.addf %388, %390 : vector<16x128xf32>
    %392 = vector.broadcast %19 : vector<16x1xf32> to vector<16x128xf32>
    %393 = arith.addf %391, %392 : vector<16x128xf32>
    %394 = arith.maximumf %383, %393 : vector<16x128xf32>
    %cst_39 = arith.constant 0.000000e+00 : f32
    %395 = vector.broadcast %cst_39 : f32 to vector<16x128xf32>
    %396 = arith.maximumf %394, %395 : vector<16x128xf32>
    %c9 = arith.constant 9 : index
    %c0_40 = arith.constant 0 : index
    %c0_41 = arith.constant 0 : index
    %397 = vector.load %arg4[%c9, %c0_40, %c0_41] : memref<32x16x128xf32, #tpu.memory_space<vmem>>, vector<1x16x128xf32>
    %398 = vector.shape_cast %397 : vector<1x16x128xf32> to vector<16x128xf32>
    %399 = vector.shape_cast %396 : vector<16x128xf32> to vector<1x16x128xf32>
    tpu.vector_store %arg4[%c9, %c0_40, %c0_41], %399 {strides = array<i32>} : memref<32x16x128xf32, #tpu.memory_space<vmem>>, vector<1x16x128xf32>,
    %400 = vector.extract_strided_slice %1 {offsets = [10, 0], sizes = [1, 128], strides = [1, 1]} : vector<32x128xf32> to vector<1x128xf32>
    %401 = vector.shape_cast %400 : vector<1x128xf32> to vector<1x128xf32>
    %402 = vector.broadcast %401 : vector<1x128xf32> to vector<16x128xf32>
    %403 = vector.extract_strided_slice %3 {offsets = [10, 0], sizes = [1, 128], strides = [1, 1]} : vector<32x128xf32> to vector<1x128xf32>
    %404 = vector.shape_cast %403 : vector<1x128xf32> to vector<1x128xf32>
    %405 = vector.broadcast %404 : vector<1x128xf32> to vector<16x128xf32>
    %406 = vector.extract_strided_slice %9 {offsets = [10, 0], sizes = [1, 128], strides = [1, 1]} : vector<32x128xf32> to vector<1x128xf32>
    %407 = vector.shape_cast %406 : vector<1x128xf32> to vector<1x128xf32>
    %408 = vector.broadcast %407 : vector<1x128xf32> to vector<16x128xf32>
    %409 = vector.extract_strided_slice %14 {offsets = [10, 0], sizes = [1, 128], strides = [1, 1]} : vector<32x128xf32> to vector<1x128xf32>
    %410 = vector.shape_cast %409 : vector<1x128xf32> to vector<1x128xf32>
    %411 = vector.broadcast %410 : vector<1x128xf32> to vector<16x128xf32>
    %412 = vector.broadcast %16 : vector<16x1xf32> to vector<16x128xf32>
    %413 = arith.mulf %412, %408 : vector<16x128xf32>
    %414 = vector.broadcast %17 : vector<16x1xf32> to vector<16x128xf32>
    %415 = arith.mulf %414, %402 : vector<16x128xf32>
    %416 = arith.addf %413, %415 : vector<16x128xf32>
    %417 = vector.broadcast %18 : vector<16x1xf32> to vector<16x128xf32>
    %418 = arith.mulf %417, %405 : vector<16x128xf32>
    %419 = arith.addf %416, %418 : vector<16x128xf32>
    %420 = vector.broadcast %19 : vector<16x1xf32> to vector<16x128xf32>
    %421 = arith.addf %419, %420 : vector<16x128xf32>
    %422 = vector.broadcast %16 : vector<16x1xf32> to vector<16x128xf32>
    %423 = arith.mulf %422, %402 : vector<16x128xf32>
    %424 = vector.broadcast %17 : vector<16x1xf32> to vector<16x128xf32>
    %425 = arith.mulf %424, %405 : vector<16x128xf32>
    %426 = arith.addf %423, %425 : vector<16x128xf32>
    %427 = vector.broadcast %18 : vector<16x1xf32> to vector<16x128xf32>
    %428 = arith.mulf %427, %411 : vector<16x128xf32>
    %429 = arith.addf %426, %428 : vector<16x128xf32>
    %430 = vector.broadcast %19 : vector<16x1xf32> to vector<16x128xf32>
    %431 = arith.addf %429, %430 : vector<16x128xf32>
    %432 = arith.maximumf %421, %431 : vector<16x128xf32>
    %cst_42 = arith.constant 0.000000e+00 : f32
    %433 = vector.broadcast %cst_42 : f32 to vector<16x128xf32>
    %434 = arith.maximumf %432, %433 : vector<16x128xf32>
    %c10 = arith.constant 10 : index
    %c0_43 = arith.constant 0 : index
    %c0_44 = arith.constant 0 : index
    %435 = vector.load %arg4[%c10, %c0_43, %c0_44] : memref<32x16x128xf32, #tpu.memory_space<vmem>>, vector<1x16x128xf32>
    %436 = vector.shape_cast %435 : vector<1x16x128xf32> to vector<16x128xf32>
    %437 = vector.shape_cast %434 : vector<16x128xf32> to vector<1x16x128xf32>
    tpu.vector_store %arg4[%c10, %c0_43, %c0_44], %437 {strides = array<i32>} : memref<32x16x128xf32, #tpu.memory_space<vmem>>, vector<1x16x128xf32>,
    %438 = vector.extract_strided_slice %1 {offsets = [11, 0], sizes = [1, 128], strides = [1, 1]} : vector<32x128xf32> to vector<1x128xf32>
    %439 = vector.shape_cast %438 : vector<1x128xf32> to vector<1x128xf32>
    %440 = vector.broadcast %439 : vector<1x128xf32> to vector<16x128xf32>
    %441 = vector.extract_strided_slice %3 {offsets = [11, 0], sizes = [1, 128], strides = [1, 1]} : vector<32x128xf32> to vector<1x128xf32>
    %442 = vector.shape_cast %441 : vector<1x128xf32> to vector<1x128xf32>
    %443 = vector.broadcast %442 : vector<1x128xf32> to vector<16x128xf32>
    %444 = vector.extract_strided_slice %9 {offsets = [11, 0], sizes = [1, 128], strides = [1, 1]} : vector<32x128xf32> to vector<1x128xf32>
    %445 = vector.shape_cast %444 : vector<1x128xf32> to vector<1x128xf32>
    %446 = vector.broadcast %445 : vector<1x128xf32> to vector<16x128xf32>
    %447 = vector.extract_strided_slice %14 {offsets = [11, 0], sizes = [1, 128], strides = [1, 1]} : vector<32x128xf32> to vector<1x128xf32>
    %448 = vector.shape_cast %447 : vector<1x128xf32> to vector<1x128xf32>
    %449 = vector.broadcast %448 : vector<1x128xf32> to vector<16x128xf32>
    %450 = vector.broadcast %16 : vector<16x1xf32> to vector<16x128xf32>
    %451 = arith.mulf %450, %446 : vector<16x128xf32>
    %452 = vector.broadcast %17 : vector<16x1xf32> to vector<16x128xf32>
    %453 = arith.mulf %452, %440 : vector<16x128xf32>
    %454 = arith.addf %451, %453 : vector<16x128xf32>
    %455 = vector.broadcast %18 : vector<16x1xf32> to vector<16x128xf32>
    %456 = arith.mulf %455, %443 : vector<16x128xf32>
    %457 = arith.addf %454, %456 : vector<16x128xf32>
    %458 = vector.broadcast %19 : vector<16x1xf32> to vector<16x128xf32>
    %459 = arith.addf %457, %458 : vector<16x128xf32>
    %460 = vector.broadcast %16 : vector<16x1xf32> to vector<16x128xf32>
    %461 = arith.mulf %460, %440 : vector<16x128xf32>
    %462 = vector.broadcast %17 : vector<16x1xf32> to vector<16x128xf32>
    %463 = arith.mulf %462, %443 : vector<16x128xf32>
    %464 = arith.addf %461, %463 : vector<16x128xf32>
    %465 = vector.broadcast %18 : vector<16x1xf32> to vector<16x128xf32>
    %466 = arith.mulf %465, %449 : vector<16x128xf32>
    %467 = arith.addf %464, %466 : vector<16x128xf32>
    %468 = vector.broadcast %19 : vector<16x1xf32> to vector<16x128xf32>
    %469 = arith.addf %467, %468 : vector<16x128xf32>
    %470 = arith.maximumf %459, %469 : vector<16x128xf32>
    %cst_45 = arith.constant 0.000000e+00 : f32
    %471 = vector.broadcast %cst_45 : f32 to vector<16x128xf32>
    %472 = arith.maximumf %470, %471 : vector<16x128xf32>
    %c11 = arith.constant 11 : index
    %c0_46 = arith.constant 0 : index
    %c0_47 = arith.constant 0 : index
    %473 = vector.load %arg4[%c11, %c0_46, %c0_47] : memref<32x16x128xf32, #tpu.memory_space<vmem>>, vector<1x16x128xf32>
    %474 = vector.shape_cast %473 : vector<1x16x128xf32> to vector<16x128xf32>
    %475 = vector.shape_cast %472 : vector<16x128xf32> to vector<1x16x128xf32>
    tpu.vector_store %arg4[%c11, %c0_46, %c0_47], %475 {strides = array<i32>} : memref<32x16x128xf32, #tpu.memory_space<vmem>>, vector<1x16x128xf32>,
    %476 = vector.extract_strided_slice %1 {offsets = [12, 0], sizes = [1, 128], strides = [1, 1]} : vector<32x128xf32> to vector<1x128xf32>
    %477 = vector.shape_cast %476 : vector<1x128xf32> to vector<1x128xf32>
    %478 = vector.broadcast %477 : vector<1x128xf32> to vector<16x128xf32>
    %479 = vector.extract_strided_slice %3 {offsets = [12, 0], sizes = [1, 128], strides = [1, 1]} : vector<32x128xf32> to vector<1x128xf32>
    %480 = vector.shape_cast %479 : vector<1x128xf32> to vector<1x128xf32>
    %481 = vector.broadcast %480 : vector<1x128xf32> to vector<16x128xf32>
    %482 = vector.extract_strided_slice %9 {offsets = [12, 0], sizes = [1, 128], strides = [1, 1]} : vector<32x128xf32> to vector<1x128xf32>
    %483 = vector.shape_cast %482 : vector<1x128xf32> to vector<1x128xf32>
    %484 = vector.broadcast %483 : vector<1x128xf32> to vector<16x128xf32>
    %485 = vector.extract_strided_slice %14 {offsets = [12, 0], sizes = [1, 128], strides = [1, 1]} : vector<32x128xf32> to vector<1x128xf32>
    %486 = vector.shape_cast %485 : vector<1x128xf32> to vector<1x128xf32>
    %487 = vector.broadcast %486 : vector<1x128xf32> to vector<16x128xf32>
    %488 = vector.broadcast %16 : vector<16x1xf32> to vector<16x128xf32>
    %489 = arith.mulf %488, %484 : vector<16x128xf32>
    %490 = vector.broadcast %17 : vector<16x1xf32> to vector<16x128xf32>
    %491 = arith.mulf %490, %478 : vector<16x128xf32>
    %492 = arith.addf %489, %491 : vector<16x128xf32>
    %493 = vector.broadcast %18 : vector<16x1xf32> to vector<16x128xf32>
    %494 = arith.mulf %493, %481 : vector<16x128xf32>
    %495 = arith.addf %492, %494 : vector<16x128xf32>
    %496 = vector.broadcast %19 : vector<16x1xf32> to vector<16x128xf32>
    %497 = arith.addf %495, %496 : vector<16x128xf32>
    %498 = vector.broadcast %16 : vector<16x1xf32> to vector<16x128xf32>
    %499 = arith.mulf %498, %478 : vector<16x128xf32>
    %500 = vector.broadcast %17 : vector<16x1xf32> to vector<16x128xf32>
    %501 = arith.mulf %500, %481 : vector<16x128xf32>
    %502 = arith.addf %499, %501 : vector<16x128xf32>
    %503 = vector.broadcast %18 : vector<16x1xf32> to vector<16x128xf32>
    %504 = arith.mulf %503, %487 : vector<16x128xf32>
    %505 = arith.addf %502, %504 : vector<16x128xf32>
    %506 = vector.broadcast %19 : vector<16x1xf32> to vector<16x128xf32>
    %507 = arith.addf %505, %506 : vector<16x128xf32>
    %508 = arith.maximumf %497, %507 : vector<16x128xf32>
    %cst_48 = arith.constant 0.000000e+00 : f32
    %509 = vector.broadcast %cst_48 : f32 to vector<16x128xf32>
    %510 = arith.maximumf %508, %509 : vector<16x128xf32>
    %c12 = arith.constant 12 : index
    %c0_49 = arith.constant 0 : index
    %c0_50 = arith.constant 0 : index
    %511 = vector.load %arg4[%c12, %c0_49, %c0_50] : memref<32x16x128xf32, #tpu.memory_space<vmem>>, vector<1x16x128xf32>
    %512 = vector.shape_cast %511 : vector<1x16x128xf32> to vector<16x128xf32>
    %513 = vector.shape_cast %510 : vector<16x128xf32> to vector<1x16x128xf32>
    tpu.vector_store %arg4[%c12, %c0_49, %c0_50], %513 {strides = array<i32>} : memref<32x16x128xf32, #tpu.memory_space<vmem>>, vector<1x16x128xf32>,
    %514 = vector.extract_strided_slice %1 {offsets = [13, 0], sizes = [1, 128], strides = [1, 1]} : vector<32x128xf32> to vector<1x128xf32>
    %515 = vector.shape_cast %514 : vector<1x128xf32> to vector<1x128xf32>
    %516 = vector.broadcast %515 : vector<1x128xf32> to vector<16x128xf32>
    %517 = vector.extract_strided_slice %3 {offsets = [13, 0], sizes = [1, 128], strides = [1, 1]} : vector<32x128xf32> to vector<1x128xf32>
    %518 = vector.shape_cast %517 : vector<1x128xf32> to vector<1x128xf32>
    %519 = vector.broadcast %518 : vector<1x128xf32> to vector<16x128xf32>
    %520 = vector.extract_strided_slice %9 {offsets = [13, 0], sizes = [1, 128], strides = [1, 1]} : vector<32x128xf32> to vector<1x128xf32>
    %521 = vector.shape_cast %520 : vector<1x128xf32> to vector<1x128xf32>
    %522 = vector.broadcast %521 : vector<1x128xf32> to vector<16x128xf32>
    %523 = vector.extract_strided_slice %14 {offsets = [13, 0], sizes = [1, 128], strides = [1, 1]} : vector<32x128xf32> to vector<1x128xf32>
    %524 = vector.shape_cast %523 : vector<1x128xf32> to vector<1x128xf32>
    %525 = vector.broadcast %524 : vector<1x128xf32> to vector<16x128xf32>
    %526 = vector.broadcast %16 : vector<16x1xf32> to vector<16x128xf32>
    %527 = arith.mulf %526, %522 : vector<16x128xf32>
    %528 = vector.broadcast %17 : vector<16x1xf32> to vector<16x128xf32>
    %529 = arith.mulf %528, %516 : vector<16x128xf32>
    %530 = arith.addf %527, %529 : vector<16x128xf32>
    %531 = vector.broadcast %18 : vector<16x1xf32> to vector<16x128xf32>
    %532 = arith.mulf %531, %519 : vector<16x128xf32>
    %533 = arith.addf %530, %532 : vector<16x128xf32>
    %534 = vector.broadcast %19 : vector<16x1xf32> to vector<16x128xf32>
    %535 = arith.addf %533, %534 : vector<16x128xf32>
    %536 = vector.broadcast %16 : vector<16x1xf32> to vector<16x128xf32>
    %537 = arith.mulf %536, %516 : vector<16x128xf32>
    %538 = vector.broadcast %17 : vector<16x1xf32> to vector<16x128xf32>
    %539 = arith.mulf %538, %519 : vector<16x128xf32>
    %540 = arith.addf %537, %539 : vector<16x128xf32>
    %541 = vector.broadcast %18 : vector<16x1xf32> to vector<16x128xf32>
    %542 = arith.mulf %541, %525 : vector<16x128xf32>
    %543 = arith.addf %540, %542 : vector<16x128xf32>
    %544 = vector.broadcast %19 : vector<16x1xf32> to vector<16x128xf32>
    %545 = arith.addf %543, %544 : vector<16x128xf32>
    %546 = arith.maximumf %535, %545 : vector<16x128xf32>
    %cst_51 = arith.constant 0.000000e+00 : f32
    %547 = vector.broadcast %cst_51 : f32 to vector<16x128xf32>
    %548 = arith.maximumf %546, %547 : vector<16x128xf32>
    %c13 = arith.constant 13 : index
    %c0_52 = arith.constant 0 : index
    %c0_53 = arith.constant 0 : index
    %549 = vector.load %arg4[%c13, %c0_52, %c0_53] : memref<32x16x128xf32, #tpu.memory_space<vmem>>, vector<1x16x128xf32>
    %550 = vector.shape_cast %549 : vector<1x16x128xf32> to vector<16x128xf32>
    %551 = vector.shape_cast %548 : vector<16x128xf32> to vector<1x16x128xf32>
    tpu.vector_store %arg4[%c13, %c0_52, %c0_53], %551 {strides = array<i32>} : memref<32x16x128xf32, #tpu.memory_space<vmem>>, vector<1x16x128xf32>,
    %552 = vector.extract_strided_slice %1 {offsets = [14, 0], sizes = [1, 128], strides = [1, 1]} : vector<32x128xf32> to vector<1x128xf32>
    %553 = vector.shape_cast %552 : vector<1x128xf32> to vector<1x128xf32>
    %554 = vector.broadcast %553 : vector<1x128xf32> to vector<16x128xf32>
    %555 = vector.extract_strided_slice %3 {offsets = [14, 0], sizes = [1, 128], strides = [1, 1]} : vector<32x128xf32> to vector<1x128xf32>
    %556 = vector.shape_cast %555 : vector<1x128xf32> to vector<1x128xf32>
    %557 = vector.broadcast %556 : vector<1x128xf32> to vector<16x128xf32>
    %558 = vector.extract_strided_slice %9 {offsets = [14, 0], sizes = [1, 128], strides = [1, 1]} : vector<32x128xf32> to vector<1x128xf32>
    %559 = vector.shape_cast %558 : vector<1x128xf32> to vector<1x128xf32>
    %560 = vector.broadcast %559 : vector<1x128xf32> to vector<16x128xf32>
    %561 = vector.extract_strided_slice %14 {offsets = [14, 0], sizes = [1, 128], strides = [1, 1]} : vector<32x128xf32> to vector<1x128xf32>
    %562 = vector.shape_cast %561 : vector<1x128xf32> to vector<1x128xf32>
    %563 = vector.broadcast %562 : vector<1x128xf32> to vector<16x128xf32>
    %564 = vector.broadcast %16 : vector<16x1xf32> to vector<16x128xf32>
    %565 = arith.mulf %564, %560 : vector<16x128xf32>
    %566 = vector.broadcast %17 : vector<16x1xf32> to vector<16x128xf32>
    %567 = arith.mulf %566, %554 : vector<16x128xf32>
    %568 = arith.addf %565, %567 : vector<16x128xf32>
    %569 = vector.broadcast %18 : vector<16x1xf32> to vector<16x128xf32>
    %570 = arith.mulf %569, %557 : vector<16x128xf32>
    %571 = arith.addf %568, %570 : vector<16x128xf32>
    %572 = vector.broadcast %19 : vector<16x1xf32> to vector<16x128xf32>
    %573 = arith.addf %571, %572 : vector<16x128xf32>
    %574 = vector.broadcast %16 : vector<16x1xf32> to vector<16x128xf32>
    %575 = arith.mulf %574, %554 : vector<16x128xf32>
    %576 = vector.broadcast %17 : vector<16x1xf32> to vector<16x128xf32>
    %577 = arith.mulf %576, %557 : vector<16x128xf32>
    %578 = arith.addf %575, %577 : vector<16x128xf32>
    %579 = vector.broadcast %18 : vector<16x1xf32> to vector<16x128xf32>
    %580 = arith.mulf %579, %563 : vector<16x128xf32>
    %581 = arith.addf %578, %580 : vector<16x128xf32>
    %582 = vector.broadcast %19 : vector<16x1xf32> to vector<16x128xf32>
    %583 = arith.addf %581, %582 : vector<16x128xf32>
    %584 = arith.maximumf %573, %583 : vector<16x128xf32>
    %cst_54 = arith.constant 0.000000e+00 : f32
    %585 = vector.broadcast %cst_54 : f32 to vector<16x128xf32>
    %586 = arith.maximumf %584, %585 : vector<16x128xf32>
    %c14 = arith.constant 14 : index
    %c0_55 = arith.constant 0 : index
    %c0_56 = arith.constant 0 : index
    %587 = vector.load %arg4[%c14, %c0_55, %c0_56] : memref<32x16x128xf32, #tpu.memory_space<vmem>>, vector<1x16x128xf32>
    %588 = vector.shape_cast %587 : vector<1x16x128xf32> to vector<16x128xf32>
    %589 = vector.shape_cast %586 : vector<16x128xf32> to vector<1x16x128xf32>
    tpu.vector_store %arg4[%c14, %c0_55, %c0_56], %589 {strides = array<i32>} : memref<32x16x128xf32, #tpu.memory_space<vmem>>, vector<1x16x128xf32>,
    %590 = vector.extract_strided_slice %1 {offsets = [15, 0], sizes = [1, 128], strides = [1, 1]} : vector<32x128xf32> to vector<1x128xf32>
    %591 = vector.shape_cast %590 : vector<1x128xf32> to vector<1x128xf32>
    %592 = vector.broadcast %591 : vector<1x128xf32> to vector<16x128xf32>
    %593 = vector.extract_strided_slice %3 {offsets = [15, 0], sizes = [1, 128], strides = [1, 1]} : vector<32x128xf32> to vector<1x128xf32>
    %594 = vector.shape_cast %593 : vector<1x128xf32> to vector<1x128xf32>
    %595 = vector.broadcast %594 : vector<1x128xf32> to vector<16x128xf32>
    %596 = vector.extract_strided_slice %9 {offsets = [15, 0], sizes = [1, 128], strides = [1, 1]} : vector<32x128xf32> to vector<1x128xf32>
    %597 = vector.shape_cast %596 : vector<1x128xf32> to vector<1x128xf32>
    %598 = vector.broadcast %597 : vector<1x128xf32> to vector<16x128xf32>
    %599 = vector.extract_strided_slice %14 {offsets = [15, 0], sizes = [1, 128], strides = [1, 1]} : vector<32x128xf32> to vector<1x128xf32>
    %600 = vector.shape_cast %599 : vector<1x128xf32> to vector<1x128xf32>
    %601 = vector.broadcast %600 : vector<1x128xf32> to vector<16x128xf32>
    %602 = vector.broadcast %16 : vector<16x1xf32> to vector<16x128xf32>
    %603 = arith.mulf %602, %598 : vector<16x128xf32>
    %604 = vector.broadcast %17 : vector<16x1xf32> to vector<16x128xf32>
    %605 = arith.mulf %604, %592 : vector<16x128xf32>
    %606 = arith.addf %603, %605 : vector<16x128xf32>
    %607 = vector.broadcast %18 : vector<16x1xf32> to vector<16x128xf32>
    %608 = arith.mulf %607, %595 : vector<16x128xf32>
    %609 = arith.addf %606, %608 : vector<16x128xf32>
    %610 = vector.broadcast %19 : vector<16x1xf32> to vector<16x128xf32>
    %611 = arith.addf %609, %610 : vector<16x128xf32>
    %612 = vector.broadcast %16 : vector<16x1xf32> to vector<16x128xf32>
    %613 = arith.mulf %612, %592 : vector<16x128xf32>
    %614 = vector.broadcast %17 : vector<16x1xf32> to vector<16x128xf32>
    %615 = arith.mulf %614, %595 : vector<16x128xf32>
    %616 = arith.addf %613, %615 : vector<16x128xf32>
    %617 = vector.broadcast %18 : vector<16x1xf32> to vector<16x128xf32>
    %618 = arith.mulf %617, %601 : vector<16x128xf32>
    %619 = arith.addf %616, %618 : vector<16x128xf32>
    %620 = vector.broadcast %19 : vector<16x1xf32> to vector<16x128xf32>
    %621 = arith.addf %619, %620 : vector<16x128xf32>
    %622 = arith.maximumf %611, %621 : vector<16x128xf32>
    %cst_57 = arith.constant 0.000000e+00 : f32
    %623 = vector.broadcast %cst_57 : f32 to vector<16x128xf32>
    %624 = arith.maximumf %622, %623 : vector<16x128xf32>
    %c15 = arith.constant 15 : index
    %c0_58 = arith.constant 0 : index
    %c0_59 = arith.constant 0 : index
    %625 = vector.load %arg4[%c15, %c0_58, %c0_59] : memref<32x16x128xf32, #tpu.memory_space<vmem>>, vector<1x16x128xf32>
    %626 = vector.shape_cast %625 : vector<1x16x128xf32> to vector<16x128xf32>
    %627 = vector.shape_cast %624 : vector<16x128xf32> to vector<1x16x128xf32>
    tpu.vector_store %arg4[%c15, %c0_58, %c0_59], %627 {strides = array<i32>} : memref<32x16x128xf32, #tpu.memory_space<vmem>>, vector<1x16x128xf32>,
    %628 = vector.extract_strided_slice %1 {offsets = [16, 0], sizes = [1, 128], strides = [1, 1]} : vector<32x128xf32> to vector<1x128xf32>
    %629 = vector.shape_cast %628 : vector<1x128xf32> to vector<1x128xf32>
    %630 = vector.broadcast %629 : vector<1x128xf32> to vector<16x128xf32>
    %631 = vector.extract_strided_slice %3 {offsets = [16, 0], sizes = [1, 128], strides = [1, 1]} : vector<32x128xf32> to vector<1x128xf32>
    %632 = vector.shape_cast %631 : vector<1x128xf32> to vector<1x128xf32>
    %633 = vector.broadcast %632 : vector<1x128xf32> to vector<16x128xf32>
    %634 = vector.extract_strided_slice %9 {offsets = [16, 0], sizes = [1, 128], strides = [1, 1]} : vector<32x128xf32> to vector<1x128xf32>
    %635 = vector.shape_cast %634 : vector<1x128xf32> to vector<1x128xf32>
    %636 = vector.broadcast %635 : vector<1x128xf32> to vector<16x128xf32>
    %637 = vector.extract_strided_slice %14 {offsets = [16, 0], sizes = [1, 128], strides = [1, 1]} : vector<32x128xf32> to vector<1x128xf32>
    %638 = vector.shape_cast %637 : vector<1x128xf32> to vector<1x128xf32>
    %639 = vector.broadcast %638 : vector<1x128xf32> to vector<16x128xf32>
    %640 = vector.broadcast %16 : vector<16x1xf32> to vector<16x128xf32>
    %641 = arith.mulf %640, %636 : vector<16x128xf32>
    %642 = vector.broadcast %17 : vector<16x1xf32> to vector<16x128xf32>
    %643 = arith.mulf %642, %630 : vector<16x128xf32>
    %644 = arith.addf %641, %643 : vector<16x128xf32>
    %645 = vector.broadcast %18 : vector<16x1xf32> to vector<16x128xf32>
    %646 = arith.mulf %645, %633 : vector<16x128xf32>
    %647 = arith.addf %644, %646 : vector<16x128xf32>
    %648 = vector.broadcast %19 : vector<16x1xf32> to vector<16x128xf32>
    %649 = arith.addf %647, %648 : vector<16x128xf32>
    %650 = vector.broadcast %16 : vector<16x1xf32> to vector<16x128xf32>
    %651 = arith.mulf %650, %630 : vector<16x128xf32>
    %652 = vector.broadcast %17 : vector<16x1xf32> to vector<16x128xf32>
    %653 = arith.mulf %652, %633 : vector<16x128xf32>
    %654 = arith.addf %651, %653 : vector<16x128xf32>
    %655 = vector.broadcast %18 : vector<16x1xf32> to vector<16x128xf32>
    %656 = arith.mulf %655, %639 : vector<16x128xf32>
    %657 = arith.addf %654, %656 : vector<16x128xf32>
    %658 = vector.broadcast %19 : vector<16x1xf32> to vector<16x128xf32>
    %659 = arith.addf %657, %658 : vector<16x128xf32>
    %660 = arith.maximumf %649, %659 : vector<16x128xf32>
    %cst_60 = arith.constant 0.000000e+00 : f32
    %661 = vector.broadcast %cst_60 : f32 to vector<16x128xf32>
    %662 = arith.maximumf %660, %661 : vector<16x128xf32>
    %c16 = arith.constant 16 : index
    %c0_61 = arith.constant 0 : index
    %c0_62 = arith.constant 0 : index
    %663 = vector.load %arg4[%c16, %c0_61, %c0_62] : memref<32x16x128xf32, #tpu.memory_space<vmem>>, vector<1x16x128xf32>
    %664 = vector.shape_cast %663 : vector<1x16x128xf32> to vector<16x128xf32>
    %665 = vector.shape_cast %662 : vector<16x128xf32> to vector<1x16x128xf32>
    tpu.vector_store %arg4[%c16, %c0_61, %c0_62], %665 {strides = array<i32>} : memref<32x16x128xf32, #tpu.memory_space<vmem>>, vector<1x16x128xf32>,
    %666 = vector.extract_strided_slice %1 {offsets = [17, 0], sizes = [1, 128], strides = [1, 1]} : vector<32x128xf32> to vector<1x128xf32>
    %667 = vector.shape_cast %666 : vector<1x128xf32> to vector<1x128xf32>
    %668 = vector.broadcast %667 : vector<1x128xf32> to vector<16x128xf32>
    %669 = vector.extract_strided_slice %3 {offsets = [17, 0], sizes = [1, 128], strides = [1, 1]} : vector<32x128xf32> to vector<1x128xf32>
    %670 = vector.shape_cast %669 : vector<1x128xf32> to vector<1x128xf32>
    %671 = vector.broadcast %670 : vector<1x128xf32> to vector<16x128xf32>
    %672 = vector.extract_strided_slice %9 {offsets = [17, 0], sizes = [1, 128], strides = [1, 1]} : vector<32x128xf32> to vector<1x128xf32>
    %673 = vector.shape_cast %672 : vector<1x128xf32> to vector<1x128xf32>
    %674 = vector.broadcast %673 : vector<1x128xf32> to vector<16x128xf32>
    %675 = vector.extract_strided_slice %14 {offsets = [17, 0], sizes = [1, 128], strides = [1, 1]} : vector<32x128xf32> to vector<1x128xf32>
    %676 = vector.shape_cast %675 : vector<1x128xf32> to vector<1x128xf32>
    %677 = vector.broadcast %676 : vector<1x128xf32> to vector<16x128xf32>
    %678 = vector.broadcast %16 : vector<16x1xf32> to vector<16x128xf32>
    %679 = arith.mulf %678, %674 : vector<16x128xf32>
    %680 = vector.broadcast %17 : vector<16x1xf32> to vector<16x128xf32>
    %681 = arith.mulf %680, %668 : vector<16x128xf32>
    %682 = arith.addf %679, %681 : vector<16x128xf32>
    %683 = vector.broadcast %18 : vector<16x1xf32> to vector<16x128xf32>
    %684 = arith.mulf %683, %671 : vector<16x128xf32>
    %685 = arith.addf %682, %684 : vector<16x128xf32>
    %686 = vector.broadcast %19 : vector<16x1xf32> to vector<16x128xf32>
    %687 = arith.addf %685, %686 : vector<16x128xf32>
    %688 = vector.broadcast %16 : vector<16x1xf32> to vector<16x128xf32>
    %689 = arith.mulf %688, %668 : vector<16x128xf32>
    %690 = vector.broadcast %17 : vector<16x1xf32> to vector<16x128xf32>
    %691 = arith.mulf %690, %671 : vector<16x128xf32>
    %692 = arith.addf %689, %691 : vector<16x128xf32>
    %693 = vector.broadcast %18 : vector<16x1xf32> to vector<16x128xf32>
    %694 = arith.mulf %693, %677 : vector<16x128xf32>
    %695 = arith.addf %692, %694 : vector<16x128xf32>
    %696 = vector.broadcast %19 : vector<16x1xf32> to vector<16x128xf32>
    %697 = arith.addf %695, %696 : vector<16x128xf32>
    %698 = arith.maximumf %687, %697 : vector<16x128xf32>
    %cst_63 = arith.constant 0.000000e+00 : f32
    %699 = vector.broadcast %cst_63 : f32 to vector<16x128xf32>
    %700 = arith.maximumf %698, %699 : vector<16x128xf32>
    %c17 = arith.constant 17 : index
    %c0_64 = arith.constant 0 : index
    %c0_65 = arith.constant 0 : index
    %701 = vector.load %arg4[%c17, %c0_64, %c0_65] : memref<32x16x128xf32, #tpu.memory_space<vmem>>, vector<1x16x128xf32>
    %702 = vector.shape_cast %701 : vector<1x16x128xf32> to vector<16x128xf32>
    %703 = vector.shape_cast %700 : vector<16x128xf32> to vector<1x16x128xf32>
    tpu.vector_store %arg4[%c17, %c0_64, %c0_65], %703 {strides = array<i32>} : memref<32x16x128xf32, #tpu.memory_space<vmem>>, vector<1x16x128xf32>,
    %704 = vector.extract_strided_slice %1 {offsets = [18, 0], sizes = [1, 128], strides = [1, 1]} : vector<32x128xf32> to vector<1x128xf32>
    %705 = vector.shape_cast %704 : vector<1x128xf32> to vector<1x128xf32>
    %706 = vector.broadcast %705 : vector<1x128xf32> to vector<16x128xf32>
    %707 = vector.extract_strided_slice %3 {offsets = [18, 0], sizes = [1, 128], strides = [1, 1]} : vector<32x128xf32> to vector<1x128xf32>
    %708 = vector.shape_cast %707 : vector<1x128xf32> to vector<1x128xf32>
    %709 = vector.broadcast %708 : vector<1x128xf32> to vector<16x128xf32>
    %710 = vector.extract_strided_slice %9 {offsets = [18, 0], sizes = [1, 128], strides = [1, 1]} : vector<32x128xf32> to vector<1x128xf32>
    %711 = vector.shape_cast %710 : vector<1x128xf32> to vector<1x128xf32>
    %712 = vector.broadcast %711 : vector<1x128xf32> to vector<16x128xf32>
    %713 = vector.extract_strided_slice %14 {offsets = [18, 0], sizes = [1, 128], strides = [1, 1]} : vector<32x128xf32> to vector<1x128xf32>
    %714 = vector.shape_cast %713 : vector<1x128xf32> to vector<1x128xf32>
    %715 = vector.broadcast %714 : vector<1x128xf32> to vector<16x128xf32>
    %716 = vector.broadcast %16 : vector<16x1xf32> to vector<16x128xf32>
    %717 = arith.mulf %716, %712 : vector<16x128xf32>
    %718 = vector.broadcast %17 : vector<16x1xf32> to vector<16x128xf32>
    %719 = arith.mulf %718, %706 : vector<16x128xf32>
    %720 = arith.addf %717, %719 : vector<16x128xf32>
    %721 = vector.broadcast %18 : vector<16x1xf32> to vector<16x128xf32>
    %722 = arith.mulf %721, %709 : vector<16x128xf32>
    %723 = arith.addf %720, %722 : vector<16x128xf32>
    %724 = vector.broadcast %19 : vector<16x1xf32> to vector<16x128xf32>
    %725 = arith.addf %723, %724 : vector<16x128xf32>
    %726 = vector.broadcast %16 : vector<16x1xf32> to vector<16x128xf32>
    %727 = arith.mulf %726, %706 : vector<16x128xf32>
    %728 = vector.broadcast %17 : vector<16x1xf32> to vector<16x128xf32>
    %729 = arith.mulf %728, %709 : vector<16x128xf32>
    %730 = arith.addf %727, %729 : vector<16x128xf32>
    %731 = vector.broadcast %18 : vector<16x1xf32> to vector<16x128xf32>
    %732 = arith.mulf %731, %715 : vector<16x128xf32>
    %733 = arith.addf %730, %732 : vector<16x128xf32>
    %734 = vector.broadcast %19 : vector<16x1xf32> to vector<16x128xf32>
    %735 = arith.addf %733, %734 : vector<16x128xf32>
    %736 = arith.maximumf %725, %735 : vector<16x128xf32>
    %cst_66 = arith.constant 0.000000e+00 : f32
    %737 = vector.broadcast %cst_66 : f32 to vector<16x128xf32>
    %738 = arith.maximumf %736, %737 : vector<16x128xf32>
    %c18 = arith.constant 18 : index
    %c0_67 = arith.constant 0 : index
    %c0_68 = arith.constant 0 : index
    %739 = vector.load %arg4[%c18, %c0_67, %c0_68] : memref<32x16x128xf32, #tpu.memory_space<vmem>>, vector<1x16x128xf32>
    %740 = vector.shape_cast %739 : vector<1x16x128xf32> to vector<16x128xf32>
    %741 = vector.shape_cast %738 : vector<16x128xf32> to vector<1x16x128xf32>
    tpu.vector_store %arg4[%c18, %c0_67, %c0_68], %741 {strides = array<i32>} : memref<32x16x128xf32, #tpu.memory_space<vmem>>, vector<1x16x128xf32>,
    %742 = vector.extract_strided_slice %1 {offsets = [19, 0], sizes = [1, 128], strides = [1, 1]} : vector<32x128xf32> to vector<1x128xf32>
    %743 = vector.shape_cast %742 : vector<1x128xf32> to vector<1x128xf32>
    %744 = vector.broadcast %743 : vector<1x128xf32> to vector<16x128xf32>
    %745 = vector.extract_strided_slice %3 {offsets = [19, 0], sizes = [1, 128], strides = [1, 1]} : vector<32x128xf32> to vector<1x128xf32>
    %746 = vector.shape_cast %745 : vector<1x128xf32> to vector<1x128xf32>
    %747 = vector.broadcast %746 : vector<1x128xf32> to vector<16x128xf32>
    %748 = vector.extract_strided_slice %9 {offsets = [19, 0], sizes = [1, 128], strides = [1, 1]} : vector<32x128xf32> to vector<1x128xf32>
    %749 = vector.shape_cast %748 : vector<1x128xf32> to vector<1x128xf32>
    %750 = vector.broadcast %749 : vector<1x128xf32> to vector<16x128xf32>
    %751 = vector.extract_strided_slice %14 {offsets = [19, 0], sizes = [1, 128], strides = [1, 1]} : vector<32x128xf32> to vector<1x128xf32>
    %752 = vector.shape_cast %751 : vector<1x128xf32> to vector<1x128xf32>
    %753 = vector.broadcast %752 : vector<1x128xf32> to vector<16x128xf32>
    %754 = vector.broadcast %16 : vector<16x1xf32> to vector<16x128xf32>
    %755 = arith.mulf %754, %750 : vector<16x128xf32>
    %756 = vector.broadcast %17 : vector<16x1xf32> to vector<16x128xf32>
    %757 = arith.mulf %756, %744 : vector<16x128xf32>
    %758 = arith.addf %755, %757 : vector<16x128xf32>
    %759 = vector.broadcast %18 : vector<16x1xf32> to vector<16x128xf32>
    %760 = arith.mulf %759, %747 : vector<16x128xf32>
    %761 = arith.addf %758, %760 : vector<16x128xf32>
    %762 = vector.broadcast %19 : vector<16x1xf32> to vector<16x128xf32>
    %763 = arith.addf %761, %762 : vector<16x128xf32>
    %764 = vector.broadcast %16 : vector<16x1xf32> to vector<16x128xf32>
    %765 = arith.mulf %764, %744 : vector<16x128xf32>
    %766 = vector.broadcast %17 : vector<16x1xf32> to vector<16x128xf32>
    %767 = arith.mulf %766, %747 : vector<16x128xf32>
    %768 = arith.addf %765, %767 : vector<16x128xf32>
    %769 = vector.broadcast %18 : vector<16x1xf32> to vector<16x128xf32>
    %770 = arith.mulf %769, %753 : vector<16x128xf32>
    %771 = arith.addf %768, %770 : vector<16x128xf32>
    %772 = vector.broadcast %19 : vector<16x1xf32> to vector<16x128xf32>
    %773 = arith.addf %771, %772 : vector<16x128xf32>
    %774 = arith.maximumf %763, %773 : vector<16x128xf32>
    %cst_69 = arith.constant 0.000000e+00 : f32
    %775 = vector.broadcast %cst_69 : f32 to vector<16x128xf32>
    %776 = arith.maximumf %774, %775 : vector<16x128xf32>
    %c19 = arith.constant 19 : index
    %c0_70 = arith.constant 0 : index
    %c0_71 = arith.constant 0 : index
    %777 = vector.load %arg4[%c19, %c0_70, %c0_71] : memref<32x16x128xf32, #tpu.memory_space<vmem>>, vector<1x16x128xf32>
    %778 = vector.shape_cast %777 : vector<1x16x128xf32> to vector<16x128xf32>
    %779 = vector.shape_cast %776 : vector<16x128xf32> to vector<1x16x128xf32>
    tpu.vector_store %arg4[%c19, %c0_70, %c0_71], %779 {strides = array<i32>} : memref<32x16x128xf32, #tpu.memory_space<vmem>>, vector<1x16x128xf32>,
    %780 = vector.extract_strided_slice %1 {offsets = [20, 0], sizes = [1, 128], strides = [1, 1]} : vector<32x128xf32> to vector<1x128xf32>
    %781 = vector.shape_cast %780 : vector<1x128xf32> to vector<1x128xf32>
    %782 = vector.broadcast %781 : vector<1x128xf32> to vector<16x128xf32>
    %783 = vector.extract_strided_slice %3 {offsets = [20, 0], sizes = [1, 128], strides = [1, 1]} : vector<32x128xf32> to vector<1x128xf32>
    %784 = vector.shape_cast %783 : vector<1x128xf32> to vector<1x128xf32>
    %785 = vector.broadcast %784 : vector<1x128xf32> to vector<16x128xf32>
    %786 = vector.extract_strided_slice %9 {offsets = [20, 0], sizes = [1, 128], strides = [1, 1]} : vector<32x128xf32> to vector<1x128xf32>
    %787 = vector.shape_cast %786 : vector<1x128xf32> to vector<1x128xf32>
    %788 = vector.broadcast %787 : vector<1x128xf32> to vector<16x128xf32>
    %789 = vector.extract_strided_slice %14 {offsets = [20, 0], sizes = [1, 128], strides = [1, 1]} : vector<32x128xf32> to vector<1x128xf32>
    %790 = vector.shape_cast %789 : vector<1x128xf32> to vector<1x128xf32>
    %791 = vector.broadcast %790 : vector<1x128xf32> to vector<16x128xf32>
    %792 = vector.broadcast %16 : vector<16x1xf32> to vector<16x128xf32>
    %793 = arith.mulf %792, %788 : vector<16x128xf32>
    %794 = vector.broadcast %17 : vector<16x1xf32> to vector<16x128xf32>
    %795 = arith.mulf %794, %782 : vector<16x128xf32>
    %796 = arith.addf %793, %795 : vector<16x128xf32>
    %797 = vector.broadcast %18 : vector<16x1xf32> to vector<16x128xf32>
    %798 = arith.mulf %797, %785 : vector<16x128xf32>
    %799 = arith.addf %796, %798 : vector<16x128xf32>
    %800 = vector.broadcast %19 : vector<16x1xf32> to vector<16x128xf32>
    %801 = arith.addf %799, %800 : vector<16x128xf32>
    %802 = vector.broadcast %16 : vector<16x1xf32> to vector<16x128xf32>
    %803 = arith.mulf %802, %782 : vector<16x128xf32>
    %804 = vector.broadcast %17 : vector<16x1xf32> to vector<16x128xf32>
    %805 = arith.mulf %804, %785 : vector<16x128xf32>
    %806 = arith.addf %803, %805 : vector<16x128xf32>
    %807 = vector.broadcast %18 : vector<16x1xf32> to vector<16x128xf32>
    %808 = arith.mulf %807, %791 : vector<16x128xf32>
    %809 = arith.addf %806, %808 : vector<16x128xf32>
    %810 = vector.broadcast %19 : vector<16x1xf32> to vector<16x128xf32>
    %811 = arith.addf %809, %810 : vector<16x128xf32>
    %812 = arith.maximumf %801, %811 : vector<16x128xf32>
    %cst_72 = arith.constant 0.000000e+00 : f32
    %813 = vector.broadcast %cst_72 : f32 to vector<16x128xf32>
    %814 = arith.maximumf %812, %813 : vector<16x128xf32>
    %c20 = arith.constant 20 : index
    %c0_73 = arith.constant 0 : index
    %c0_74 = arith.constant 0 : index
    %815 = vector.load %arg4[%c20, %c0_73, %c0_74] : memref<32x16x128xf32, #tpu.memory_space<vmem>>, vector<1x16x128xf32>
    %816 = vector.shape_cast %815 : vector<1x16x128xf32> to vector<16x128xf32>
    %817 = vector.shape_cast %814 : vector<16x128xf32> to vector<1x16x128xf32>
    tpu.vector_store %arg4[%c20, %c0_73, %c0_74], %817 {strides = array<i32>} : memref<32x16x128xf32, #tpu.memory_space<vmem>>, vector<1x16x128xf32>,
    %818 = vector.extract_strided_slice %1 {offsets = [21, 0], sizes = [1, 128], strides = [1, 1]} : vector<32x128xf32> to vector<1x128xf32>
    %819 = vector.shape_cast %818 : vector<1x128xf32> to vector<1x128xf32>
    %820 = vector.broadcast %819 : vector<1x128xf32> to vector<16x128xf32>
    %821 = vector.extract_strided_slice %3 {offsets = [21, 0], sizes = [1, 128], strides = [1, 1]} : vector<32x128xf32> to vector<1x128xf32>
    %822 = vector.shape_cast %821 : vector<1x128xf32> to vector<1x128xf32>
    %823 = vector.broadcast %822 : vector<1x128xf32> to vector<16x128xf32>
    %824 = vector.extract_strided_slice %9 {offsets = [21, 0], sizes = [1, 128], strides = [1, 1]} : vector<32x128xf32> to vector<1x128xf32>
    %825 = vector.shape_cast %824 : vector<1x128xf32> to vector<1x128xf32>
    %826 = vector.broadcast %825 : vector<1x128xf32> to vector<16x128xf32>
    %827 = vector.extract_strided_slice %14 {offsets = [21, 0], sizes = [1, 128], strides = [1, 1]} : vector<32x128xf32> to vector<1x128xf32>
    %828 = vector.shape_cast %827 : vector<1x128xf32> to vector<1x128xf32>
    %829 = vector.broadcast %828 : vector<1x128xf32> to vector<16x128xf32>
    %830 = vector.broadcast %16 : vector<16x1xf32> to vector<16x128xf32>
    %831 = arith.mulf %830, %826 : vector<16x128xf32>
    %832 = vector.broadcast %17 : vector<16x1xf32> to vector<16x128xf32>
    %833 = arith.mulf %832, %820 : vector<16x128xf32>
    %834 = arith.addf %831, %833 : vector<16x128xf32>
    %835 = vector.broadcast %18 : vector<16x1xf32> to vector<16x128xf32>
    %836 = arith.mulf %835, %823 : vector<16x128xf32>
    %837 = arith.addf %834, %836 : vector<16x128xf32>
    %838 = vector.broadcast %19 : vector<16x1xf32> to vector<16x128xf32>
    %839 = arith.addf %837, %838 : vector<16x128xf32>
    %840 = vector.broadcast %16 : vector<16x1xf32> to vector<16x128xf32>
    %841 = arith.mulf %840, %820 : vector<16x128xf32>
    %842 = vector.broadcast %17 : vector<16x1xf32> to vector<16x128xf32>
    %843 = arith.mulf %842, %823 : vector<16x128xf32>
    %844 = arith.addf %841, %843 : vector<16x128xf32>
    %845 = vector.broadcast %18 : vector<16x1xf32> to vector<16x128xf32>
    %846 = arith.mulf %845, %829 : vector<16x128xf32>
    %847 = arith.addf %844, %846 : vector<16x128xf32>
    %848 = vector.broadcast %19 : vector<16x1xf32> to vector<16x128xf32>
    %849 = arith.addf %847, %848 : vector<16x128xf32>
    %850 = arith.maximumf %839, %849 : vector<16x128xf32>
    %cst_75 = arith.constant 0.000000e+00 : f32
    %851 = vector.broadcast %cst_75 : f32 to vector<16x128xf32>
    %852 = arith.maximumf %850, %851 : vector<16x128xf32>
    %c21 = arith.constant 21 : index
    %c0_76 = arith.constant 0 : index
    %c0_77 = arith.constant 0 : index
    %853 = vector.load %arg4[%c21, %c0_76, %c0_77] : memref<32x16x128xf32, #tpu.memory_space<vmem>>, vector<1x16x128xf32>
    %854 = vector.shape_cast %853 : vector<1x16x128xf32> to vector<16x128xf32>
    %855 = vector.shape_cast %852 : vector<16x128xf32> to vector<1x16x128xf32>
    tpu.vector_store %arg4[%c21, %c0_76, %c0_77], %855 {strides = array<i32>} : memref<32x16x128xf32, #tpu.memory_space<vmem>>, vector<1x16x128xf32>,
    %856 = vector.extract_strided_slice %1 {offsets = [22, 0], sizes = [1, 128], strides = [1, 1]} : vector<32x128xf32> to vector<1x128xf32>
    %857 = vector.shape_cast %856 : vector<1x128xf32> to vector<1x128xf32>
    %858 = vector.broadcast %857 : vector<1x128xf32> to vector<16x128xf32>
    %859 = vector.extract_strided_slice %3 {offsets = [22, 0], sizes = [1, 128], strides = [1, 1]} : vector<32x128xf32> to vector<1x128xf32>
    %860 = vector.shape_cast %859 : vector<1x128xf32> to vector<1x128xf32>
    %861 = vector.broadcast %860 : vector<1x128xf32> to vector<16x128xf32>
    %862 = vector.extract_strided_slice %9 {offsets = [22, 0], sizes = [1, 128], strides = [1, 1]} : vector<32x128xf32> to vector<1x128xf32>
    %863 = vector.shape_cast %862 : vector<1x128xf32> to vector<1x128xf32>
    %864 = vector.broadcast %863 : vector<1x128xf32> to vector<16x128xf32>
    %865 = vector.extract_strided_slice %14 {offsets = [22, 0], sizes = [1, 128], strides = [1, 1]} : vector<32x128xf32> to vector<1x128xf32>
    %866 = vector.shape_cast %865 : vector<1x128xf32> to vector<1x128xf32>
    %867 = vector.broadcast %866 : vector<1x128xf32> to vector<16x128xf32>
    %868 = vector.broadcast %16 : vector<16x1xf32> to vector<16x128xf32>
    %869 = arith.mulf %868, %864 : vector<16x128xf32>
    %870 = vector.broadcast %17 : vector<16x1xf32> to vector<16x128xf32>
    %871 = arith.mulf %870, %858 : vector<16x128xf32>
    %872 = arith.addf %869, %871 : vector<16x128xf32>
    %873 = vector.broadcast %18 : vector<16x1xf32> to vector<16x128xf32>
    %874 = arith.mulf %873, %861 : vector<16x128xf32>
    %875 = arith.addf %872, %874 : vector<16x128xf32>
    %876 = vector.broadcast %19 : vector<16x1xf32> to vector<16x128xf32>
    %877 = arith.addf %875, %876 : vector<16x128xf32>
    %878 = vector.broadcast %16 : vector<16x1xf32> to vector<16x128xf32>
    %879 = arith.mulf %878, %858 : vector<16x128xf32>
    %880 = vector.broadcast %17 : vector<16x1xf32> to vector<16x128xf32>
    %881 = arith.mulf %880, %861 : vector<16x128xf32>
    %882 = arith.addf %879, %881 : vector<16x128xf32>
    %883 = vector.broadcast %18 : vector<16x1xf32> to vector<16x128xf32>
    %884 = arith.mulf %883, %867 : vector<16x128xf32>
    %885 = arith.addf %882, %884 : vector<16x128xf32>
    %886 = vector.broadcast %19 : vector<16x1xf32> to vector<16x128xf32>
    %887 = arith.addf %885, %886 : vector<16x128xf32>
    %888 = arith.maximumf %877, %887 : vector<16x128xf32>
    %cst_78 = arith.constant 0.000000e+00 : f32
    %889 = vector.broadcast %cst_78 : f32 to vector<16x128xf32>
    %890 = arith.maximumf %888, %889 : vector<16x128xf32>
    %c22 = arith.constant 22 : index
    %c0_79 = arith.constant 0 : index
    %c0_80 = arith.constant 0 : index
    %891 = vector.load %arg4[%c22, %c0_79, %c0_80] : memref<32x16x128xf32, #tpu.memory_space<vmem>>, vector<1x16x128xf32>
    %892 = vector.shape_cast %891 : vector<1x16x128xf32> to vector<16x128xf32>
    %893 = vector.shape_cast %890 : vector<16x128xf32> to vector<1x16x128xf32>
    tpu.vector_store %arg4[%c22, %c0_79, %c0_80], %893 {strides = array<i32>} : memref<32x16x128xf32, #tpu.memory_space<vmem>>, vector<1x16x128xf32>,
    %894 = vector.extract_strided_slice %1 {offsets = [23, 0], sizes = [1, 128], strides = [1, 1]} : vector<32x128xf32> to vector<1x128xf32>
    %895 = vector.shape_cast %894 : vector<1x128xf32> to vector<1x128xf32>
    %896 = vector.broadcast %895 : vector<1x128xf32> to vector<16x128xf32>
    %897 = vector.extract_strided_slice %3 {offsets = [23, 0], sizes = [1, 128], strides = [1, 1]} : vector<32x128xf32> to vector<1x128xf32>
    %898 = vector.shape_cast %897 : vector<1x128xf32> to vector<1x128xf32>
    %899 = vector.broadcast %898 : vector<1x128xf32> to vector<16x128xf32>
    %900 = vector.extract_strided_slice %9 {offsets = [23, 0], sizes = [1, 128], strides = [1, 1]} : vector<32x128xf32> to vector<1x128xf32>
    %901 = vector.shape_cast %900 : vector<1x128xf32> to vector<1x128xf32>
    %902 = vector.broadcast %901 : vector<1x128xf32> to vector<16x128xf32>
    %903 = vector.extract_strided_slice %14 {offsets = [23, 0], sizes = [1, 128], strides = [1, 1]} : vector<32x128xf32> to vector<1x128xf32>
    %904 = vector.shape_cast %903 : vector<1x128xf32> to vector<1x128xf32>
    %905 = vector.broadcast %904 : vector<1x128xf32> to vector<16x128xf32>
    %906 = vector.broadcast %16 : vector<16x1xf32> to vector<16x128xf32>
    %907 = arith.mulf %906, %902 : vector<16x128xf32>
    %908 = vector.broadcast %17 : vector<16x1xf32> to vector<16x128xf32>
    %909 = arith.mulf %908, %896 : vector<16x128xf32>
    %910 = arith.addf %907, %909 : vector<16x128xf32>
    %911 = vector.broadcast %18 : vector<16x1xf32> to vector<16x128xf32>
    %912 = arith.mulf %911, %899 : vector<16x128xf32>
    %913 = arith.addf %910, %912 : vector<16x128xf32>
    %914 = vector.broadcast %19 : vector<16x1xf32> to vector<16x128xf32>
    %915 = arith.addf %913, %914 : vector<16x128xf32>
    %916 = vector.broadcast %16 : vector<16x1xf32> to vector<16x128xf32>
    %917 = arith.mulf %916, %896 : vector<16x128xf32>
    %918 = vector.broadcast %17 : vector<16x1xf32> to vector<16x128xf32>
    %919 = arith.mulf %918, %899 : vector<16x128xf32>
    %920 = arith.addf %917, %919 : vector<16x128xf32>
    %921 = vector.broadcast %18 : vector<16x1xf32> to vector<16x128xf32>
    %922 = arith.mulf %921, %905 : vector<16x128xf32>
    %923 = arith.addf %920, %922 : vector<16x128xf32>
    %924 = vector.broadcast %19 : vector<16x1xf32> to vector<16x128xf32>
    %925 = arith.addf %923, %924 : vector<16x128xf32>
    %926 = arith.maximumf %915, %925 : vector<16x128xf32>
    %cst_81 = arith.constant 0.000000e+00 : f32
    %927 = vector.broadcast %cst_81 : f32 to vector<16x128xf32>
    %928 = arith.maximumf %926, %927 : vector<16x128xf32>
    %c23 = arith.constant 23 : index
    %c0_82 = arith.constant 0 : index
    %c0_83 = arith.constant 0 : index
    %929 = vector.load %arg4[%c23, %c0_82, %c0_83] : memref<32x16x128xf32, #tpu.memory_space<vmem>>, vector<1x16x128xf32>
    %930 = vector.shape_cast %929 : vector<1x16x128xf32> to vector<16x128xf32>
    %931 = vector.shape_cast %928 : vector<16x128xf32> to vector<1x16x128xf32>
    tpu.vector_store %arg4[%c23, %c0_82, %c0_83], %931 {strides = array<i32>} : memref<32x16x128xf32, #tpu.memory_space<vmem>>, vector<1x16x128xf32>,
    %932 = vector.extract_strided_slice %1 {offsets = [24, 0], sizes = [1, 128], strides = [1, 1]} : vector<32x128xf32> to vector<1x128xf32>
    %933 = vector.shape_cast %932 : vector<1x128xf32> to vector<1x128xf32>
    %934 = vector.broadcast %933 : vector<1x128xf32> to vector<16x128xf32>
    %935 = vector.extract_strided_slice %3 {offsets = [24, 0], sizes = [1, 128], strides = [1, 1]} : vector<32x128xf32> to vector<1x128xf32>
    %936 = vector.shape_cast %935 : vector<1x128xf32> to vector<1x128xf32>
    %937 = vector.broadcast %936 : vector<1x128xf32> to vector<16x128xf32>
    %938 = vector.extract_strided_slice %9 {offsets = [24, 0], sizes = [1, 128], strides = [1, 1]} : vector<32x128xf32> to vector<1x128xf32>
    %939 = vector.shape_cast %938 : vector<1x128xf32> to vector<1x128xf32>
    %940 = vector.broadcast %939 : vector<1x128xf32> to vector<16x128xf32>
    %941 = vector.extract_strided_slice %14 {offsets = [24, 0], sizes = [1, 128], strides = [1, 1]} : vector<32x128xf32> to vector<1x128xf32>
    %942 = vector.shape_cast %941 : vector<1x128xf32> to vector<1x128xf32>
    %943 = vector.broadcast %942 : vector<1x128xf32> to vector<16x128xf32>
    %944 = vector.broadcast %16 : vector<16x1xf32> to vector<16x128xf32>
    %945 = arith.mulf %944, %940 : vector<16x128xf32>
    %946 = vector.broadcast %17 : vector<16x1xf32> to vector<16x128xf32>
    %947 = arith.mulf %946, %934 : vector<16x128xf32>
    %948 = arith.addf %945, %947 : vector<16x128xf32>
    %949 = vector.broadcast %18 : vector<16x1xf32> to vector<16x128xf32>
    %950 = arith.mulf %949, %937 : vector<16x128xf32>
    %951 = arith.addf %948, %950 : vector<16x128xf32>
    %952 = vector.broadcast %19 : vector<16x1xf32> to vector<16x128xf32>
    %953 = arith.addf %951, %952 : vector<16x128xf32>
    %954 = vector.broadcast %16 : vector<16x1xf32> to vector<16x128xf32>
    %955 = arith.mulf %954, %934 : vector<16x128xf32>
    %956 = vector.broadcast %17 : vector<16x1xf32> to vector<16x128xf32>
    %957 = arith.mulf %956, %937 : vector<16x128xf32>
    %958 = arith.addf %955, %957 : vector<16x128xf32>
    %959 = vector.broadcast %18 : vector<16x1xf32> to vector<16x128xf32>
    %960 = arith.mulf %959, %943 : vector<16x128xf32>
    %961 = arith.addf %958, %960 : vector<16x128xf32>
    %962 = vector.broadcast %19 : vector<16x1xf32> to vector<16x128xf32>
    %963 = arith.addf %961, %962 : vector<16x128xf32>
    %964 = arith.maximumf %953, %963 : vector<16x128xf32>
    %cst_84 = arith.constant 0.000000e+00 : f32
    %965 = vector.broadcast %cst_84 : f32 to vector<16x128xf32>
    %966 = arith.maximumf %964, %965 : vector<16x128xf32>
    %c24 = arith.constant 24 : index
    %c0_85 = arith.constant 0 : index
    %c0_86 = arith.constant 0 : index
    %967 = vector.load %arg4[%c24, %c0_85, %c0_86] : memref<32x16x128xf32, #tpu.memory_space<vmem>>, vector<1x16x128xf32>
    %968 = vector.shape_cast %967 : vector<1x16x128xf32> to vector<16x128xf32>
    %969 = vector.shape_cast %966 : vector<16x128xf32> to vector<1x16x128xf32>
    tpu.vector_store %arg4[%c24, %c0_85, %c0_86], %969 {strides = array<i32>} : memref<32x16x128xf32, #tpu.memory_space<vmem>>, vector<1x16x128xf32>,
    %970 = vector.extract_strided_slice %1 {offsets = [25, 0], sizes = [1, 128], strides = [1, 1]} : vector<32x128xf32> to vector<1x128xf32>
    %971 = vector.shape_cast %970 : vector<1x128xf32> to vector<1x128xf32>
    %972 = vector.broadcast %971 : vector<1x128xf32> to vector<16x128xf32>
    %973 = vector.extract_strided_slice %3 {offsets = [25, 0], sizes = [1, 128], strides = [1, 1]} : vector<32x128xf32> to vector<1x128xf32>
    %974 = vector.shape_cast %973 : vector<1x128xf32> to vector<1x128xf32>
    %975 = vector.broadcast %974 : vector<1x128xf32> to vector<16x128xf32>
    %976 = vector.extract_strided_slice %9 {offsets = [25, 0], sizes = [1, 128], strides = [1, 1]} : vector<32x128xf32> to vector<1x128xf32>
    %977 = vector.shape_cast %976 : vector<1x128xf32> to vector<1x128xf32>
    %978 = vector.broadcast %977 : vector<1x128xf32> to vector<16x128xf32>
    %979 = vector.extract_strided_slice %14 {offsets = [25, 0], sizes = [1, 128], strides = [1, 1]} : vector<32x128xf32> to vector<1x128xf32>
    %980 = vector.shape_cast %979 : vector<1x128xf32> to vector<1x128xf32>
    %981 = vector.broadcast %980 : vector<1x128xf32> to vector<16x128xf32>
    %982 = vector.broadcast %16 : vector<16x1xf32> to vector<16x128xf32>
    %983 = arith.mulf %982, %978 : vector<16x128xf32>
    %984 = vector.broadcast %17 : vector<16x1xf32> to vector<16x128xf32>
    %985 = arith.mulf %984, %972 : vector<16x128xf32>
    %986 = arith.addf %983, %985 : vector<16x128xf32>
    %987 = vector.broadcast %18 : vector<16x1xf32> to vector<16x128xf32>
    %988 = arith.mulf %987, %975 : vector<16x128xf32>
    %989 = arith.addf %986, %988 : vector<16x128xf32>
    %990 = vector.broadcast %19 : vector<16x1xf32> to vector<16x128xf32>
    %991 = arith.addf %989, %990 : vector<16x128xf32>
    %992 = vector.broadcast %16 : vector<16x1xf32> to vector<16x128xf32>
    %993 = arith.mulf %992, %972 : vector<16x128xf32>
    %994 = vector.broadcast %17 : vector<16x1xf32> to vector<16x128xf32>
    %995 = arith.mulf %994, %975 : vector<16x128xf32>
    %996 = arith.addf %993, %995 : vector<16x128xf32>
    %997 = vector.broadcast %18 : vector<16x1xf32> to vector<16x128xf32>
    %998 = arith.mulf %997, %981 : vector<16x128xf32>
    %999 = arith.addf %996, %998 : vector<16x128xf32>
    %1000 = vector.broadcast %19 : vector<16x1xf32> to vector<16x128xf32>
    %1001 = arith.addf %999, %1000 : vector<16x128xf32>
    %1002 = arith.maximumf %991, %1001 : vector<16x128xf32>
    %cst_87 = arith.constant 0.000000e+00 : f32
    %1003 = vector.broadcast %cst_87 : f32 to vector<16x128xf32>
    %1004 = arith.maximumf %1002, %1003 : vector<16x128xf32>
    %c25 = arith.constant 25 : index
    %c0_88 = arith.constant 0 : index
    %c0_89 = arith.constant 0 : index
    %1005 = vector.load %arg4[%c25, %c0_88, %c0_89] : memref<32x16x128xf32, #tpu.memory_space<vmem>>, vector<1x16x128xf32>
    %1006 = vector.shape_cast %1005 : vector<1x16x128xf32> to vector<16x128xf32>
    %1007 = vector.shape_cast %1004 : vector<16x128xf32> to vector<1x16x128xf32>
    tpu.vector_store %arg4[%c25, %c0_88, %c0_89], %1007 {strides = array<i32>} : memref<32x16x128xf32, #tpu.memory_space<vmem>>, vector<1x16x128xf32>,
    %1008 = vector.extract_strided_slice %1 {offsets = [26, 0], sizes = [1, 128], strides = [1, 1]} : vector<32x128xf32> to vector<1x128xf32>
    %1009 = vector.shape_cast %1008 : vector<1x128xf32> to vector<1x128xf32>
    %1010 = vector.broadcast %1009 : vector<1x128xf32> to vector<16x128xf32>
    %1011 = vector.extract_strided_slice %3 {offsets = [26, 0], sizes = [1, 128], strides = [1, 1]} : vector<32x128xf32> to vector<1x128xf32>
    %1012 = vector.shape_cast %1011 : vector<1x128xf32> to vector<1x128xf32>
    %1013 = vector.broadcast %1012 : vector<1x128xf32> to vector<16x128xf32>
    %1014 = vector.extract_strided_slice %9 {offsets = [26, 0], sizes = [1, 128], strides = [1, 1]} : vector<32x128xf32> to vector<1x128xf32>
    %1015 = vector.shape_cast %1014 : vector<1x128xf32> to vector<1x128xf32>
    %1016 = vector.broadcast %1015 : vector<1x128xf32> to vector<16x128xf32>
    %1017 = vector.extract_strided_slice %14 {offsets = [26, 0], sizes = [1, 128], strides = [1, 1]} : vector<32x128xf32> to vector<1x128xf32>
    %1018 = vector.shape_cast %1017 : vector<1x128xf32> to vector<1x128xf32>
    %1019 = vector.broadcast %1018 : vector<1x128xf32> to vector<16x128xf32>
    %1020 = vector.broadcast %16 : vector<16x1xf32> to vector<16x128xf32>
    %1021 = arith.mulf %1020, %1016 : vector<16x128xf32>
    %1022 = vector.broadcast %17 : vector<16x1xf32> to vector<16x128xf32>
    %1023 = arith.mulf %1022, %1010 : vector<16x128xf32>
    %1024 = arith.addf %1021, %1023 : vector<16x128xf32>
    %1025 = vector.broadcast %18 : vector<16x1xf32> to vector<16x128xf32>
    %1026 = arith.mulf %1025, %1013 : vector<16x128xf32>
    %1027 = arith.addf %1024, %1026 : vector<16x128xf32>
    %1028 = vector.broadcast %19 : vector<16x1xf32> to vector<16x128xf32>
    %1029 = arith.addf %1027, %1028 : vector<16x128xf32>
    %1030 = vector.broadcast %16 : vector<16x1xf32> to vector<16x128xf32>
    %1031 = arith.mulf %1030, %1010 : vector<16x128xf32>
    %1032 = vector.broadcast %17 : vector<16x1xf32> to vector<16x128xf32>
    %1033 = arith.mulf %1032, %1013 : vector<16x128xf32>
    %1034 = arith.addf %1031, %1033 : vector<16x128xf32>
    %1035 = vector.broadcast %18 : vector<16x1xf32> to vector<16x128xf32>
    %1036 = arith.mulf %1035, %1019 : vector<16x128xf32>
    %1037 = arith.addf %1034, %1036 : vector<16x128xf32>
    %1038 = vector.broadcast %19 : vector<16x1xf32> to vector<16x128xf32>
    %1039 = arith.addf %1037, %1038 : vector<16x128xf32>
    %1040 = arith.maximumf %1029, %1039 : vector<16x128xf32>
    %cst_90 = arith.constant 0.000000e+00 : f32
    %1041 = vector.broadcast %cst_90 : f32 to vector<16x128xf32>
    %1042 = arith.maximumf %1040, %1041 : vector<16x128xf32>
    %c26 = arith.constant 26 : index
    %c0_91 = arith.constant 0 : index
    %c0_92 = arith.constant 0 : index
    %1043 = vector.load %arg4[%c26, %c0_91, %c0_92] : memref<32x16x128xf32, #tpu.memory_space<vmem>>, vector<1x16x128xf32>
    %1044 = vector.shape_cast %1043 : vector<1x16x128xf32> to vector<16x128xf32>
    %1045 = vector.shape_cast %1042 : vector<16x128xf32> to vector<1x16x128xf32>
    tpu.vector_store %arg4[%c26, %c0_91, %c0_92], %1045 {strides = array<i32>} : memref<32x16x128xf32, #tpu.memory_space<vmem>>, vector<1x16x128xf32>,
    %1046 = vector.extract_strided_slice %1 {offsets = [27, 0], sizes = [1, 128], strides = [1, 1]} : vector<32x128xf32> to vector<1x128xf32>
    %1047 = vector.shape_cast %1046 : vector<1x128xf32> to vector<1x128xf32>
    %1048 = vector.broadcast %1047 : vector<1x128xf32> to vector<16x128xf32>
    %1049 = vector.extract_strided_slice %3 {offsets = [27, 0], sizes = [1, 128], strides = [1, 1]} : vector<32x128xf32> to vector<1x128xf32>
    %1050 = vector.shape_cast %1049 : vector<1x128xf32> to vector<1x128xf32>
    %1051 = vector.broadcast %1050 : vector<1x128xf32> to vector<16x128xf32>
    %1052 = vector.extract_strided_slice %9 {offsets = [27, 0], sizes = [1, 128], strides = [1, 1]} : vector<32x128xf32> to vector<1x128xf32>
    %1053 = vector.shape_cast %1052 : vector<1x128xf32> to vector<1x128xf32>
    %1054 = vector.broadcast %1053 : vector<1x128xf32> to vector<16x128xf32>
    %1055 = vector.extract_strided_slice %14 {offsets = [27, 0], sizes = [1, 128], strides = [1, 1]} : vector<32x128xf32> to vector<1x128xf32>
    %1056 = vector.shape_cast %1055 : vector<1x128xf32> to vector<1x128xf32>
    %1057 = vector.broadcast %1056 : vector<1x128xf32> to vector<16x128xf32>
    %1058 = vector.broadcast %16 : vector<16x1xf32> to vector<16x128xf32>
    %1059 = arith.mulf %1058, %1054 : vector<16x128xf32>
    %1060 = vector.broadcast %17 : vector<16x1xf32> to vector<16x128xf32>
    %1061 = arith.mulf %1060, %1048 : vector<16x128xf32>
    %1062 = arith.addf %1059, %1061 : vector<16x128xf32>
    %1063 = vector.broadcast %18 : vector<16x1xf32> to vector<16x128xf32>
    %1064 = arith.mulf %1063, %1051 : vector<16x128xf32>
    %1065 = arith.addf %1062, %1064 : vector<16x128xf32>
    %1066 = vector.broadcast %19 : vector<16x1xf32> to vector<16x128xf32>
    %1067 = arith.addf %1065, %1066 : vector<16x128xf32>
    %1068 = vector.broadcast %16 : vector<16x1xf32> to vector<16x128xf32>
    %1069 = arith.mulf %1068, %1048 : vector<16x128xf32>
    %1070 = vector.broadcast %17 : vector<16x1xf32> to vector<16x128xf32>
    %1071 = arith.mulf %1070, %1051 : vector<16x128xf32>
    %1072 = arith.addf %1069, %1071 : vector<16x128xf32>
    %1073 = vector.broadcast %18 : vector<16x1xf32> to vector<16x128xf32>
    %1074 = arith.mulf %1073, %1057 : vector<16x128xf32>
    %1075 = arith.addf %1072, %1074 : vector<16x128xf32>
    %1076 = vector.broadcast %19 : vector<16x1xf32> to vector<16x128xf32>
    %1077 = arith.addf %1075, %1076 : vector<16x128xf32>
    %1078 = arith.maximumf %1067, %1077 : vector<16x128xf32>
    %cst_93 = arith.constant 0.000000e+00 : f32
    %1079 = vector.broadcast %cst_93 : f32 to vector<16x128xf32>
    %1080 = arith.maximumf %1078, %1079 : vector<16x128xf32>
    %c27 = arith.constant 27 : index
    %c0_94 = arith.constant 0 : index
    %c0_95 = arith.constant 0 : index
    %1081 = vector.load %arg4[%c27, %c0_94, %c0_95] : memref<32x16x128xf32, #tpu.memory_space<vmem>>, vector<1x16x128xf32>
    %1082 = vector.shape_cast %1081 : vector<1x16x128xf32> to vector<16x128xf32>
    %1083 = vector.shape_cast %1080 : vector<16x128xf32> to vector<1x16x128xf32>
    tpu.vector_store %arg4[%c27, %c0_94, %c0_95], %1083 {strides = array<i32>} : memref<32x16x128xf32, #tpu.memory_space<vmem>>, vector<1x16x128xf32>,
    %1084 = vector.extract_strided_slice %1 {offsets = [28, 0], sizes = [1, 128], strides = [1, 1]} : vector<32x128xf32> to vector<1x128xf32>
    %1085 = vector.shape_cast %1084 : vector<1x128xf32> to vector<1x128xf32>
    %1086 = vector.broadcast %1085 : vector<1x128xf32> to vector<16x128xf32>
    %1087 = vector.extract_strided_slice %3 {offsets = [28, 0], sizes = [1, 128], strides = [1, 1]} : vector<32x128xf32> to vector<1x128xf32>
    %1088 = vector.shape_cast %1087 : vector<1x128xf32> to vector<1x128xf32>
    %1089 = vector.broadcast %1088 : vector<1x128xf32> to vector<16x128xf32>
    %1090 = vector.extract_strided_slice %9 {offsets = [28, 0], sizes = [1, 128], strides = [1, 1]} : vector<32x128xf32> to vector<1x128xf32>
    %1091 = vector.shape_cast %1090 : vector<1x128xf32> to vector<1x128xf32>
    %1092 = vector.broadcast %1091 : vector<1x128xf32> to vector<16x128xf32>
    %1093 = vector.extract_strided_slice %14 {offsets = [28, 0], sizes = [1, 128], strides = [1, 1]} : vector<32x128xf32> to vector<1x128xf32>
    %1094 = vector.shape_cast %1093 : vector<1x128xf32> to vector<1x128xf32>
    %1095 = vector.broadcast %1094 : vector<1x128xf32> to vector<16x128xf32>
    %1096 = vector.broadcast %16 : vector<16x1xf32> to vector<16x128xf32>
    %1097 = arith.mulf %1096, %1092 : vector<16x128xf32>
    %1098 = vector.broadcast %17 : vector<16x1xf32> to vector<16x128xf32>
    %1099 = arith.mulf %1098, %1086 : vector<16x128xf32>
    %1100 = arith.addf %1097, %1099 : vector<16x128xf32>
    %1101 = vector.broadcast %18 : vector<16x1xf32> to vector<16x128xf32>
    %1102 = arith.mulf %1101, %1089 : vector<16x128xf32>
    %1103 = arith.addf %1100, %1102 : vector<16x128xf32>
    %1104 = vector.broadcast %19 : vector<16x1xf32> to vector<16x128xf32>
    %1105 = arith.addf %1103, %1104 : vector<16x128xf32>
    %1106 = vector.broadcast %16 : vector<16x1xf32> to vector<16x128xf32>
    %1107 = arith.mulf %1106, %1086 : vector<16x128xf32>
    %1108 = vector.broadcast %17 : vector<16x1xf32> to vector<16x128xf32>
    %1109 = arith.mulf %1108, %1089 : vector<16x128xf32>
    %1110 = arith.addf %1107, %1109 : vector<16x128xf32>
    %1111 = vector.broadcast %18 : vector<16x1xf32> to vector<16x128xf32>
    %1112 = arith.mulf %1111, %1095 : vector<16x128xf32>
    %1113 = arith.addf %1110, %1112 : vector<16x128xf32>
    %1114 = vector.broadcast %19 : vector<16x1xf32> to vector<16x128xf32>
    %1115 = arith.addf %1113, %1114 : vector<16x128xf32>
    %1116 = arith.maximumf %1105, %1115 : vector<16x128xf32>
    %cst_96 = arith.constant 0.000000e+00 : f32
    %1117 = vector.broadcast %cst_96 : f32 to vector<16x128xf32>
    %1118 = arith.maximumf %1116, %1117 : vector<16x128xf32>
    %c28 = arith.constant 28 : index
    %c0_97 = arith.constant 0 : index
    %c0_98 = arith.constant 0 : index
    %1119 = vector.load %arg4[%c28, %c0_97, %c0_98] : memref<32x16x128xf32, #tpu.memory_space<vmem>>, vector<1x16x128xf32>
    %1120 = vector.shape_cast %1119 : vector<1x16x128xf32> to vector<16x128xf32>
    %1121 = vector.shape_cast %1118 : vector<16x128xf32> to vector<1x16x128xf32>
    tpu.vector_store %arg4[%c28, %c0_97, %c0_98], %1121 {strides = array<i32>} : memref<32x16x128xf32, #tpu.memory_space<vmem>>, vector<1x16x128xf32>,
    %1122 = vector.extract_strided_slice %1 {offsets = [29, 0], sizes = [1, 128], strides = [1, 1]} : vector<32x128xf32> to vector<1x128xf32>
    %1123 = vector.shape_cast %1122 : vector<1x128xf32> to vector<1x128xf32>
    %1124 = vector.broadcast %1123 : vector<1x128xf32> to vector<16x128xf32>
    %1125 = vector.extract_strided_slice %3 {offsets = [29, 0], sizes = [1, 128], strides = [1, 1]} : vector<32x128xf32> to vector<1x128xf32>
    %1126 = vector.shape_cast %1125 : vector<1x128xf32> to vector<1x128xf32>
    %1127 = vector.broadcast %1126 : vector<1x128xf32> to vector<16x128xf32>
    %1128 = vector.extract_strided_slice %9 {offsets = [29, 0], sizes = [1, 128], strides = [1, 1]} : vector<32x128xf32> to vector<1x128xf32>
    %1129 = vector.shape_cast %1128 : vector<1x128xf32> to vector<1x128xf32>
    %1130 = vector.broadcast %1129 : vector<1x128xf32> to vector<16x128xf32>
    %1131 = vector.extract_strided_slice %14 {offsets = [29, 0], sizes = [1, 128], strides = [1, 1]} : vector<32x128xf32> to vector<1x128xf32>
    %1132 = vector.shape_cast %1131 : vector<1x128xf32> to vector<1x128xf32>
    %1133 = vector.broadcast %1132 : vector<1x128xf32> to vector<16x128xf32>
    %1134 = vector.broadcast %16 : vector<16x1xf32> to vector<16x128xf32>
    %1135 = arith.mulf %1134, %1130 : vector<16x128xf32>
    %1136 = vector.broadcast %17 : vector<16x1xf32> to vector<16x128xf32>
    %1137 = arith.mulf %1136, %1124 : vector<16x128xf32>
    %1138 = arith.addf %1135, %1137 : vector<16x128xf32>
    %1139 = vector.broadcast %18 : vector<16x1xf32> to vector<16x128xf32>
    %1140 = arith.mulf %1139, %1127 : vector<16x128xf32>
    %1141 = arith.addf %1138, %1140 : vector<16x128xf32>
    %1142 = vector.broadcast %19 : vector<16x1xf32> to vector<16x128xf32>
    %1143 = arith.addf %1141, %1142 : vector<16x128xf32>
    %1144 = vector.broadcast %16 : vector<16x1xf32> to vector<16x128xf32>
    %1145 = arith.mulf %1144, %1124 : vector<16x128xf32>
    %1146 = vector.broadcast %17 : vector<16x1xf32> to vector<16x128xf32>
    %1147 = arith.mulf %1146, %1127 : vector<16x128xf32>
    %1148 = arith.addf %1145, %1147 : vector<16x128xf32>
    %1149 = vector.broadcast %18 : vector<16x1xf32> to vector<16x128xf32>
    %1150 = arith.mulf %1149, %1133 : vector<16x128xf32>
    %1151 = arith.addf %1148, %1150 : vector<16x128xf32>
    %1152 = vector.broadcast %19 : vector<16x1xf32> to vector<16x128xf32>
    %1153 = arith.addf %1151, %1152 : vector<16x128xf32>
    %1154 = arith.maximumf %1143, %1153 : vector<16x128xf32>
    %cst_99 = arith.constant 0.000000e+00 : f32
    %1155 = vector.broadcast %cst_99 : f32 to vector<16x128xf32>
    %1156 = arith.maximumf %1154, %1155 : vector<16x128xf32>
    %c29 = arith.constant 29 : index
    %c0_100 = arith.constant 0 : index
    %c0_101 = arith.constant 0 : index
    %1157 = vector.load %arg4[%c29, %c0_100, %c0_101] : memref<32x16x128xf32, #tpu.memory_space<vmem>>, vector<1x16x128xf32>
    %1158 = vector.shape_cast %1157 : vector<1x16x128xf32> to vector<16x128xf32>
    %1159 = vector.shape_cast %1156 : vector<16x128xf32> to vector<1x16x128xf32>
    tpu.vector_store %arg4[%c29, %c0_100, %c0_101], %1159 {strides = array<i32>} : memref<32x16x128xf32, #tpu.memory_space<vmem>>, vector<1x16x128xf32>,
    %1160 = vector.extract_strided_slice %1 {offsets = [30, 0], sizes = [1, 128], strides = [1, 1]} : vector<32x128xf32> to vector<1x128xf32>
    %1161 = vector.shape_cast %1160 : vector<1x128xf32> to vector<1x128xf32>
    %1162 = vector.broadcast %1161 : vector<1x128xf32> to vector<16x128xf32>
    %1163 = vector.extract_strided_slice %3 {offsets = [30, 0], sizes = [1, 128], strides = [1, 1]} : vector<32x128xf32> to vector<1x128xf32>
    %1164 = vector.shape_cast %1163 : vector<1x128xf32> to vector<1x128xf32>
    %1165 = vector.broadcast %1164 : vector<1x128xf32> to vector<16x128xf32>
    %1166 = vector.extract_strided_slice %9 {offsets = [30, 0], sizes = [1, 128], strides = [1, 1]} : vector<32x128xf32> to vector<1x128xf32>
    %1167 = vector.shape_cast %1166 : vector<1x128xf32> to vector<1x128xf32>
    %1168 = vector.broadcast %1167 : vector<1x128xf32> to vector<16x128xf32>
    %1169 = vector.extract_strided_slice %14 {offsets = [30, 0], sizes = [1, 128], strides = [1, 1]} : vector<32x128xf32> to vector<1x128xf32>
    %1170 = vector.shape_cast %1169 : vector<1x128xf32> to vector<1x128xf32>
    %1171 = vector.broadcast %1170 : vector<1x128xf32> to vector<16x128xf32>
    %1172 = vector.broadcast %16 : vector<16x1xf32> to vector<16x128xf32>
    %1173 = arith.mulf %1172, %1168 : vector<16x128xf32>
    %1174 = vector.broadcast %17 : vector<16x1xf32> to vector<16x128xf32>
    %1175 = arith.mulf %1174, %1162 : vector<16x128xf32>
    %1176 = arith.addf %1173, %1175 : vector<16x128xf32>
    %1177 = vector.broadcast %18 : vector<16x1xf32> to vector<16x128xf32>
    %1178 = arith.mulf %1177, %1165 : vector<16x128xf32>
    %1179 = arith.addf %1176, %1178 : vector<16x128xf32>
    %1180 = vector.broadcast %19 : vector<16x1xf32> to vector<16x128xf32>
    %1181 = arith.addf %1179, %1180 : vector<16x128xf32>
    %1182 = vector.broadcast %16 : vector<16x1xf32> to vector<16x128xf32>
    %1183 = arith.mulf %1182, %1162 : vector<16x128xf32>
    %1184 = vector.broadcast %17 : vector<16x1xf32> to vector<16x128xf32>
    %1185 = arith.mulf %1184, %1165 : vector<16x128xf32>
    %1186 = arith.addf %1183, %1185 : vector<16x128xf32>
    %1187 = vector.broadcast %18 : vector<16x1xf32> to vector<16x128xf32>
    %1188 = arith.mulf %1187, %1171 : vector<16x128xf32>
    %1189 = arith.addf %1186, %1188 : vector<16x128xf32>
    %1190 = vector.broadcast %19 : vector<16x1xf32> to vector<16x128xf32>
    %1191 = arith.addf %1189, %1190 : vector<16x128xf32>
    %1192 = arith.maximumf %1181, %1191 : vector<16x128xf32>
    %cst_102 = arith.constant 0.000000e+00 : f32
    %1193 = vector.broadcast %cst_102 : f32 to vector<16x128xf32>
    %1194 = arith.maximumf %1192, %1193 : vector<16x128xf32>
    %c30 = arith.constant 30 : index
    %c0_103 = arith.constant 0 : index
    %c0_104 = arith.constant 0 : index
    %1195 = vector.load %arg4[%c30, %c0_103, %c0_104] : memref<32x16x128xf32, #tpu.memory_space<vmem>>, vector<1x16x128xf32>
    %1196 = vector.shape_cast %1195 : vector<1x16x128xf32> to vector<16x128xf32>
    %1197 = vector.shape_cast %1194 : vector<16x128xf32> to vector<1x16x128xf32>
    tpu.vector_store %arg4[%c30, %c0_103, %c0_104], %1197 {strides = array<i32>} : memref<32x16x128xf32, #tpu.memory_space<vmem>>, vector<1x16x128xf32>,
    %1198 = vector.extract_strided_slice %1 {offsets = [31, 0], sizes = [1, 128], strides = [1, 1]} : vector<32x128xf32> to vector<1x128xf32>
    %1199 = vector.shape_cast %1198 : vector<1x128xf32> to vector<1x128xf32>
    %1200 = vector.broadcast %1199 : vector<1x128xf32> to vector<16x128xf32>
    %1201 = vector.extract_strided_slice %3 {offsets = [31, 0], sizes = [1, 128], strides = [1, 1]} : vector<32x128xf32> to vector<1x128xf32>
    %1202 = vector.shape_cast %1201 : vector<1x128xf32> to vector<1x128xf32>
    %1203 = vector.broadcast %1202 : vector<1x128xf32> to vector<16x128xf32>
    %1204 = vector.extract_strided_slice %9 {offsets = [31, 0], sizes = [1, 128], strides = [1, 1]} : vector<32x128xf32> to vector<1x128xf32>
    %1205 = vector.shape_cast %1204 : vector<1x128xf32> to vector<1x128xf32>
    %1206 = vector.broadcast %1205 : vector<1x128xf32> to vector<16x128xf32>
    %1207 = vector.extract_strided_slice %14 {offsets = [31, 0], sizes = [1, 128], strides = [1, 1]} : vector<32x128xf32> to vector<1x128xf32>
    %1208 = vector.shape_cast %1207 : vector<1x128xf32> to vector<1x128xf32>
    %1209 = vector.broadcast %1208 : vector<1x128xf32> to vector<16x128xf32>
    %1210 = vector.broadcast %16 : vector<16x1xf32> to vector<16x128xf32>
    %1211 = arith.mulf %1210, %1206 : vector<16x128xf32>
    %1212 = vector.broadcast %17 : vector<16x1xf32> to vector<16x128xf32>
    %1213 = arith.mulf %1212, %1200 : vector<16x128xf32>
    %1214 = arith.addf %1211, %1213 : vector<16x128xf32>
    %1215 = vector.broadcast %18 : vector<16x1xf32> to vector<16x128xf32>
    %1216 = arith.mulf %1215, %1203 : vector<16x128xf32>
    %1217 = arith.addf %1214, %1216 : vector<16x128xf32>
    %1218 = vector.broadcast %19 : vector<16x1xf32> to vector<16x128xf32>
    %1219 = arith.addf %1217, %1218 : vector<16x128xf32>
    %1220 = vector.broadcast %16 : vector<16x1xf32> to vector<16x128xf32>
    %1221 = arith.mulf %1220, %1200 : vector<16x128xf32>
    %1222 = vector.broadcast %17 : vector<16x1xf32> to vector<16x128xf32>
    %1223 = arith.mulf %1222, %1203 : vector<16x128xf32>
    %1224 = arith.addf %1221, %1223 : vector<16x128xf32>
    %1225 = vector.broadcast %18 : vector<16x1xf32> to vector<16x128xf32>
    %1226 = arith.mulf %1225, %1209 : vector<16x128xf32>
    %1227 = arith.addf %1224, %1226 : vector<16x128xf32>
    %1228 = vector.broadcast %19 : vector<16x1xf32> to vector<16x128xf32>
    %1229 = arith.addf %1227, %1228 : vector<16x128xf32>
    %1230 = arith.maximumf %1219, %1229 : vector<16x128xf32>
    %cst_105 = arith.constant 0.000000e+00 : f32
    %1231 = vector.broadcast %cst_105 : f32 to vector<16x128xf32>
    %1232 = arith.maximumf %1230, %1231 : vector<16x128xf32>
    %c31 = arith.constant 31 : index
    %c0_106 = arith.constant 0 : index
    %c0_107 = arith.constant 0 : index
    %1233 = vector.load %arg4[%c31, %c0_106, %c0_107] : memref<32x16x128xf32, #tpu.memory_space<vmem>>, vector<1x16x128xf32>
    %1234 = vector.shape_cast %1233 : vector<1x16x128xf32> to vector<16x128xf32>
    %1235 = vector.shape_cast %1232 : vector<16x128xf32> to vector<1x16x128xf32>
    tpu.vector_store %arg4[%c31, %c0_106, %c0_107], %1235 {strides = array<i32>} : memref<32x16x128xf32, #tpu.memory_space<vmem>>, vector<1x16x128xf32>,
    return
  }
  func.func @transform_0(%arg0: i32) -> (i32, i32, i32) {
    %c0_i32 = arith.constant 0 : i32
    %c0_i32_0 = arith.constant 0 : i32
    %c0_i32_1 = arith.constant 0 : i32
    return %c0_i32, %arg0, %c0_i32_0 : i32, i32, i32
  }
  func.func @transform_1(%arg0: i32) -> (i32, i32) {
    %c0_i32 = arith.constant 0 : i32
    %c0_i32_0 = arith.constant 0 : i32
    %c0_i32_1 = arith.constant 0 : i32
    return %c0_i32, %c0_i32_0 : i32, i32
  }
  func.func @transform_2(%arg0: i32) -> (i32, i32) {
    %c0_i32 = arith.constant 0 : i32
    %c0_i32_0 = arith.constant 0 : i32
    %c0_i32_1 = arith.constant 0 : i32
    return %c0_i32, %c0_i32_0 : i32, i32
  }
  func.func @transform_3(%arg0: i32) -> (i32, i32, i32) {
    %c0_i32 = arith.constant 0 : i32
    %c0_i32_0 = arith.constant 0 : i32
    %c0_i32_1 = arith.constant 0 : i32
    return %arg0, %c0_i32, %c0_i32_0 : i32, i32, i32
  }
}

</mosaic_0001>

<bundles_post_ra>
// kernel: tpu_custom_call.1
= control target key start
LH: loop header
LB: loop body
LE: loop exit
PB: predicated region body
PF: predicated region fallthrough
CT: control target
= control target key end

     0   :  { %8 = vsyncpa [#allocation3], 0  ;;  %s3497_s0 = inlined_call_operand.hbm [shape: f32[2,32,128], index: 0, kind: input, shape index: {}]   ;;  %s3498_s1 = inlined_call_operand.vmem [shape: f32[16,3], index: 1, kind: input, shape index: {}]   ;;  %s3499_s2 = inlined_call_operand.vmem [shape: f32[16,1], index: 2, kind: input, shape index: {}]   ;;  %s3500_s3 = inlined_call_operand.hbm [shape: f32[32,16,128], index: 3, kind: output, shape index: {}]  }
   0x1   :  { %9 = vsyncpa [#allocation4], 0  ;;  %s1689_s12 = smov [#allocation2]   ;;  %s1641_s16 = scalar_lea.hbm %s3497_s0, 1024 }
   0x2   :  { %s15_s13 = sshll.u32 %s1689_s12, 4  ;;  %p1642_p0 = scmp.ne.s32.totalorder %s3497_s0, %s1641_s16  ;;  %s16_s13 = int_to_ptr.vmem [resolvable:$true] %s15_s13 }
   0x3   :  { %p1645_p1 = scmp.lt.u32.totalorder %s1641_s16, %s3497_s0 }
   0x5   :  { %p1647_p2 = pnand %p1645_p1, %p1642_p0 }
   0x7   :  { %1650 = shalt.err (!%p1647_p2)
}
   0x8   :  { %s1651_s21 = scalar_lea.vmem %s16_s13, 1024  ;;  %p1656_p4 = scmp.lt.s32.totalorder %s16_s13, %s16_s13 }
   0x9   :  { %p1652_p3 = scmp.ne.s32.totalorder %s16_s13, %s1651_s21  ;;  %p1657_p5 = scmp.lt.s32.totalorder %s1651_s21, %s1651_s21 }
   0xb   :  { %p1658_p6 = por %p1657_p5, %p1656_p4 }
   0xd   :  { %p1659_p7 = pnand %p1658_p6, %p1652_p3 }
   0xf   :  { %1662 = shalt.err (!%p1659_p7)
}
  0x10   :  { %s1690_s22 = smov 128   ;;  %s1691_s23 = smov 8  }
  0x11   :  { %21 = dma.hbm_to_vmem [thread:$0]  %s3497_s0, 1024, %s16_s13, [#allocation3], %s1690_s22, %s1690_s22, %s1691_s23  }
  0x12   :  { %1685 = dma.done.wait [#allocation3], 1024  }
  0x13   :  { %1686 = vsyncadd [#allocation3], 4294966272  ;;  %v1692_v0 = vmov 1   ;;  %v1693_v1 = vmov 0   ;;  %v66_v2 = vld [vmem:[%s3498_s1] sm:$0xff]  ;;  %v67_v3 = vld [vmem:[%s3498_s1 + $0x8] sm:$0xff]  ;;  %v38_v15 = vlaneseq }
  0x14   :  { %1636 = vset.pattern.permute.xlu1 %v1692_v0  ;;  %1635 = vset.pattern.permute.xlu0 %v1693_v1  ;;  %v1694_v4 = vmov 2   ;;  %v34_v5 = vld [vmem:[#allocation2 + $0x20] sm:$0xff]  ;;  %v1739_v6 = vld [vmem:[#allocation2 + $0x28] sm:$0xff]  ;;  %s1695_s0 = smov 1   ;;  %v1742_v7 = vld [vmem:[#allocation2 + $0x30] sm:$0xff]  ;;  %s1696_s1 = smov 127  }
  0x15   :  { %99 = vperm.xlu1 %1636, %v66_v2   ;;  %88 = vperm.xlu0 %1635, %v66_v2   ;;  %v1744_v8 = vld [vmem:[#allocation2 + $0x38] sm:$0xff]  ;;  %v29_v9 = vld [vmem:[#allocation2] sm:$0xff]  ;;  %v30_v10 = vld [vmem:[#allocation2 + $0x8] sm:$0xff]  ;;  %v71_v16 = vshrl.u32 %v38_v15, 7  ;;  %v1815_v38 = vand.u32 127, %v38_v15 }
  0x16   :  { %v1748_v11 = vld [vmem:[#allocation2 + $0x10] sm:$0xff]  ;;  %v1750_v12 = vld [vmem:[#allocation2 + $0x18] sm:$0xff]  ;;  %v68_v13 = vld [vmem:[%s3499_s2] sm:$0xff] }
  0x17   :  { %v69_v14 = vld [vmem:[%s3499_s2 + $0x8] sm:$0xff]  ;;  %v1760_v17 = vsub.s32 0, %v71_v16  ;;  %v1762_v18 = vsub.s32 1, %v71_v16  ;;  %v1764_v19 = vsub.s32 2, %v71_v16  ;;  %v1766_v20 = vsub.s32 3, %v71_v16  ;;  %s1697_s2 = smov [#allocation5]  }
  0x18   :  { %v1768_v21 = vsub.s32 4, %v71_v16  ;;  %v1770_v22 = vsub.s32 5, %v71_v16  ;;  %v1772_v23 = vsub.s32 6, %v71_v16  ;;  %v1774_v24 = vsub.s32 7, %v71_v16  ;;  %s1614_s7 = sshll.u32 %s1697_s2, 4  ;;  %s1615_s7 = int_to_ptr.vmem [resolvable:$true] %s1614_s7 }
  0x19   :  { %103 = vperm.xlu1 %1636, %v67_v3   ;;  %1637 = vset.pattern.permute.xlu0 %v1694_v4  ;;  %3632 = vst [vmem:[#allocation8_spill] sm:$0xff] %v1762_v18  ;;  %3633 = vst [vmem:[#allocation9_spill] sm:$0xff] %v1764_v19  ;;  %v1777_v25 = vrot.slane %v34_v5, %v1760_v17  ;;  %v1780_v26 = vrot.slane %v34_v5, %v1762_v18  ;;  %vm40_vm0 = vcmp.eq.s32.totalorder %v1815_v38, 0  ;;  %s1663_s8 = scalar_lea.vmem %s1615_s7, 8192  ;;  %p1668_p9 = scmp.lt.s32.totalorder %s1615_s7, %s1615_s7 }
  0x1a   :  { %111 = vperm.xlu0 %1637, %v66_v2   ;;  %3634 = vst [vmem:[#allocation10_spill] sm:$0xff] %v1766_v20  ;;  %3635 = vst [vmem:[#allocation11_spill] sm:$0xff] %v1768_v21  ;;  %v1783_v27 = vrot.slane %v34_v5, %v1764_v19  ;;  %v1786_v28 = vrot.slane %v34_v5, %v1766_v20  ;;  %v1789_v29 = vrot.slane %v34_v5, %v1768_v21  ;;  %p1664_p8 = scmp.ne.s32.totalorder %s1615_s7, %s1663_s8  ;;  %p1669_p10 = scmp.lt.s32.totalorder %s1663_s8, %s1663_s8 }
  0x1b   :  { %3636 = vst [vmem:[#allocation12_spill] sm:$0xff] %v1770_v22  ;;  %3637 = vst [vmem:[#allocation13_spill] sm:$0xff] %v1772_v23  ;;  %v1792_v30 = vrot.slane %v29_v9, %v1760_v17  ;;  %v1795_v31 = vrot.slane %v29_v9, %v1762_v18  ;;  %v1798_v32 = vrot.slane %v29_v9, %v1764_v19  ;;  %vm53_vm1 = vcmp.eq.s32.totalorder %v1815_v38, 127 }
  0x1c   :  { %3638 = vst [vmem:[#allocation14_spill] sm:$0xff] %v1774_v24  ;;  %3639 = vst [vmem:[#allocation15_spill] sm:$0xff] %v1777_v25  ;;  %v1801_v33 = vrot.slane %v29_v9, %v1766_v20  ;;  %v1804_v34 = vrot.slane %v29_v9, %v1768_v21  ;;  %v1807_v35 = vrot.slane %v29_v9, %v1770_v22  ;;  %p1670_p11 = por %p1669_p10, %p1668_p9 }
  0x1d   :  { %1639 = vset.pattern.permute.xlu1 %v1694_v4  ;;  %3640 = vst [vmem:[#allocation16_spill] sm:$0xff] %v1780_v26  ;;  %3641 = vst [vmem:[#allocation17_spill] sm:$0xff] %v1783_v27  ;;  %v1810_v36 = vrot.slane %v34_v5, %v1770_v22  ;;  %v1813_v37 = vrot.slane %v29_v9, %v1772_v23  ;;  %v1818_v39 = vrot.slane %v34_v5, %v1772_v23 }
  0x1e   :  { %115 = vperm.xlu1 %1639, %v67_v3   ;;  %1638 = vset.pattern.permute.xlu0 %v1693_v1  ;;  %3642 = vst [vmem:[#allocation18_spill] sm:$0xff] %v1786_v28  ;;  %3643 = vst [vmem:[#allocation19_spill] sm:$0xff] %v1789_v29  ;;  %v1821_v40 = vrot.slane %v29_v9, %v1774_v24  ;;  %v1824_v41 = vrot.slane %v34_v5, %v1774_v24  ;;  %p1671_p12 = pnand %p1670_p11, %p1664_p8 }
  0x1f   :  { %93 = vperm.xlu0 %1638, %v67_v3   ;;  %3644 = vst [vmem:[#allocation20_spill] sm:$0xff] %v1792_v30  ;;  %3645 = vst [vmem:[#allocation21_spill] sm:$0xff] %v1795_v31  ;;  %v1827_v42 = vrot.slane %v30_v10, %v1760_v17  ;;  %v1831_v43 = vrot.slane %v1739_v6, %v1760_v17  ;;  %v1834_v44 = vrot.slane %v30_v10, %v1762_v18 }
  0x20   :  { %3646 = vst [vmem:[#allocation22_spill] sm:$0xff] %v1798_v32  ;;  %3647 = vst [vmem:[#allocation23_spill] sm:$0xff] %v1801_v33  ;;  %v1838_v45 = vrot.slane %v1739_v6, %v1762_v18  ;;  %v1841_v46 = vrot.slane %v30_v10, %v1764_v19  ;;  %v1845_v47 = vrot.slane %v1739_v6, %v1764_v19 }
  0x21   :  { %3648 = vst [vmem:[#allocation24_spill] sm:$0xff] %v1804_v34  ;;  %3649 = vst [vmem:[#allocation25_spill] sm:$0xff] %v1807_v35  ;;  %v1848_v48 = vrot.slane %v30_v10, %v1766_v20  ;;  %v1852_v49 = vrot.slane %v1739_v6, %v1766_v20  ;;  %v1855_v50 = vrot.slane %v30_v10, %v1768_v21 }
  0x22   :  { %41 = vrot.lane.b32.xlu1 %v34_v5, %s1695_s0  ;;  %3650 = vst [vmem:[#allocation26_spill] sm:$0xff] %v1810_v36  ;;  %3651 = vst [vmem:[#allocation27_spill] sm:$0xff] %v1813_v37  ;;  %v1859_v51 = vrot.slane %v1739_v6, %v1768_v21  ;;  %v1862_v52 = vrot.slane %v30_v10, %v1770_v22  ;;  %v1866_v53 = vrot.slane %v1739_v6, %v1770_v22 }
  0x23   :  { %43 = vrot.lane.b32.xlu0 %v1739_v6, %s1695_s0  ;;  %1640 = vset.pattern.permute.xlu1 %v1693_v1  ;;  %3652 = vst [vmem:[#allocation28_spill] sm:$0xff] %v1818_v39  ;;  %3653 = vst [vmem:[#allocation29_spill] sm:$0xff] %v1821_v40  ;;  %v1869_v54 = vrot.slane %v30_v10, %v1772_v23  ;;  %v1873_v55 = vrot.slane %v1739_v6, %v1772_v23 }
  0x24   :  { %3654 = vst [vmem:[#allocation30_spill] sm:$0xff] %v1824_v41  ;;  %3655 = vst [vmem:[#allocation31_spill] sm:$0xff] %v1827_v42  ;;  %v1876_v56 = vrot.slane %v30_v10, %v1774_v24  ;;  %v1880_v57 = vrot.slane %v1739_v6, %v1774_v24  ;;  %v1884_v58 = vrot.slane %v1742_v7, %v1760_v17 }
  0x25   :  { %3656 = vst [vmem:[#allocation32_spill] sm:$0xff] %v1831_v43  ;;  %3657 = vst [vmem:[#allocation33_spill] sm:$0xff] %v1834_v44  ;;  %v1888_v59 = vrot.slane %v1742_v7, %v1762_v18  ;;  %v1892_v60 = vrot.slane %v1742_v7, %v1764_v19  ;;  %v1896_v61 = vrot.slane %v1742_v7, %v1766_v20 }
  0x26   :  { %45 = vrot.lane.b32.xlu1 %v1742_v7, %s1695_s0  ;;  %3658 = vst [vmem:[#allocation34_spill] sm:$0xff] %v1838_v45  ;;  %3659 = vst [vmem:[#allocation35_spill] sm:$0xff] %v1841_v46  ;;  %v1900_v62 = vrot.slane %v1742_v7, %v1768_v21  ;;  %v1904_v63 = vrot.slane %v1742_v7, %v1770_v22  ;;  %v1908_v0 = vrot.slane %v1742_v7, %v1772_v23 }
  0x27   :  { %47 = vrot.lane.b32.xlu0 %v1744_v8, %s1695_s0  ;;  %3660 = vst [vmem:[#allocation36_spill] sm:$0xff] %v1845_v47  ;;  %3661 = vst [vmem:[#allocation37_spill] sm:$0xff] %v1848_v48  ;;  %v1912_v1 = vrot.slane %v1742_v7, %v1774_v24  ;;  %v1916_v2 = vrot.slane %v1748_v11, %v1760_v17  ;;  %v1920_v3 = vrot.slane %v1748_v11, %v1762_v18 }
  0x28   :  { %3662 = vst [vmem:[#allocation38_spill] sm:$0xff] %v1852_v49  ;;  %3663 = vst [vmem:[#allocation39_spill] sm:$0xff] %v1855_v50  ;;  %v1924_v4 = vrot.slane %v1748_v11, %v1764_v19  ;;  %v1928_v5 = vrot.slane %v1748_v11, %v1766_v20  ;;  %v1932_v6 = vrot.slane %v1748_v11, %v1768_v21 }
  0x29   :  { %3664 = vst [vmem:[#allocation40_spill] sm:$0xff] %v1859_v51  ;;  %3665 = vst [vmem:[#allocation41_spill] sm:$0xff] %v1869_v54  ;;  %v1936_v7 = vrot.slane %v1748_v11, %v1770_v22  ;;  %v1956_v15 = vrot.slane %v1744_v8, %v1764_v19  ;;  %v1960_v16 = vrot.slane %v1744_v8, %v1766_v20 }
  0x2a   :  { %54 = vrot.lane.b32.xlu1 %v29_v9, %s1696_s1  ;;  %3666 = vst [vmem:[#allocation42_spill] sm:$0xff] %v1873_v55  ;;  %3667 = vst [vmem:[#allocation43_spill] sm:$0xff] %v1876_v56  ;;  %v1940_v9 = vrot.slane %v1748_v11, %v1772_v23 }
  0x2b   :  { %56 = vrot.lane.b32.xlu0 %v30_v10, %s1696_s1  ;;  %3668 = vst [vmem:[#allocation44_spill] sm:$0xff] %v1880_v57  ;;  %3669 = vst [vmem:[#allocation45_spill] sm:$0xff] %v1884_v58  ;;  %v1944_v10 = vrot.slane %v1748_v11, %v1774_v24 }
  0x2c   :  { %3670 = vst [vmem:[#allocation46_spill] sm:$0xff] %v1888_v59  ;;  %3671 = vst [vmem:[#allocation47_spill] sm:$0xff] %v1892_v60 }
  0x2d   :  { %3672 = vst [vmem:[#allocation48_spill] sm:$0xff] %v1896_v61  ;;  %3673 = vst [vmem:[#allocation49_spill] sm:$0xff] %v1900_v62 }
  0x2e   :  { %58 = vrot.lane.b32.xlu1 %v1748_v11, %s1696_s1  ;;  %3674 = vst [vmem:[#allocation50_spill] sm:$0xff] %v1904_v63  ;;  %3675 = vst [vmem:[#allocation51_spill] sm:$0xff] %v1908_v0  ;;  %v1964_v11 = vrot.slane %v1744_v8, %v1768_v21 }
  0x2f   :  { %60 = vrot.lane.b32.xlu0 %v1750_v12, %s1696_s1  ;;  %3676 = vst [vmem:[#allocation52_spill] sm:$0xff] %v1912_v1  ;;  %3677 = vst [vmem:[#allocation53_spill] sm:$0xff] %v1916_v2 }
  0x30   :  { %3678 = vst [vmem:[#allocation54_spill] sm:$0xff] %v1920_v3  ;;  %3679 = vst [vmem:[#allocation55_spill] sm:$0xff] %v1924_v4 }
  0x31   :  { %3680 = vst [vmem:[#allocation56_spill] sm:$0xff] %v1928_v5  ;;  %3681 = vst [vmem:[#allocation57_spill] sm:$0xff] %v1932_v6 }
  0x32   :  { %124 = vperm.xlu1 %1640, %v68_v13   ;;  %3682 = vst [vmem:[#allocation58_spill] sm:$0xff] %v1936_v7  ;;  %3683 = vst [vmem:[#allocation59_spill] sm:$0xff] %v1940_v9  ;;  %v1948_v13 = vrot.slane %v1744_v8, %v1760_v17 }
  0x33   :  { %129 = vperm.xlu0 %1638, %v69_v14   ;;  %3684 = vst [vmem:[#allocation60_spill] sm:$0xff] %v1944_v10  ;;  %v1952_v14 = vrot.slane %v1744_v8, %v1762_v18  ;;  %3687 = vst [vmem:[#allocation63_spill] sm:$0xff] %v1956_v15  ;;  %v1968_v10 = vrot.slane %v1744_v8, %v1770_v22  ;;  %v1980_v15 = vrot.slane %v1750_v12, %v1760_v17 }
  0x34   :  { %3685 = vst [vmem:[#allocation61_spill] sm:$0xff] %v1948_v13  ;;  %3688 = vst [vmem:[#allocation64_spill] sm:$0xff] %v1960_v16  ;;  %v1972_v13 = vrot.slane %v1744_v8, %v1772_v23  ;;  %v1984_v16 = vrot.slane %v1750_v12, %v1762_v18 }
  0x35   :  { %3686 = vst [vmem:[#allocation62_spill] sm:$0xff] %v1952_v14  ;;  %3689 = vst [vmem:[#allocation65_spill] sm:$0xff] %v1964_v11  ;;  %v1976_v14 = vrot.slane %v1744_v8, %v1774_v24  ;;  %v1988_v11 = vrot.slane %v1750_v12, %v1764_v19 }
  0x36   :  { %3690 = vst [vmem:[#allocation66_spill] sm:$0xff] %v1968_v10  ;;  %3691 = vst [vmem:[#allocation67_spill] sm:$0xff] %v1972_v13  ;;  %v1992_v10 = vrot.slane %v1750_v12, %v1766_v20 }
  0x37   :  { %3692 = vst [vmem:[#allocation68_spill] sm:$0xff] %v1976_v14  ;;  %3693 = vst [vmem:[#allocation69_spill] sm:$0xff] %v1980_v15  ;;  %v2000_v14 = vrot.slane %v1750_v12, %v1768_v21  ;;  %v2004_v15 = vrot.slane %v1750_v12, %v1770_v22 }
  0x38   :  { %3694 = vst [vmem:[#allocation70_spill] sm:$0xff] %v1984_v16  ;;  %3695 = vst [vmem:[#allocation71_spill] sm:$0xff] %v1988_v11  ;;  %v2008_v16 = vrot.slane %v1750_v12, %v1772_v23  ;;  %v2012_v11 = vrot.slane %v1750_v12, %v1774_v24 }
  0x39   :  { %3696 = vst [vmem:[#allocation72_spill] sm:$0xff] %v1992_v10  ;;  %3698 = vst [vmem:[#allocation74_spill] sm:$0xff] %v2000_v14 }
  0x3a   :  { %3699 = vst [vmem:[#allocation75_spill] sm:$0xff] %v2004_v15  ;;  %3700 = vst [vmem:[#allocation76_spill] sm:$0xff] %v2008_v16 }
  0x3b   :  { %3701 = vst [vmem:[#allocation77_spill] sm:$0xff] %v2012_v11 }
  0x94   :  { %v1994_v13 = vpop.permute.xlu1 %99  ;;  %v1996_v8 = vpop.permute.xlu0 %88 }
  0x95   :  { %3697 = vst [vmem:[#allocation73_spill] sm:$0xff] %v1994_v13  ;;  %v2016_v10 = vmul.f32 %v1994_v13, %v1792_v30  ;;  %v2020_v9 = vmul.f32 %v1795_v31, %v1994_v13  ;;  %v2024_v14 = vmul.f32 %v1798_v32, %v1994_v13  ;;  %v2028_v15 = vmul.f32 %v1801_v33, %v1994_v13 }
  0x96   :  { %v2032_v12 = vmul.f32 %v1804_v34, %v1994_v13  ;;  %v2036_v11 = vmul.f32 %v1807_v35, %v1994_v13  ;;  %v2040_v16 = vmul.f32 %v1813_v37, %v1994_v13  ;;  %v2044_v7 = vmul.f32 %v1821_v40, %v1994_v13 }
  0x97   :  { %v2049_v6 = vmul.f32 %v1827_v42, %v1994_v13  ;;  %v2053_v5 = vmul.f32 %v1834_v44, %v1994_v13  ;;  %v2057_v4 = vmul.f32 %v1841_v46, %v1994_v13  ;;  %v2061_v3 = vmul.f32 %v1848_v48, %v1994_v13 }
  0x98   :  { %v2063_v2 = vpop.permute.xlu1 %103  ;;  %v2067_v1 = vmul.f32 %v1855_v50, %v1994_v13  ;;  %v2071_v0 = vmul.f32 %v1862_v52, %v1994_v13  ;;  %v2075_v63 = vmul.f32 %v1869_v54, %v1994_v13  ;;  %v2079_v62 = vmul.f32 %v1876_v56, %v1994_v13 }
  0x99   :  { %3702 = vst [vmem:[#allocation78_spill] sm:$0xff] %v2049_v6  ;;  %3703 = vst [vmem:[#allocation79_spill] sm:$0xff] %v2053_v5  ;;  %v2081_v61 = vpop.permute.xlu0 %111  ;;  %v107_v60 = vmul.f32 %v2063_v2, %v1792_v30  ;;  %v171_v59 = vmul.f32 %v1795_v31, %v2063_v2  ;;  %v218_v58 = vmul.f32 %v1798_v32, %v2063_v2 }
  0x9a   :  { %3704 = vst [vmem:[#allocation80_spill] sm:$0xff] %v2057_v4  ;;  %3705 = vst [vmem:[#allocation81_spill] sm:$0xff] %v2061_v3  ;;  %v2091_v57 = vmul.f32 %v1801_v33, %v2063_v2  ;;  %v2099_v13 = vmul.f32 %v1780_v26, %v2081_v61  ;;  %v2103_v30 = vmul.f32 %v1783_v27, %v2081_v61 }
  0x9b   :  { %3706 = vst [vmem:[#allocation82_spill] sm:$0xff] %v2067_v1  ;;  %3707 = vst [vmem:[#allocation83_spill] sm:$0xff] %v2071_v0  ;;  %v2107_v31 = vmul.f32 %v1786_v28, %v2081_v61  ;;  %v2111_v33 = vmul.f32 %v1804_v34, %v2063_v2  ;;  %v2115_v32 = vmul.f32 %v1789_v29, %v2081_v61 }
  0x9c   :  { %3708 = vst [vmem:[#allocation84_spill] sm:$0xff] %v2075_v63  ;;  %3709 = vst [vmem:[#allocation85_spill] sm:$0xff] %v2079_v62  ;;  %v2095_v63 = vmul.f32 %v2081_v61, %v1777_v25  ;;  %v2119_v62 = vmul.f32 %v1807_v35, %v2063_v2  ;;  %v2123_v56 = vmul.f32 %v1810_v36, %v2081_v61 }
  0x9d   :  { %v2127_v0 = vmul.f32 %v1813_v37, %v2063_v2  ;;  %v2131_v34 = vmul.f32 %v1818_v39, %v2081_v61  ;;  %v2135_v1 = vmul.f32 %v1821_v40, %v2063_v2  ;;  %v2139_v35 = vmul.f32 %v1824_v41, %v2081_v61  ;;  %v2141_v55 = vpop.permute.xlu1 %115 }
  0x9e   :  { %v2145_v3 = vmul.f32 %v1827_v42, %v2063_v2  ;;  %v2149_v37 = vmul.f32 %v1831_v43, %v2081_v61  ;;  %v2153_v4 = vmul.f32 %v1834_v44, %v2063_v2  ;;  %v2157_v40 = vmul.f32 %v1838_v45, %v2081_v61 }
  0x9f   :  { %v119_v5 = vmul.f32 %v2141_v55, %v1777_v25  ;;  %v175_v6 = vmul.f32 %v1780_v26, %v2141_v55  ;;  %v222_v42 = vmul.f32 %v1783_v27, %v2141_v55  ;;  %v2169_v44 = vmul.f32 %v1789_v29, %v2141_v55 }
  0xa0   :  { %3710 = vst [vmem:[#allocation86_spill] sm:$0xff] %v2145_v3  ;;  %3711 = vst [vmem:[#allocation87_spill] sm:$0xff] %v2149_v37  ;;  %v269_v37 = vmul.f32 %v1786_v28, %v2141_v55  ;;  %v2177_v25 = vmul.f32 %v1818_v39, %v2141_v55  ;;  %v2181_v26 = vmul.f32 %v1824_v41, %v2141_v55 }
  0xa1   :  { %3712 = vst [vmem:[#allocation88_spill] sm:$0xff] %v2153_v4  ;;  %3713 = vst [vmem:[#allocation89_spill] sm:$0xff] %v2157_v40  ;;  %v2173_v4 = vmul.f32 %v1810_v36, %v2141_v55  ;;  %v2185_v27 = vmul.f32 %v1831_v43, %v2141_v55  ;;  %v2189_v29 = vmul.f32 %v1838_v45, %v2141_v55  ;;  %v42_v28 = vpop.permute.xlu1 %41 }
  0xa2   :  { %v2193_v36 = vmul.f32 %v1841_v46, %v2063_v2  ;;  %v2197_v39 = vmul.f32 %v1845_v47, %v2081_v61  ;;  %v2201_v41 = vmul.f32 %v1845_v47, %v2141_v55  ;;  %v2205_v43 = vmul.f32 %v1848_v48, %v2063_v2 }
  0xa3   :  { %3714 = vst [vmem:[#allocation90_spill] sm:$0xff] %v2185_v27  ;;  %3715 = vst [vmem:[#allocation91_spill] sm:$0xff] %v2189_v29  ;;  %v2209_v45 = vmul.f32 %v1852_v49, %v2081_v61  ;;  %v2213_v46 = vmul.f32 %v1852_v49, %v2141_v55  ;;  %v2219_v29 = vmul.f32 %v1855_v50, %v2063_v2 }
  0xa4   :  { %3716 = vst [vmem:[#allocation92_spill] sm:$0xff] %v2193_v36  ;;  %3717 = vst [vmem:[#allocation93_spill] sm:$0xff] %v2197_v39  ;;  %v49_v39 = vsel %vm40_vm0, 0.0, %v42_v28  ;;  %v2223_v47 = vmul.f32 %v1859_v51, %v2081_v61  ;;  %v2227_v48 = vmul.f32 %v1859_v51, %v2141_v55 }
  0xa5   :  { %3718 = vst [vmem:[#allocation94_spill] sm:$0xff] %v2201_v41  ;;  %3719 = vst [vmem:[#allocation95_spill] sm:$0xff] %v2205_v43  ;;  %v163_v49 = vrot.slane %v49_v39, %v1762_v18  ;;  %v257_v28 = vrot.slane %v49_v39, %v1766_v20  ;;  %v2233_v41 = vpop.permute.xlu0 %93  ;;  %v304_v50 = vrot.slane %v49_v39, %v1768_v21 }
  0xa6   :  { %3720 = vst [vmem:[#allocation96_spill] sm:$0xff] %v2209_v45  ;;  %3721 = vst [vmem:[#allocation97_spill] sm:$0xff] %v2213_v46  ;;  %v81_v45 = vrot.slane %v49_v39, %v1760_v17  ;;  %v210_v46 = vrot.slane %v49_v39, %v1764_v19  ;;  %v445_v40 = vrot.slane %v49_v39, %v1774_v24 }
  0xa7   :  { %3722 = vst [vmem:[#allocation98_spill] sm:$0xff] %v2219_v29  ;;  %3723 = vst [vmem:[#allocation99_spill] sm:$0xff] %v2223_v47  ;;  %v351_v29 = vrot.slane %v49_v39, %v1770_v22  ;;  %v398_v47 = vrot.slane %v49_v39, %v1772_v23  ;;  %v168_v27 = vmul.f32 %v163_v49, %v1996_v8 }
  0xa8   :  { %3724 = vst [vmem:[#allocation100_spill] sm:$0xff] %v2227_v48  ;;  %v96_v51 = vmul.f32 %v1996_v8, %v81_v45  ;;  %v97_v48 = vmul.f32 %v2233_v41, %v81_v45  ;;  %v169_v43 = vmul.f32 %v163_v49, %v2233_v41  ;;  %v215_v36 = vmul.f32 %v210_v46, %v1996_v8 }
  0xa9   :  { %v216_v3 = vmul.f32 %v210_v46, %v2233_v41  ;;  %v262_v54 = vmul.f32 %v257_v28, %v1996_v8  ;;  %v263_v22 = vmul.f32 %v257_v28, %v2233_v41  ;;  %v172_v39 = vadd.f32 %v2020_v9, %v168_v27  ;;  %v3744_v9 = vld [vmem:[#allocation11_spill] sm:$0xff] }
  0xaa   :  { %v108_v23 = vadd.f32 %v2016_v10, %v96_v51  ;;  %v109_v21 = vadd.f32 %v107_v60, %v97_v48  ;;  %v173_v24 = vadd.f32 %v171_v59, %v169_v43  ;;  %v219_v45 = vadd.f32 %v2024_v14, %v215_v36  ;;  %v44_v59 = vpop.permute.xlu0 %43 }
  0xab   :  { %v220_v20 = vadd.f32 %v218_v58, %v216_v3  ;;  %v266_v19 = vadd.f32 %v2028_v15, %v262_v54  ;;  %v267_v49 = vadd.f32 %v2091_v57, %v263_v22  ;;  %v2258_v28 = vadd.f32 %v2099_v13, %v172_v39  ;;  %v3745_v13 = vld [vmem:[#allocation12_spill] sm:$0xff]  ;;  %v3746_v15 = vld [vmem:[#allocation13_spill] sm:$0xff] }
  0xac   :  { %v2253_v18 = vadd.f32 %v2095_v63, %v108_v23  ;;  %v2255_v46 = vadd.f32 %v119_v5, %v109_v21  ;;  %v2260_v51 = vadd.f32 %v175_v6, %v173_v24  ;;  %v2263_v27 = vadd.f32 %v2103_v30, %v219_v45  ;;  %v3742_v5 = vld [vmem:[#allocation9_spill] sm:$0xff] }
  0xad   :  { %3727 = vst [vmem:[#allocation103_spill] sm:$0xff] %v2258_v28  ;;  %v2265_v43 = vadd.f32 %v222_v42, %v220_v20  ;;  %v2268_v36 = vadd.f32 %v2107_v31, %v266_v19  ;;  %v2270_v48 = vadd.f32 %v269_v37, %v267_v49  ;;  %v309_v22 = vmul.f32 %v304_v50, %v1996_v8 }
  0xae   :  { %3725 = vst [vmem:[#allocation101_spill] sm:$0xff] %v2253_v18  ;;  %3726 = vst [vmem:[#allocation102_spill] sm:$0xff] %v2255_v46  ;;  %v310_v21 = vmul.f32 %v304_v50, %v2233_v41  ;;  %v356_v23 = vmul.f32 %v351_v29, %v1996_v8  ;;  %v357_v54 = vmul.f32 %v351_v29, %v2233_v41  ;;  %v3800_v46 = vld [vmem:[#allocation53_spill] sm:$0xff] }
  0xaf   :  { %3728 = vst [vmem:[#allocation104_spill] sm:$0xff] %v2260_v51  ;;  %3729 = vst [vmem:[#allocation105_spill] sm:$0xff] %v2263_v27  ;;  %v403_v24 = vmul.f32 %v398_v47, %v1996_v8  ;;  %v404_v30 = vmul.f32 %v398_v47, %v2233_v41  ;;  %v450_v20 = vmul.f32 %v445_v40, %v1996_v8  ;;  %v3799_v51 = vld [vmem:[#allocation73_spill] sm:$0xff] }
  0xb0   :  { %3730 = vst [vmem:[#allocation106_spill] sm:$0xff] %v2265_v43  ;;  %3731 = vst [vmem:[#allocation107_spill] sm:$0xff] %v2268_v36  ;;  %v451_v42 = vmul.f32 %v445_v40, %v2233_v41  ;;  %v313_v19 = vadd.f32 %v2032_v12, %v309_v22  ;;  %v314_v31 = vadd.f32 %v2111_v33, %v310_v21 }
  0xb1   :  { %3732 = vst [vmem:[#allocation108_spill] sm:$0xff] %v2270_v48  ;;  %v360_v37 = vadd.f32 %v2036_v11, %v356_v23  ;;  %v361_v50 = vadd.f32 %v2119_v62, %v357_v54  ;;  %v407_v57 = vadd.f32 %v2040_v16, %v403_v24  ;;  %v408_v29 = vadd.f32 %v2127_v0, %v404_v30  ;;  %v3747_v11 = vld [vmem:[#allocation41_spill] sm:$0xff]  ;;  %v3748_v30 = vld [vmem:[#allocation78_spill] sm:$0xff] }
  0xb2   :  { %v454_v58 = vadd.f32 %v2044_v7, %v450_v20  ;;  %v455_v47 = vadd.f32 %v2135_v1, %v451_v42  ;;  %v2289_v60 = vadd.f32 %v2115_v32, %v313_v19  ;;  %v2292_v40 = vadd.f32 %v2169_v44, %v314_v31  ;;  %v3749_v42 = vld [vmem:[#allocation86_spill] sm:$0xff]  ;;  %v3750_v31 = vld [vmem:[#allocation79_spill] sm:$0xff] }
  0xb3   :  { %v2295_v33 = vadd.f32 %v2123_v56, %v360_v37  ;;  %v2298_v62 = vadd.f32 %v2173_v4, %v361_v50  ;;  %v2301_v63 = vadd.f32 %v2131_v34, %v407_v57  ;;  %v2304_v0 = vadd.f32 %v2177_v25, %v408_v29  ;;  %v3741_v4 = vld [vmem:[#allocation8_spill] sm:$0xff] }
  0xb4   :  { %3733 = vst [vmem:[#allocation109_spill] sm:$0xff] %v2289_v60  ;;  %3734 = vst [vmem:[#allocation110_spill] sm:$0xff] %v2292_v40  ;;  %v2307_v1 = vadd.f32 %v2139_v35, %v454_v58  ;;  %v2310_v32 = vadd.f32 %v2181_v26, %v455_v47  ;;  %v50_v44 = vsel %vm40_vm0, 0.0, %v44_v59  ;;  %v735_v56 = vmul.f32 %v1862_v52, %v2063_v2  ;;  %v3743_v26 = vld [vmem:[#allocation10_spill] sm:$0xff]  ;;  %v3751_v50 = vld [vmem:[#allocation88_spill] sm:$0xff] }
  0xb5   :  { %3735 = vst [vmem:[#allocation111_spill] sm:$0xff] %v2295_v33  ;;  %3736 = vst [vmem:[#allocation112_spill] sm:$0xff] %v2298_v62  ;;  %v738_v3 = vmul.f32 %v1866_v53, %v2081_v61  ;;  %v739_v34 = vmul.f32 %v1866_v53, %v2141_v55  ;;  %v492_v25 = vrot.slane %v50_v44, %v1760_v17  ;;  %v3752_v29 = vld [vmem:[#allocation80_spill] sm:$0xff] }
  0xb6   :  { %3737 = vst [vmem:[#allocation113_spill] sm:$0xff] %v2301_v63  ;;  %3738 = vst [vmem:[#allocation114_spill] sm:$0xff] %v2304_v0  ;;  %v539_v35 = vrot.slane %v50_v44, %v3741_v4  ;;  %v586_v6 = vrot.slane %v50_v44, %v3742_v5  ;;  %v633_v7 = vrot.slane %v50_v44, %v3743_v26  ;;  %v3753_v47 = vld [vmem:[#allocation92_spill] sm:$0xff]  ;;  %v3756_v0 = vld [vmem:[#allocation87_spill] sm:$0xff] }
  0xb7   :  { %3739 = vst [vmem:[#allocation115_spill] sm:$0xff] %v2307_v1  ;;  %3740 = vst [vmem:[#allocation116_spill] sm:$0xff] %v2310_v32  ;;  %v680_v10 = vrot.slane %v50_v44, %v3744_v9  ;;  %v727_v14 = vrot.slane %v50_v44, %v3745_v13  ;;  %v774_v16 = vrot.slane %v50_v44, %v3746_v15  ;;  %v3755_v32 = vld [vmem:[#allocation95_spill] sm:$0xff] }
  0xb8   :  { %v782_v12 = vmul.f32 %v3747_v11, %v2063_v2  ;;  %v497_v39 = vmul.f32 %v492_v25, %v1996_v8  ;;  %v498_v45 = vmul.f32 %v492_v25, %v2233_v41  ;;  %v544_v49 = vmul.f32 %v539_v35, %v1996_v8  ;;  %v3754_v25 = vld [vmem:[#allocation81_spill] sm:$0xff] }
  0xb9   :  { %v545_v22 = vmul.f32 %v539_v35, %v2233_v41  ;;  %v591_v21 = vmul.f32 %v586_v6, %v1996_v8  ;;  %v592_v23 = vmul.f32 %v586_v6, %v2233_v41  ;;  %v638_v54 = vmul.f32 %v633_v7, %v1996_v8 }
  0xba   :  { %v639_v24 = vmul.f32 %v633_v7, %v2233_v41  ;;  %v501_v20 = vadd.f32 %v3748_v30, %v497_v39  ;;  %v502_v19 = vadd.f32 %v3749_v42, %v498_v45  ;;  %v548_v37 = vadd.f32 %v3750_v31, %v544_v49  ;;  %v3758_v7 = vld [vmem:[#allocation90_spill] sm:$0xff]  ;;  %v3760_v39 = vld [vmem:[#allocation89_spill] sm:$0xff]  ;;  %v3762_v49 = vld [vmem:[#allocation91_spill] sm:$0xff] }
  0xbb   :  { %v549_v57 = vadd.f32 %v3751_v50, %v545_v22  ;;  %v595_v58 = vadd.f32 %v3752_v29, %v591_v21  ;;  %v596_v59 = vadd.f32 %v3753_v47, %v592_v23  ;;  %v642_v35 = vadd.f32 %v3754_v25, %v638_v54  ;;  %v3764_v22 = vld [vmem:[#allocation93_spill] sm:$0xff]  ;;  %v3766_v23 = vld [vmem:[#allocation94_spill] sm:$0xff]  ;;  %v3768_v54 = vld [vmem:[#allocation96_spill] sm:$0xff] }
  0xbc   :  { %v643_v6 = vadd.f32 %v3755_v32, %v639_v24  ;;  %v2346_v62 = vadd.f32 %v3756_v0, %v501_v20  ;;  %v2349_v40 = vadd.f32 %v3758_v7, %v502_v19  ;;  %v2352_v45 = vadd.f32 %v3760_v39, %v548_v37  ;;  %v3770_v0 = vld [vmem:[#allocation97_spill] sm:$0xff]  ;;  %v3772_v29 = vld [vmem:[#allocation42_spill] sm:$0xff]  ;;  %v3775_v7 = vld [vmem:[#allocation83_spill] sm:$0xff] }
  0xbd   :  { %v2355_v30 = vadd.f32 %v3762_v49, %v549_v57  ;;  %v2358_v21 = vadd.f32 %v3764_v22, %v595_v58  ;;  %v2361_v42 = vadd.f32 %v3766_v23, %v596_v59  ;;  %v2364_v32 = vadd.f32 %v3768_v54, %v642_v35  ;;  %v3773_v59 = vld [vmem:[#allocation82_spill] sm:$0xff]  ;;  %v3776_v49 = vld [vmem:[#allocation84_spill] sm:$0xff] }
  0xbe   :  { %3757 = vst [vmem:[#allocation8_spill] sm:$0xff] %v2346_v62  ;;  %3759 = vst [vmem:[#allocation9_spill] sm:$0xff] %v2349_v40  ;;  %v2367_v24 = vadd.f32 %v3770_v0, %v643_v6  ;;  %v685_v20 = vmul.f32 %v680_v10, %v1996_v8  ;;  %v686_v19 = vmul.f32 %v680_v10, %v2233_v41  ;;  %v3774_v35 = vld [vmem:[#allocation98_spill] sm:$0xff] }
  0xbf   :  { %3761 = vst [vmem:[#allocation10_spill] sm:$0xff] %v2352_v45  ;;  %3763 = vst [vmem:[#allocation11_spill] sm:$0xff] %v2355_v30  ;;  %v732_v31 = vmul.f32 %v727_v14, %v1996_v8  ;;  %v733_v37 = vmul.f32 %v727_v14, %v2233_v41  ;;  %v779_v50 = vmul.f32 %v774_v16, %v1996_v8  ;;  %v3777_v23 = vld [vmem:[#allocation14_spill] sm:$0xff]  ;;  %v3781_v30 = vld [vmem:[#allocation100_spill] sm:$0xff] }
  0xc0   :  { %3765 = vst [vmem:[#allocation12_spill] sm:$0xff] %v2358_v21  ;;  %3767 = vst [vmem:[#allocation13_spill] sm:$0xff] %v2361_v42  ;;  %v780_v57 = vmul.f32 %v774_v16, %v2233_v41  ;;  %v785_v58 = vmul.f32 %v3772_v29, %v2081_v61  ;;  %v786_v47 = vmul.f32 %v3772_v29, %v2141_v55  ;;  %v3778_v16 = vld [vmem:[#allocation43_spill] sm:$0xff] }
  0xc1   :  { %3769 = vst [vmem:[#allocation78_spill] sm:$0xff] %v2364_v32  ;;  %3771 = vst [vmem:[#allocation86_spill] sm:$0xff] %v2367_v24  ;;  %v689_v25 = vadd.f32 %v3773_v59, %v685_v20  ;;  %v690_v6 = vadd.f32 %v3774_v35, %v686_v19  ;;  %v736_v10 = vadd.f32 %v3775_v7, %v732_v31  ;;  %v3779_v24 = vld [vmem:[#allocation99_spill] sm:$0xff]  ;;  %v3790_v59 = vld [vmem:[#allocation46_spill] sm:$0xff] }
  0xc2   :  { %v737_v39 = vadd.f32 %v735_v56, %v733_v37  ;;  %v783_v22 = vadd.f32 %v3776_v49, %v779_v50  ;;  %v784_v14 = vadd.f32 %v782_v12, %v780_v57  ;;  %v821_v54 = vrot.slane %v50_v44, %v3777_v23  ;;  %v3787_v37 = vld [vmem:[#allocation44_spill] sm:$0xff]  ;;  %v3789_v57 = vld [vmem:[#allocation85_spill] sm:$0xff]  ;;  %v3801_v32 = vld [vmem:[#allocation54_spill] sm:$0xff] }
  0xc3   :  { %v829_v0 = vmul.f32 %v3778_v16, %v2063_v2  ;;  %v2387_v42 = vadd.f32 %v3779_v24, %v689_v25  ;;  %v2390_v40 = vadd.f32 %v3781_v30, %v690_v6  ;;  %v2392_v20 = vadd.f32 %v738_v3, %v736_v10  ;;  %v3788_v30 = vld [vmem:[#allocation45_spill] sm:$0xff]  ;;  %v3791_v6 = vld [vmem:[#allocation47_spill] sm:$0xff] }
  0xc4   :  { %v2394_v19 = vadd.f32 %v739_v34, %v737_v39  ;;  %v2396_v31 = vadd.f32 %v785_v58, %v783_v22  ;;  %v2398_v56 = vadd.f32 %v786_v47, %v784_v14  ;;  %v826_v12 = vmul.f32 %v821_v54, %v1996_v8  ;;  %v3792_v39 = vld [vmem:[#allocation48_spill] sm:$0xff]  ;;  %v46_v14 = vpop.permute.xlu1 %45 }
  0xc5   :  { %3780 = vst [vmem:[#allocation79_spill] sm:$0xff] %v2387_v42  ;;  %3782 = vst [vmem:[#allocation88_spill] sm:$0xff] %v2390_v40  ;;  %v827_v44 = vmul.f32 %v821_v54, %v2233_v41  ;;  %v832_v50 = vmul.f32 %v3787_v37, %v2081_v61  ;;  %v833_v24 = vmul.f32 %v3787_v37, %v2141_v55  ;;  %v51_v43 = vsel %vm40_vm0, 0.0, %v46_v14  ;;  %v3802_v14 = vld [vmem:[#allocation55_spill] sm:$0xff] }
  0xc6   :  { %3783 = vst [vmem:[#allocation80_spill] sm:$0xff] %v2392_v20  ;;  %3784 = vst [vmem:[#allocation92_spill] sm:$0xff] %v2394_v19  ;;  %v879_v3 = vmul.f32 %v3788_v30, %v2081_v61  ;;  %v880_v34 = vmul.f32 %v3788_v30, %v2141_v55  ;;  %v830_v58 = vadd.f32 %v3789_v57, %v826_v12  ;;  %v3795_v12 = vld [vmem:[#allocation49_spill] sm:$0xff] }
  0xc7   :  { %3785 = vst [vmem:[#allocation81_spill] sm:$0xff] %v2396_v31  ;;  %3786 = vst [vmem:[#allocation95_spill] sm:$0xff] %v2398_v56  ;;  %v831_v47 = vadd.f32 %v829_v0, %v827_v44  ;;  %v926_v25 = vmul.f32 %v3790_v59, %v2081_v61  ;;  %v927_v35 = vmul.f32 %v3790_v59, %v2141_v55  ;;  %v3796_v56 = vld [vmem:[#allocation50_spill] sm:$0xff] }
  0xc8   :  { %v973_v7 = vmul.f32 %v3791_v6, %v2081_v61  ;;  %v974_v10 = vmul.f32 %v3791_v6, %v2141_v55  ;;  %v1020_v49 = vmul.f32 %v3792_v39, %v2081_v61  ;;  %v1021_v22 = vmul.f32 %v3792_v39, %v2141_v55 }
  0xc9   :  { %v2423_v54 = vadd.f32 %v832_v50, %v830_v58  ;;  %v2425_v0 = vadd.f32 %v833_v24, %v831_v47  ;;  %v2429_v44 = vmul.f32 %v3795_v12, %v2081_v61  ;;  %v2433_v57 = vmul.f32 %v3795_v12, %v2141_v55  ;;  %v3797_v50 = vld [vmem:[#allocation51_spill] sm:$0xff]  ;;  %v3798_v47 = vld [vmem:[#allocation52_spill] sm:$0xff] }
  0xca   :  { %v2437_v19 = vmul.f32 %v3796_v56, %v2081_v61  ;;  %v2441_v40 = vmul.f32 %v3796_v56, %v2141_v55  ;;  %v2445_v24 = vmul.f32 %v3797_v50, %v2081_v61  ;;  %v2449_v58 = vmul.f32 %v3797_v50, %v2141_v55  ;;  %v3803_v50 = vld [vmem:[#allocation56_spill] sm:$0xff] }
  0xcb   :  { %3793 = vst [vmem:[#allocation87_spill] sm:$0xff] %v2423_v54  ;;  %3794 = vst [vmem:[#allocation90_spill] sm:$0xff] %v2425_v0  ;;  %v2453_v0 = vmul.f32 %v3798_v47, %v2081_v61  ;;  %v2457_v48 = vmul.f32 %v3798_v47, %v2141_v55  ;;  %v875_v54 = vmul.f32 %v3800_v46, %v3799_v51 }
  0xcc   :  { %v868_v31 = vrot.slane %v51_v43, %v1760_v17  ;;  %v876_v20 = vmul.f32 %v3800_v46, %v2063_v2  ;;  %v915_v42 = vrot.slane %v51_v43, %v3741_v4  ;;  %v922_v21 = vmul.f32 %v3801_v32, %v3799_v51 }
  0xcd   :  { %v923_v45 = vmul.f32 %v3801_v32, %v2063_v2  ;;  %v962_v62 = vrot.slane %v51_v43, %v3742_v5  ;;  %v969_v1 = vmul.f32 %v3802_v14, %v3799_v51  ;;  %v970_v63 = vmul.f32 %v3802_v14, %v2063_v2 }
  0xce   :  { %v873_v33 = vmul.f32 %v868_v31, %v1996_v8  ;;  %v874_v60 = vmul.f32 %v868_v31, %v2233_v41  ;;  %v920_v36 = vmul.f32 %v915_v42, %v1996_v8  ;;  %v921_v27 = vmul.f32 %v915_v42, %v2233_v41 }
  0xcf   :  { %v967_v28 = vmul.f32 %v962_v62, %v1996_v8  ;;  %v968_v18 = vmul.f32 %v962_v62, %v2233_v41  ;;  %v1009_v47 = vrot.slane %v51_v43, %v3743_v26  ;;  %v1016_v56 = vmul.f32 %v3803_v50, %v3799_v51 }
  0xd0   :  { %v877_v12 = vadd.f32 %v875_v54, %v873_v33  ;;  %v878_v39 = vadd.f32 %v876_v20, %v874_v60  ;;  %v924_v6 = vadd.f32 %v922_v21, %v920_v36  ;;  %v925_v14 = vadd.f32 %v923_v45, %v921_v27  ;;  %v3810_v36 = vld [vmem:[#allocation57_spill] sm:$0xff] }
  0xd1   :  { %v971_v59 = vadd.f32 %v969_v1, %v967_v28  ;;  %v972_v32 = vadd.f32 %v970_v63, %v968_v18  ;;  %v1014_v31 = vmul.f32 %v1009_v47, %v1996_v8  ;;  %v1015_v30 = vmul.f32 %v1009_v47, %v2233_v41 }
  0xd2   :  { %v2487_v42 = vadd.f32 %v879_v3, %v877_v12  ;;  %v2489_v46 = vadd.f32 %v880_v34, %v878_v39  ;;  %v2491_v62 = vadd.f32 %v926_v25, %v924_v6  ;;  %v2493_v16 = vadd.f32 %v927_v35, %v925_v14  ;;  %v3814_v6 = vld [vmem:[#allocation59_spill] sm:$0xff] }
  0xd3   :  { %v2495_v11 = vadd.f32 %v973_v7, %v971_v59  ;;  %v2497_v33 = vadd.f32 %v974_v10, %v972_v32  ;;  %v1017_v28 = vmul.f32 %v3803_v50, %v2063_v2  ;;  %v1018_v18 = vadd.f32 %v1016_v56, %v1014_v31  ;;  %v3812_v32 = vld [vmem:[#allocation58_spill] sm:$0xff] }
  0xd4   :  { %3804 = vst [vmem:[#allocation89_spill] sm:$0xff] %v2487_v42  ;;  %3805 = vst [vmem:[#allocation91_spill] sm:$0xff] %v2489_v46  ;;  %v1056_v27 = vrot.slane %v51_v43, %v3744_v9  ;;  %v1063_v60 = vmul.f32 %v3810_v36, %v3799_v51  ;;  %v1064_v63 = vmul.f32 %v3810_v36, %v2063_v2  ;;  %v3833_v46 = vld [vmem:[#allocation70_spill] sm:$0xff] }
  0xd5   :  { %3806 = vst [vmem:[#allocation93_spill] sm:$0xff] %v2491_v62  ;;  %3807 = vst [vmem:[#allocation94_spill] sm:$0xff] %v2493_v16  ;;  %v1103_v1 = vrot.slane %v51_v43, %v3745_v13  ;;  %v1019_v45 = vadd.f32 %v1017_v28, %v1015_v30  ;;  %v2507_v21 = vadd.f32 %v1020_v49, %v1018_v18 }
  0xd6   :  { %3808 = vst [vmem:[#allocation96_spill] sm:$0xff] %v2495_v11  ;;  %3809 = vst [vmem:[#allocation97_spill] sm:$0xff] %v2497_v33  ;;  %v1110_v20 = vmul.f32 %v3812_v32, %v3799_v51  ;;  %v1111_v3 = vmul.f32 %v3812_v32, %v2063_v2  ;;  %v1061_v56 = vmul.f32 %v1056_v27, %v1996_v8 }
  0xd7   :  { %3811 = vst [vmem:[#allocation42_spill] sm:$0xff] %v2507_v21  ;;  %v1062_v34 = vmul.f32 %v1056_v27, %v2233_v41  ;;  %v1108_v59 = vmul.f32 %v1103_v1, %v1996_v8  ;;  %v1109_v25 = vmul.f32 %v1103_v1, %v2233_v41  ;;  %v2517_v35 = vadd.f32 %v1021_v22, %v1019_v45  ;;  %v3815_v22 = vld [vmem:[#allocation60_spill] sm:$0xff] }
  0xd8   :  { %v1150_v30 = vrot.slane %v51_v43, %v3746_v15  ;;  %v1157_v7 = vmul.f32 %v3814_v6, %v3799_v51  ;;  %v1158_v10 = vmul.f32 %v3814_v6, %v2063_v2  ;;  %v1065_v39 = vadd.f32 %v1063_v60, %v1061_v56 }
  0xd9   :  { %3813 = vst [vmem:[#allocation82_spill] sm:$0xff] %v2517_v35  ;;  %v1066_v49 = vadd.f32 %v1064_v63, %v1062_v34  ;;  %v1112_v54 = vadd.f32 %v1110_v20, %v1108_v59  ;;  %v1113_v12 = vadd.f32 %v1111_v3, %v1109_v25  ;;  %v1197_v31 = vrot.slane %v51_v43, %v3777_v23 }
  0xda   :  { %v1155_v47 = vmul.f32 %v1150_v30, %v1996_v8  ;;  %v1156_v14 = vmul.f32 %v1150_v30, %v2233_v41  ;;  %v1204_v28 = vmul.f32 %v3815_v22, %v3799_v51  ;;  %v2530_v18 = vadd.f32 %v2429_v44, %v1065_v39  ;;  %v3820_v44 = vld [vmem:[#allocation61_spill] sm:$0xff] }
  0xdb   :  { %v2533_v27 = vadd.f32 %v2433_v57, %v1066_v49  ;;  %v2536_v60 = vadd.f32 %v2437_v19, %v1112_v54  ;;  %v2539_v63 = vadd.f32 %v2441_v40, %v1113_v12  ;;  %v1202_v20 = vmul.f32 %v1197_v31, %v1996_v8  ;;  %v3821_v19 = vld [vmem:[#allocation62_spill] sm:$0xff]  ;;  %v3825_v54 = vld [vmem:[#allocation64_spill] sm:$0xff] }
  0xdc   :  { %3816 = vst [vmem:[#allocation98_spill] sm:$0xff] %v2530_v18  ;;  %v1159_v1 = vadd.f32 %v1157_v7, %v1155_v47  ;;  %v1160_v45 = vadd.f32 %v1158_v10, %v1156_v14  ;;  %v1203_v43 = vmul.f32 %v1197_v31, %v2233_v41  ;;  %v1205_v3 = vmul.f32 %v3815_v22, %v2063_v2  ;;  %v3824_v10 = vld [vmem:[#allocation63_spill] sm:$0xff]  ;;  %v48_v47 = vpop.permute.xlu0 %47  ;;  %v3827_v14 = vld [vmem:[#allocation65_spill] sm:$0xff] }
  0xdd   :  { %3817 = vst [vmem:[#allocation83_spill] sm:$0xff] %v2533_v27  ;;  %3818 = vst [vmem:[#allocation84_spill] sm:$0xff] %v2536_v60  ;;  %v1255_v56 = vmul.f32 %v3820_v44, %v2081_v61  ;;  %v1256_v57 = vmul.f32 %v3820_v44, %v2141_v55  ;;  %v1302_v34 = vmul.f32 %v3821_v19, %v2081_v61  ;;  %v3832_v27 = vld [vmem:[#allocation69_spill] sm:$0xff] }
  0xde   :  { %3819 = vst [vmem:[#allocation14_spill] sm:$0xff] %v2539_v63  ;;  %v2552_v40 = vadd.f32 %v2445_v24, %v1159_v1  ;;  %v2555_v59 = vadd.f32 %v2449_v58, %v1160_v45  ;;  %v1206_v25 = vadd.f32 %v1204_v28, %v1202_v20  ;;  %v1303_v30 = vmul.f32 %v3821_v19, %v2141_v55  ;;  %v3829_v45 = vld [vmem:[#allocation66_spill] sm:$0xff] }
  0xdf   :  { %v1207_v7 = vadd.f32 %v1205_v3, %v1203_v43  ;;  %v1349_v39 = vmul.f32 %v3824_v10, %v2081_v61  ;;  %v1350_v49 = vmul.f32 %v3824_v10, %v2141_v55  ;;  %v1396_v12 = vmul.f32 %v3825_v54, %v2081_v61  ;;  %v3830_v43 = vld [vmem:[#allocation67_spill] sm:$0xff] }
  0xe0   :  { %3822 = vst [vmem:[#allocation99_spill] sm:$0xff] %v2552_v40  ;;  %3823 = vst [vmem:[#allocation100_spill] sm:$0xff] %v2555_v59  ;;  %v2566_v24 = vadd.f32 %v2453_v0, %v1206_v25  ;;  %v1397_v58 = vmul.f32 %v3825_v54, %v2141_v55  ;;  %v2572_v31 = vmul.f32 %v3827_v14, %v2081_v61  ;;  %v3831_v59 = vld [vmem:[#allocation68_spill] sm:$0xff] }
  0xe1   :  { %v2576_v28 = vmul.f32 %v3827_v14, %v2141_v55  ;;  %v2579_v1 = vadd.f32 %v2457_v48, %v1207_v7  ;;  %v2583_v20 = vmul.f32 %v3829_v45, %v2081_v61  ;;  %v2587_v0 = vmul.f32 %v3829_v45, %v2141_v55 }
  0xe2   :  { %3826 = vst [vmem:[#allocation44_spill] sm:$0xff] %v2566_v24  ;;  %v2591_v3 = vmul.f32 %v3830_v43, %v2081_v61  ;;  %v2595_v25 = vmul.f32 %v3830_v43, %v2141_v55  ;;  %v2599_v48 = vmul.f32 %v3831_v59, %v2081_v61  ;;  %v2603_v7 = vmul.f32 %v3831_v59, %v2141_v55 }
  0xe3   :  { %3828 = vst [vmem:[#allocation85_spill] sm:$0xff] %v2579_v1  ;;  %v52_v1 = vsel %vm40_vm0, 0.0, %v48_v47  ;;  %v1251_v35 = vmul.f32 %v3832_v27, %v3799_v51  ;;  %v1252_v33 = vmul.f32 %v3832_v27, %v2063_v2  ;;  %v1298_v24 = vmul.f32 %v3833_v46, %v3799_v51  ;;  %v3834_v47 = vld [vmem:[#allocation71_spill] sm:$0xff] }
  0xe4   :  { %v1244_v63 = vrot.slane %v52_v1, %v1760_v17  ;;  %v1291_v16 = vrot.slane %v52_v1, %v3741_v4  ;;  %v1299_v40 = vmul.f32 %v3833_v46, %v2063_v2  ;;  %v1338_v60 = vrot.slane %v52_v1, %v3742_v5 }
  0xe5   :  { %v1345_v18 = vmul.f32 %v3834_v47, %v3799_v51  ;;  %v1346_v45 = vmul.f32 %v3834_v47, %v2063_v2  ;;  %v1385_v14 = vrot.slane %v52_v1, %v3743_v26 }
  0xe6   :  { %v1249_v21 = vmul.f32 %v1244_v63, %v1996_v8  ;;  %v1250_v11 = vmul.f32 %v1244_v63, %v2233_v41  ;;  %v1296_v62 = vmul.f32 %v1291_v16, %v1996_v8  ;;  %v1297_v42 = vmul.f32 %v1291_v16, %v2233_v41 }
  0xe7   :  { %v1343_v59 = vmul.f32 %v1338_v60, %v1996_v8  ;;  %v1344_v43 = vmul.f32 %v1338_v60, %v2233_v41  ;;  %v1390_v63 = vmul.f32 %v1385_v14, %v1996_v8  ;;  %v1391_v22 = vmul.f32 %v1385_v14, %v2233_v41 }
  0xe8   :  { %v1253_v54 = vadd.f32 %v1251_v35, %v1249_v21  ;;  %v1254_v10 = vadd.f32 %v1252_v33, %v1250_v11  ;;  %v1300_v19 = vadd.f32 %v1298_v24, %v1296_v62  ;;  %v1301_v46 = vadd.f32 %v1299_v40, %v1297_v42  ;;  %v3841_v11 = vld [vmem:[#allocation72_spill] sm:$0xff]  ;;  %v3842_v35 = vld [vmem:[#allocation74_spill] sm:$0xff] }
  0xe9   :  { %v1347_v44 = vadd.f32 %v1345_v18, %v1343_v59  ;;  %v1348_v27 = vadd.f32 %v1346_v45, %v1344_v43  ;;  %v1392_v42 = vmul.f32 %v3841_v11, %v3799_v51  ;;  %v1393_v62 = vmul.f32 %v3841_v11, %v2063_v2 }
  0xea   :  { %v2631_v16 = vadd.f32 %v1255_v56, %v1253_v54  ;;  %v2633_v6 = vadd.f32 %v1256_v57, %v1254_v10  ;;  %v2635_v60 = vadd.f32 %v1302_v34, %v1300_v19  ;;  %v2637_v32 = vadd.f32 %v1303_v30, %v1301_v46  ;;  %v3846_v54 = vld [vmem:[#allocation76_spill] sm:$0xff] }
  0xeb   :  { %v2639_v47 = vadd.f32 %v1349_v39, %v1347_v44  ;;  %v2641_v21 = vadd.f32 %v1350_v49, %v1348_v27  ;;  %v1432_v33 = vrot.slane %v52_v1, %v3744_v9  ;;  %v1439_v18 = vmul.f32 %v3842_v35, %v3799_v51  ;;  %v3843_v27 = vld [vmem:[#allocation75_spill] sm:$0xff] }
  0xec   :  { %3835 = vst [vmem:[#allocation73_spill] sm:$0xff] %v2631_v16  ;;  %3836 = vst [vmem:[#allocation56_spill] sm:$0xff] %v2633_v6  ;;  %v1440_v56 = vmul.f32 %v3842_v35, %v2063_v2  ;;  %v1479_v46 = vrot.slane %v52_v1, %v3745_v13  ;;  %v1394_v44 = vadd.f32 %v1392_v42, %v1390_v63  ;;  %v3866_v6 = vld [vmem:[#allocation22_spill] sm:$0xff] }
  0xed   :  { %3837 = vst [vmem:[#allocation57_spill] sm:$0xff] %v2635_v60  ;;  %3838 = vst [vmem:[#allocation117_spill] sm:$0xff] %v2637_v32  ;;  %v1395_v57 = vadd.f32 %v1393_v62, %v1391_v22  ;;  %v1486_v19 = vmul.f32 %v3843_v27, %v3799_v51  ;;  %v1487_v34 = vmul.f32 %v3843_v27, %v2063_v2 }
  0xee   :  { %3839 = vst [vmem:[#allocation118_spill] sm:$0xff] %v2639_v47  ;;  %3840 = vst [vmem:[#allocation119_spill] sm:$0xff] %v2641_v21  ;;  %v1437_v40 = vmul.f32 %v1432_v33, %v1996_v8  ;;  %v1438_v59 = vmul.f32 %v1432_v33, %v2233_v41  ;;  %v1484_v30 = vmul.f32 %v1479_v46, %v1996_v8 }
  0xef   :  { %v1485_v10 = vmul.f32 %v1479_v46, %v2233_v41  ;;  %v2661_v39 = vadd.f32 %v1396_v12, %v1394_v44  ;;  %v2663_v49 = vadd.f32 %v1397_v58, %v1395_v57  ;;  %v1526_v22 = vrot.slane %v52_v1, %v3746_v15 }
  0xf0   :  { %v1533_v24 = vmul.f32 %v3846_v54, %v3799_v51  ;;  %v1441_v14 = vadd.f32 %v1439_v18, %v1437_v40  ;;  %v1442_v45 = vadd.f32 %v1440_v56, %v1438_v59  ;;  %v1488_v43 = vadd.f32 %v1486_v19, %v1484_v30 }
  0xf1   :  { %3844 = vst [vmem:[#allocation72_spill] sm:$0xff] %v2661_v39  ;;  %3845 = vst [vmem:[#allocation74_spill] sm:$0xff] %v2663_v49  ;;  %v1489_v63 = vadd.f32 %v1487_v34, %v1485_v10  ;;  %v1531_v42 = vmul.f32 %v1526_v22, %v1996_v8  ;;  %v1532_v62 = vmul.f32 %v1526_v22, %v2233_v41  ;;  %v3855_v10 = vld [vmem:[#allocation16_spill] sm:$0xff] }
  0xf2   :  { %v1534_v12 = vmul.f32 %v3846_v54, %v2063_v2  ;;  %v1573_v58 = vrot.slane %v52_v1, %v3777_v23  ;;  %v2675_v33 = vadd.f32 %v2572_v31, %v1441_v14  ;;  %v2678_v46 = vadd.f32 %v2576_v28, %v1442_v45  ;;  %v3851_v1 = vld [vmem:[#allocation77_spill] sm:$0xff]  ;;  %v3852_v28 = vld [vmem:[#allocation15_spill] sm:$0xff] }
  0xf3   :  { %v2681_v18 = vadd.f32 %v2583_v20, %v1488_v43  ;;  %v2684_v56 = vadd.f32 %v2587_v0, %v1489_v63  ;;  %v1535_v44 = vadd.f32 %v1533_v24, %v1531_v42  ;;  %v1580_v40 = vmul.f32 %v3851_v1, %v3799_v51  ;;  %v3856_v43 = vld [vmem:[#allocation17_spill] sm:$0xff] }
  0xf4   :  { %3847 = vst [vmem:[#allocation75_spill] sm:$0xff] %v2675_v33  ;;  %3848 = vst [vmem:[#allocation76_spill] sm:$0xff] %v2678_v46  ;;  %v1536_v57 = vadd.f32 %v1534_v12, %v1532_v62  ;;  %v1578_v19 = vmul.f32 %v1573_v58, %v1996_v8  ;;  %v1579_v34 = vmul.f32 %v1573_v58, %v2233_v41  ;;  %v3858_v12 = vld [vmem:[#allocation19_spill] sm:$0xff] }
  0xf5   :  { %3849 = vst [vmem:[#allocation120_spill] sm:$0xff] %v2681_v18  ;;  %3850 = vst [vmem:[#allocation121_spill] sm:$0xff] %v2684_v56  ;;  %v1581_v31 = vmul.f32 %v3851_v1, %v2063_v2  ;;  %v136_v59 = vmul.f32 %v3799_v51, %v3852_v28  ;;  %v137_v20 = vmul.f32 %v2063_v2, %v3852_v28 }
  0xf6   :  { %v2697_v0 = vadd.f32 %v2591_v3, %v1535_v44  ;;  %v2700_v30 = vadd.f32 %v2595_v25, %v1536_v57  ;;  %v182_v22 = vmul.f32 %v3855_v10, %v3799_v51  ;;  %v183_v24 = vmul.f32 %v3855_v10, %v2063_v2  ;;  %v3857_v3 = vld [vmem:[#allocation18_spill] sm:$0xff]  ;;  %v55_v57 = vpop.permute.xlu1 %54  ;;  %v3862_v10 = vld [vmem:[#allocation28_spill] sm:$0xff] }
  0xf7   :  { %v1582_v14 = vadd.f32 %v1580_v40, %v1578_v19  ;;  %v1583_v45 = vadd.f32 %v1581_v31, %v1579_v34  ;;  %v229_v63 = vmul.f32 %v3856_v43, %v3799_v51  ;;  %v230_v42 = vmul.f32 %v3856_v43, %v2063_v2  ;;  %v3861_v40 = vld [vmem:[#allocation26_spill] sm:$0xff] }
  0xf8   :  { %3853 = vst [vmem:[#allocation77_spill] sm:$0xff] %v2697_v0  ;;  %3854 = vst [vmem:[#allocation15_spill] sm:$0xff] %v2700_v30  ;;  %v276_v62 = vmul.f32 %v3857_v3, %v3799_v51  ;;  %v277_v25 = vmul.f32 %v3857_v3, %v2063_v2  ;;  %v323_v58 = vmul.f32 %v3858_v12, %v3799_v51 }
  0xf9   :  { %v324_v44 = vmul.f32 %v3858_v12, %v2063_v2  ;;  %v2719_v19 = vadd.f32 %v2599_v48, %v1582_v14  ;;  %v2722_v34 = vadd.f32 %v2603_v7, %v1583_v45  ;;  %v370_v31 = vmul.f32 %v3861_v40, %v3799_v51  ;;  %v3863_v48 = vld [vmem:[#allocation30_spill] sm:$0xff]  ;;  %v3864_v12 = vld [vmem:[#allocation20_spill] sm:$0xff] }
  0xfa   :  { %v371_v28 = vmul.f32 %v3861_v40, %v2063_v2  ;;  %v2730_v43 = vmul.f32 %v3862_v10, %v3799_v51  ;;  %v2734_v3 = vmul.f32 %v3862_v10, %v2063_v2  ;;  %v2738_v14 = vmul.f32 %v3863_v48, %v3799_v51  ;;  %v3865_v10 = vld [vmem:[#allocation21_spill] sm:$0xff] }
  0xfb   :  { %3859 = vst [vmem:[#allocation16_spill] sm:$0xff] %v2719_v19  ;;  %3860 = vst [vmem:[#allocation17_spill] sm:$0xff] %v2722_v34  ;;  %v2742_v7 = vmul.f32 %v3863_v48, %v2063_v2  ;;  %v62_v45 = vsel %vm53_vm1, 0.0, %v55_v57  ;;  %v134_v40 = vmul.f32 %v1996_v8, %v3864_v12  ;;  %v135_v34 = vmul.f32 %v2233_v41, %v3864_v12 }
  0xfc   :  { %v180_v30 = vmul.f32 %v3865_v10, %v1996_v8  ;;  %v85_v56 = vrot.slane %v62_v45, %v1760_v17  ;;  %v167_v46 = vrot.slane %v62_v45, %v3741_v4  ;;  %v181_v48 = vmul.f32 %v3865_v10, %v2233_v41 }
  0xfd   :  { %v214_v49 = vrot.slane %v62_v45, %v3742_v5  ;;  %v138_v21 = vadd.f32 %v136_v59, %v134_v40  ;;  %v139_v57 = vadd.f32 %v137_v20, %v135_v34  ;;  %v227_v19 = vmul.f32 %v3866_v6, %v1996_v8 }
  0xfe   :  { %v184_v32 = vadd.f32 %v182_v22, %v180_v30  ;;  %v140_v12 = vmul.f32 %v2081_v61, %v85_v56  ;;  %v141_v0 = vmul.f32 %v2141_v55, %v85_v56  ;;  %v185_v18 = vadd.f32 %v183_v24, %v181_v48 }
  0xff   :  { %v186_v33 = vmul.f32 %v167_v46, %v2081_v61  ;;  %v187_v39 = vmul.f32 %v167_v46, %v2141_v55  ;;  %v228_v10 = vmul.f32 %v3866_v6, %v2233_v41  ;;  %v231_v47 = vadd.f32 %v229_v63, %v227_v19  ;;  %v3869_v6 = vld [vmem:[#allocation23_spill] sm:$0xff] }
 0x100   :  { %v233_v59 = vmul.f32 %v214_v49, %v2081_v61  ;;  %v2766_v20 = vadd.f32 %v140_v12, %v138_v21  ;;  %v2768_v30 = vadd.f32 %v141_v0, %v139_v57  ;;  %v234_v34 = vmul.f32 %v214_v49, %v2141_v55 }
 0x101   :  { %v2770_v22 = vadd.f32 %v186_v33, %v184_v32  ;;  %v2773_v56 = vadd.f32 %v187_v39, %v185_v18  ;;  %v232_v24 = vadd.f32 %v230_v42, %v228_v10  ;;  %v261_v46 = vrot.slane %v62_v45, %v3743_v26  ;;  %v3870_v32 = vld [vmem:[#allocation24_spill] sm:$0xff] }
 0x102   :  { %3867 = vst [vmem:[#allocation18_spill] sm:$0xff] %v2768_v30  ;;  %v2775_v40 = vadd.f32 %v233_v59, %v231_v47  ;;  %v274_v63 = vmul.f32 %v3869_v6, %v1996_v8  ;;  %v275_v21 = vmul.f32 %v3869_v6, %v2233_v41  ;;  %v308_v0 = vrot.slane %v62_v45, %v3744_v9 }
 0x103   :  { %3868 = vst [vmem:[#allocation19_spill] sm:$0xff] %v2773_v56  ;;  %v321_v33 = vmul.f32 %v3870_v32, %v1996_v8  ;;  %v2785_v19 = vadd.f32 %v234_v34, %v232_v24  ;;  %v280_v39 = vmul.f32 %v261_v46, %v2081_v61  ;;  %v281_v47 = vmul.f32 %v261_v46, %v2141_v55  ;;  %v3872_v34 = vld [vmem:[#allocation25_spill] sm:$0xff] }
 0x104   :  { %v322_v49 = vmul.f32 %v3870_v32, %v2233_v41  ;;  %v278_v18 = vadd.f32 %v276_v62, %v274_v63  ;;  %v279_v42 = vadd.f32 %v277_v25, %v275_v21  ;;  %v327_v57 = vmul.f32 %v308_v0, %v2081_v61  ;;  %v3877_v32 = vld [vmem:[#allocation27_spill] sm:$0xff] }
 0x105   :  { %3871 = vst [vmem:[#allocation26_spill] sm:$0xff] %v2785_v19  ;;  %v325_v48 = vadd.f32 %v323_v58, %v321_v33  ;;  %v328_v10 = vmul.f32 %v308_v0, %v2141_v55  ;;  %v355_v59 = vrot.slane %v62_v45, %v3745_v13  ;;  %v368_v24 = vmul.f32 %v3872_v34, %v1996_v8 }
 0x106   :  { %v326_v12 = vadd.f32 %v324_v44, %v322_v49  ;;  %v2796_v6 = vadd.f32 %v280_v39, %v278_v18  ;;  %v2798_v19 = vadd.f32 %v281_v47, %v279_v42  ;;  %v369_v62 = vmul.f32 %v3872_v34, %v2233_v41  ;;  %v3879_v18 = vld [vmem:[#allocation29_spill] sm:$0xff] }
 0x107   :  { %v2800_v46 = vadd.f32 %v327_v57, %v325_v48  ;;  %v372_v58 = vadd.f32 %v370_v31, %v368_v24  ;;  %v374_v44 = vmul.f32 %v355_v59, %v2081_v61  ;;  %v375_v63 = vmul.f32 %v355_v59, %v2141_v55 }
 0x108   :  { %3873 = vst [vmem:[#allocation28_spill] sm:$0xff] %v2796_v6  ;;  %3874 = vst [vmem:[#allocation30_spill] sm:$0xff] %v2798_v19  ;;  %v2804_v25 = vadd.f32 %v328_v10, %v326_v12  ;;  %v373_v21 = vadd.f32 %v371_v28, %v369_v62  ;;  %v402_v0 = vrot.slane %v62_v45, %v3746_v15  ;;  %v3892_v19 = vld [vmem:[#allocation35_spill] sm:$0xff] }
 0x109   :  { %3875 = vst [vmem:[#allocation20_spill] sm:$0xff] %v2800_v46  ;;  %v415_v33 = vmul.f32 %v3877_v32, %v1996_v8  ;;  %v416_v39 = vmul.f32 %v3877_v32, %v2233_v41  ;;  %v2813_v47 = vadd.f32 %v374_v44, %v372_v58  ;;  %v449_v49 = vrot.slane %v62_v45, %v3777_v23  ;;  %v3882_v58 = vld [vmem:[#allocation32_spill] sm:$0xff] }
 0x10a   :  { %3876 = vst [vmem:[#allocation21_spill] sm:$0xff] %v2804_v25  ;;  %v462_v31 = vmul.f32 %v3879_v18, %v1996_v8  ;;  %v463_v42 = vmul.f32 %v3879_v18, %v2233_v41  ;;  %v2820_v48 = vadd.f32 %v375_v63, %v373_v21  ;;  %v421_v12 = vmul.f32 %v402_v0, %v2081_v61  ;;  %v3887_v32 = vld [vmem:[#allocation36_spill] sm:$0xff] }
 0x10b   :  { %3878 = vst [vmem:[#allocation22_spill] sm:$0xff] %v2813_v47  ;;  %v419_v28 = vadd.f32 %v2730_v43, %v415_v33  ;;  %v420_v57 = vadd.f32 %v2734_v3, %v416_v39  ;;  %v422_v10 = vmul.f32 %v402_v0, %v2141_v55  ;;  %v468_v34 = vmul.f32 %v449_v49, %v2081_v61 }
 0x10c   :  { %3880 = vst [vmem:[#allocation23_spill] sm:$0xff] %v2820_v48  ;;  %v466_v59 = vadd.f32 %v2738_v14, %v462_v31  ;;  %v467_v45 = vadd.f32 %v2742_v7, %v463_v42  ;;  %v469_v62 = vmul.f32 %v449_v49, %v2141_v55  ;;  %v511_v44 = vmul.f32 %v3882_v58, %v3799_v51  ;;  %v3885_v14 = vld [vmem:[#allocation34_spill] sm:$0xff]  ;;  %v57_v31 = vpop.permute.xlu0 %56 }
 0x10d   :  { %v2829_v24 = vadd.f32 %v421_v12, %v419_v28  ;;  %v512_v43 = vmul.f32 %v3882_v58, %v2063_v2  ;;  %v2836_v3 = vadd.f32 %v422_v10, %v420_v57  ;;  %v558_v21 = vmul.f32 %v3885_v14, %v3799_v51  ;;  %v3888_v49 = vld [vmem:[#allocation38_spill] sm:$0xff]  ;;  %v3889_v28 = vld [vmem:[#allocation40_spill] sm:$0xff] }
 0x10e   :  { %v2838_v63 = vadd.f32 %v468_v34, %v466_v59  ;;  %v559_v7 = vmul.f32 %v3885_v14, %v2063_v2  ;;  %v2844_v0 = vadd.f32 %v469_v62, %v467_v45  ;;  %v605_v33 = vmul.f32 %v3887_v32, %v3799_v51 }
 0x10f   :  { %3881 = vst [vmem:[#allocation24_spill] sm:$0xff] %v2829_v24  ;;  %3883 = vst [vmem:[#allocation25_spill] sm:$0xff] %v2836_v3  ;;  %v606_v39 = vmul.f32 %v3887_v32, %v2063_v2  ;;  %v652_v18 = vmul.f32 %v3888_v49, %v3799_v51  ;;  %v653_v42 = vmul.f32 %v3888_v49, %v2063_v2  ;;  %v63_v14 = vsel %vm53_vm1, 0.0, %v57_v31 }
 0x110   :  { %3884 = vst [vmem:[#allocation27_spill] sm:$0xff] %v2838_v63  ;;  %3886 = vst [vmem:[#allocation29_spill] sm:$0xff] %v2844_v0  ;;  %v699_v57 = vmul.f32 %v3889_v28, %v3799_v51  ;;  %v700_v12 = vmul.f32 %v3889_v28, %v2063_v2  ;;  %v746_v10 = vmul.f32 %v1866_v53, %v3799_v51  ;;  %v3891_v0 = vld [vmem:[#allocation33_spill] sm:$0xff] }
 0x111   :  { %v747_v59 = vmul.f32 %v1866_v53, %v2063_v2  ;;  %v2864_v45 = vmul.f32 %v3772_v29, %v3799_v51  ;;  %v2868_v34 = vmul.f32 %v3772_v29, %v2063_v2  ;;  %v2872_v62 = vmul.f32 %v3787_v37, %v3799_v51  ;;  %v3890_v53 = vld [vmem:[#allocation31_spill] sm:$0xff] }
 0x112   :  { %v2876_v58 = vmul.f32 %v3787_v37, %v2063_v2  ;;  %v509_v32 = vmul.f32 %v3890_v53, %v1996_v8  ;;  %v510_v49 = vmul.f32 %v3890_v53, %v2233_v41  ;;  %v496_v29 = vrot.slane %v63_v14, %v1760_v17 }
 0x113   :  { %v543_v28 = vrot.slane %v63_v14, %v3741_v4  ;;  %v556_v3 = vmul.f32 %v3891_v0, %v1996_v8  ;;  %v557_v37 = vmul.f32 %v3891_v0, %v2233_v41  ;;  %v590_v31 = vrot.slane %v63_v14, %v3742_v5 }
 0x114   :  { %v513_v48 = vadd.f32 %v511_v44, %v509_v32  ;;  %v514_v25 = vadd.f32 %v512_v43, %v510_v49  ;;  %v603_v56 = vmul.f32 %v3892_v19, %v1996_v8  ;;  %v515_v30 = vmul.f32 %v496_v29, %v2081_v61 }
 0x115   :  { %v516_v53 = vmul.f32 %v496_v29, %v2141_v55  ;;  %v560_v60 = vadd.f32 %v558_v21, %v556_v3  ;;  %v561_v16 = vadd.f32 %v559_v7, %v557_v37  ;;  %v562_v63 = vmul.f32 %v543_v28, %v2081_v61 }
 0x116   :  { %v563_v24 = vmul.f32 %v543_v28, %v2141_v55  ;;  %v604_v0 = vmul.f32 %v3892_v19, %v2233_v41  ;;  %v607_v44 = vadd.f32 %v605_v33, %v603_v56  ;;  %v2899_v43 = vadd.f32 %v515_v30, %v513_v48  ;;  %v3898_v19 = vld [vmem:[#allocation37_spill] sm:$0xff] }
 0x117   :  { %v2901_v32 = vadd.f32 %v516_v53, %v514_v25  ;;  %v609_v49 = vmul.f32 %v590_v31, %v2081_v61  ;;  %v610_v47 = vmul.f32 %v590_v31, %v2141_v55  ;;  %v2905_v46 = vadd.f32 %v562_v63, %v560_v60 }
 0x118   :  { %3893 = vst [vmem:[#allocation32_spill] sm:$0xff] %v2899_v43  ;;  %v2907_v3 = vadd.f32 %v563_v24, %v561_v16  ;;  %v608_v21 = vadd.f32 %v606_v39, %v604_v0  ;;  %v637_v7 = vrot.slane %v63_v14, %v3743_v26  ;;  %v650_v56 = vmul.f32 %v3898_v19, %v1996_v8  ;;  %v3900_v24 = vld [vmem:[#allocation39_spill] sm:$0xff] }
 0x119   :  { %3894 = vst [vmem:[#allocation34_spill] sm:$0xff] %v2901_v32  ;;  %3895 = vst [vmem:[#allocation36_spill] sm:$0xff] %v2905_v46  ;;  %v2910_v29 = vadd.f32 %v609_v49, %v607_v44  ;;  %v651_v30 = vmul.f32 %v3898_v19, %v2233_v41  ;;  %v684_v25 = vrot.slane %v63_v14, %v3744_v9 }
 0x11a   :  { %3896 = vst [vmem:[#allocation38_spill] sm:$0xff] %v2907_v3  ;;  %v2917_v48 = vadd.f32 %v610_v47, %v608_v21  ;;  %v656_v60 = vmul.f32 %v637_v7, %v2081_v61  ;;  %v657_v16 = vmul.f32 %v637_v7, %v2141_v55  ;;  %v697_v63 = vmul.f32 %v3900_v24, %v1996_v8 }
 0x11b   :  { %3897 = vst [vmem:[#allocation40_spill] sm:$0xff] %v2910_v29  ;;  %v654_v33 = vadd.f32 %v652_v18, %v650_v56  ;;  %v655_v39 = vadd.f32 %v653_v42, %v651_v30  ;;  %v698_v28 = vmul.f32 %v3900_v24, %v2233_v41  ;;  %v703_v37 = vmul.f32 %v684_v25, %v2081_v61 }
 0x11c   :  { %3899 = vst [vmem:[#allocation31_spill] sm:$0xff] %v2917_v48  ;;  %v701_v31 = vadd.f32 %v699_v57, %v697_v63  ;;  %v704_v53 = vmul.f32 %v684_v25, %v2141_v55  ;;  %v731_v47 = vrot.slane %v63_v14, %v3745_v13  ;;  %v744_v0 = vmul.f32 %v1862_v52, %v1996_v8 }
 0x11d   :  { %v2930_v44 = vadd.f32 %v656_v60, %v654_v33  ;;  %v2932_v49 = vadd.f32 %v657_v16, %v655_v39  ;;  %v702_v21 = vadd.f32 %v700_v12, %v698_v28  ;;  %v745_v18 = vmul.f32 %v1862_v52, %v2233_v41  ;;  %v3905_v60 = vld [vmem:[#allocation41_spill] sm:$0xff] }
 0x11e   :  { %v2936_v42 = vadd.f32 %v703_v37, %v701_v31  ;;  %v748_v7 = vadd.f32 %v746_v10, %v744_v0  ;;  %v750_v57 = vmul.f32 %v731_v47, %v2081_v61  ;;  %v751_v19 = vmul.f32 %v731_v47, %v2141_v55  ;;  %v3907_v10 = vld [vmem:[#allocation43_spill] sm:$0xff] }
 0x11f   :  { %3901 = vst [vmem:[#allocation33_spill] sm:$0xff] %v2930_v44  ;;  %3902 = vst [vmem:[#allocation35_spill] sm:$0xff] %v2932_v49  ;;  %v2940_v56 = vadd.f32 %v704_v53, %v702_v21  ;;  %v749_v30 = vadd.f32 %v747_v59, %v745_v18  ;;  %v778_v25 = vrot.slane %v63_v14, %v3746_v15  ;;  %v3910_v21 = vld [vmem:[#allocation53_spill] sm:$0xff]  ;;  %v3926_v49 = vld [vmem:[#allocation52_spill] sm:$0xff] }
 0x120   :  { %3903 = vst [vmem:[#allocation37_spill] sm:$0xff] %v2936_v42  ;;  %v791_v16 = vmul.f32 %v3905_v60, %v1996_v8  ;;  %v2945_v24 = vadd.f32 %v750_v57, %v748_v7  ;;  %v792_v52 = vmul.f32 %v3905_v60, %v2233_v41  ;;  %v825_v12 = vrot.slane %v63_v14, %v3777_v23 }
 0x121   :  { %3904 = vst [vmem:[#allocation39_spill] sm:$0xff] %v2940_v56  ;;  %v838_v63 = vmul.f32 %v3907_v10, %v1996_v8  ;;  %v2952_v33 = vadd.f32 %v751_v19, %v749_v30  ;;  %v797_v59 = vmul.f32 %v778_v25, %v2081_v61  ;;  %v798_v28 = vmul.f32 %v778_v25, %v2141_v55  ;;  %v3914_v25 = vld [vmem:[#allocation54_spill] sm:$0xff] }
 0x122   :  { %3906 = vst [vmem:[#allocation41_spill] sm:$0xff] %v2945_v24  ;;  %v795_v39 = vadd.f32 %v2864_v45, %v791_v16  ;;  %v796_v37 = vadd.f32 %v2868_v34, %v792_v52  ;;  %v839_v31 = vmul.f32 %v3907_v10, %v2233_v41  ;;  %v844_v14 = vmul.f32 %v825_v12, %v2081_v61  ;;  %v3915_v52 = vld [vmem:[#allocation46_spill] sm:$0xff] }
 0x123   :  { %3908 = vst [vmem:[#allocation43_spill] sm:$0xff] %v2952_v33  ;;  %v842_v53 = vadd.f32 %v2872_v62, %v838_v63  ;;  %v845_v0 = vmul.f32 %v825_v12, %v2141_v55  ;;  %v885_v45 = vmul.f32 %v3910_v21, %v1996_v8  ;;  %v886_v18 = vmul.f32 %v3910_v21, %v2233_v41  ;;  %v3913_v62 = vld [vmem:[#allocation45_spill] sm:$0xff] }
 0x124   :  { %v2962_v47 = vadd.f32 %v797_v59, %v795_v39  ;;  %v2969_v7 = vadd.f32 %v798_v28, %v796_v37  ;;  %v843_v34 = vadd.f32 %v2876_v58, %v839_v31  ;;  %v887_v19 = vmul.f32 %v3913_v62, %v3799_v51  ;;  %v3917_v39 = vld [vmem:[#allocation55_spill] sm:$0xff] }
 0x125   :  { %v2972_v57 = vadd.f32 %v844_v14, %v842_v53  ;;  %v888_v30 = vmul.f32 %v3913_v62, %v2063_v2  ;;  %v932_v60 = vmul.f32 %v3914_v25, %v1996_v8  ;;  %v933_v16 = vmul.f32 %v3914_v25, %v2233_v41  ;;  %v3918_v53 = vld [vmem:[#allocation47_spill] sm:$0xff] }
 0x126   :  { %3909 = vst [vmem:[#allocation122_spill] sm:$0xff] %v2962_v47  ;;  %3911 = vst [vmem:[#allocation53_spill] sm:$0xff] %v2969_v7  ;;  %v934_v12 = vmul.f32 %v3915_v52, %v3799_v51  ;;  %v2984_v10 = vadd.f32 %v845_v0, %v843_v34  ;;  %v889_v58 = vadd.f32 %v887_v19, %v885_v45  ;;  %v3923_v7 = vld [vmem:[#allocation59_spill] sm:$0xff] }
 0x127   :  { %3912 = vst [vmem:[#allocation123_spill] sm:$0xff] %v2972_v57  ;;  %v935_v63 = vmul.f32 %v3915_v52, %v2063_v2  ;;  %v979_v59 = vmul.f32 %v3917_v39, %v1996_v8  ;;  %v890_v28 = vadd.f32 %v888_v30, %v886_v18  ;;  %v980_v31 = vmul.f32 %v3917_v39, %v2233_v41  ;;  %v3919_v18 = vld [vmem:[#allocation48_spill] sm:$0xff]  ;;  %v3920_v52 = vld [vmem:[#allocation49_spill] sm:$0xff] }
 0x128   :  { %3916 = vst [vmem:[#allocation45_spill] sm:$0xff] %v2984_v10  ;;  %v936_v37 = vadd.f32 %v934_v12, %v932_v60  ;;  %v981_v14 = vmul.f32 %v3918_v53, %v3799_v51  ;;  %v982_v0 = vmul.f32 %v3918_v53, %v2063_v2  ;;  %v1026_v45 = vmul.f32 %v3803_v50, %v1996_v8 }
 0x129   :  { %v937_v21 = vadd.f32 %v935_v63, %v933_v16  ;;  %v1027_v34 = vmul.f32 %v3803_v50, %v2233_v41  ;;  %v1028_v19 = vmul.f32 %v3919_v18, %v3799_v51  ;;  %v1029_v30 = vmul.f32 %v3919_v18, %v2063_v2 }
 0x12a   :  { %v983_v62 = vadd.f32 %v981_v14, %v979_v59  ;;  %v1073_v25 = vmul.f32 %v3810_v36, %v1996_v8  ;;  %v984_v60 = vadd.f32 %v982_v0, %v980_v31  ;;  %v1074_v16 = vmul.f32 %v3810_v36, %v2233_v41  ;;  %v3921_v59 = vld [vmem:[#allocation58_spill] sm:$0xff] }
 0x12b   :  { %v1075_v12 = vmul.f32 %v3920_v52, %v3799_v51  ;;  %v1076_v50 = vmul.f32 %v3920_v52, %v2063_v2  ;;  %v1030_v63 = vadd.f32 %v1028_v19, %v1026_v45  ;;  %v1031_v39 = vadd.f32 %v1029_v30, %v1027_v34  ;;  %v3922_v31 = vld [vmem:[#allocation50_spill] sm:$0xff]  ;;  %v3924_v34 = vld [vmem:[#allocation51_spill] sm:$0xff] }
 0x12c   :  { %v1120_v53 = vmul.f32 %v3921_v59, %v1996_v8  ;;  %v1121_v14 = vmul.f32 %v3921_v59, %v2233_v41  ;;  %v1122_v0 = vmul.f32 %v3922_v31, %v3799_v51  ;;  %v1123_v36 = vmul.f32 %v3922_v31, %v2063_v2 }
 0x12d   :  { %v1077_v18 = vadd.f32 %v1075_v12, %v1073_v25  ;;  %v1078_v10 = vadd.f32 %v1076_v50, %v1074_v16  ;;  %v1167_v33 = vmul.f32 %v3923_v7, %v1996_v8  ;;  %v1168_v45 = vmul.f32 %v3923_v7, %v2233_v41  ;;  %v59_v25 = vpop.permute.xlu1 %58  ;;  %v3925_v12 = vld [vmem:[#allocation60_spill] sm:$0xff] }
 0x12e   :  { %v1169_v19 = vmul.f32 %v3924_v34, %v3799_v51  ;;  %v1170_v30 = vmul.f32 %v3924_v34, %v2063_v2  ;;  %v1124_v16 = vadd.f32 %v1122_v0, %v1120_v53  ;;  %v1125_v52 = vadd.f32 %v1123_v36, %v1121_v14  ;;  %v3927_v53 = vld [vmem:[#allocation69_spill] sm:$0xff] }
 0x12f   :  { %v1214_v50 = vmul.f32 %v3925_v12, %v1996_v8  ;;  %v1215_v59 = vmul.f32 %v3925_v12, %v2233_v41  ;;  %v1216_v7 = vmul.f32 %v3926_v49, %v3799_v51  ;;  %v1217_v48 = vmul.f32 %v3926_v49, %v2063_v2  ;;  %v3928_v36 = vld [vmem:[#allocation61_spill] sm:$0xff] }
 0x130   :  { %v1171_v31 = vadd.f32 %v1169_v19, %v1167_v33  ;;  %v1172_v56 = vadd.f32 %v1170_v30, %v1168_v45  ;;  %v64_v34 = vsel %vm53_vm1, 0.0, %v59_v25  ;;  %v1261_v14 = vmul.f32 %v3927_v53, %v1996_v8 }
 0x131   :  { %v1262_v0 = vmul.f32 %v3927_v53, %v2233_v41  ;;  %v1263_v12 = vmul.f32 %v3928_v36, %v3799_v51  ;;  %v1218_v33 = vadd.f32 %v1216_v7, %v1214_v50  ;;  %v1219_v45 = vadd.f32 %v1217_v48, %v1215_v59 }
 0x132   :  { %v872_v19 = vrot.slane %v64_v34, %v1760_v17  ;;  %v919_v30 = vrot.slane %v64_v34, %v3741_v4  ;;  %v966_v49 = vrot.slane %v64_v34, %v3742_v5  ;;  %v1013_v3 = vrot.slane %v64_v34, %v3743_v26 }
 0x133   :  { %v1060_v25 = vrot.slane %v64_v34, %v3744_v9  ;;  %v1107_v32 = vrot.slane %v64_v34, %v3745_v13 }
 0x134   :  { %v891_v57 = vmul.f32 %v872_v19, %v2081_v61  ;;  %v892_v53 = vmul.f32 %v872_v19, %v2141_v55  ;;  %v938_v47 = vmul.f32 %v919_v30, %v2081_v61  ;;  %v939_v48 = vmul.f32 %v919_v30, %v2141_v55 }
 0x135   :  { %v985_v50 = vmul.f32 %v966_v49, %v2081_v61  ;;  %v986_v59 = vmul.f32 %v966_v49, %v2141_v55  ;;  %v1032_v7 = vmul.f32 %v1013_v3, %v2081_v61  ;;  %v1033_v24 = vmul.f32 %v1013_v3, %v2141_v55 }
 0x136   :  { %v3058_v42 = vadd.f32 %v891_v57, %v889_v58  ;;  %v3060_v44 = vadd.f32 %v892_v53, %v890_v28  ;;  %v3062_v29 = vadd.f32 %v938_v47, %v936_v37  ;;  %v3064_v46 = vadd.f32 %v939_v48, %v937_v21 }
 0x137   :  { %v3066_v19 = vadd.f32 %v985_v50, %v983_v62  ;;  %v3068_v43 = vadd.f32 %v986_v59, %v984_v60  ;;  %v3070_v30 = vadd.f32 %v1032_v7, %v1030_v63  ;;  %v3072_v6 = vadd.f32 %v1033_v24, %v1031_v39  ;;  %v3932_v7 = vld [vmem:[#allocation71_spill] sm:$0xff] }
 0x138   :  { %v1079_v49 = vmul.f32 %v1060_v25, %v2081_v61  ;;  %v1080_v3 = vmul.f32 %v1060_v25, %v2141_v55  ;;  %v1126_v57 = vmul.f32 %v1107_v32, %v2081_v61  ;;  %v1127_v58 = vmul.f32 %v1107_v32, %v2141_v55 }
 0x139   :  { %v1154_v47 = vrot.slane %v64_v34, %v3746_v15  ;;  %v1201_v28 = vrot.slane %v64_v34, %v3777_v23  ;;  %v1264_v37 = vmul.f32 %v3928_v36, %v2063_v2  ;;  %v3082_v21 = vadd.f32 %v1263_v12, %v1261_v14  ;;  %v3929_v14 = vld [vmem:[#allocation70_spill] sm:$0xff] }
 0x13a   :  { %v3084_v62 = vadd.f32 %v1079_v49, %v1077_v18  ;;  %v3086_v24 = vadd.f32 %v1080_v3, %v1078_v10  ;;  %v3088_v60 = vadd.f32 %v1126_v57, %v1124_v16  ;;  %v3090_v63 = vadd.f32 %v1127_v58, %v1125_v52  ;;  %v3930_v16 = vld [vmem:[#allocation62_spill] sm:$0xff]  ;;  %v3933_v57 = vld [vmem:[#allocation63_spill] sm:$0xff] }
 0x13b   :  { %v1173_v39 = vmul.f32 %v1154_v47, %v2081_v61  ;;  %v1174_v32 = vmul.f32 %v1154_v47, %v2141_v55  ;;  %v1220_v25 = vmul.f32 %v1201_v28, %v2081_v61  ;;  %v1221_v34 = vmul.f32 %v1201_v28, %v2141_v55  ;;  %v3934_v47 = vld [vmem:[#allocation64_spill] sm:$0xff] }
 0x13c   :  { %v3096_v53 = vadd.f32 %v1264_v37, %v1262_v0  ;;  %v1308_v18 = vmul.f32 %v3929_v14, %v1996_v8  ;;  %v1309_v10 = vmul.f32 %v3929_v14, %v2233_v41  ;;  %v1310_v52 = vmul.f32 %v3930_v16, %v3799_v51  ;;  %v3935_v14 = vld [vmem:[#allocation65_spill] sm:$0xff] }
 0x13d   :  { %v3104_v36 = vadd.f32 %v1173_v39, %v1171_v31  ;;  %v3106_v12 = vadd.f32 %v1174_v32, %v1172_v56  ;;  %v3108_v48 = vadd.f32 %v1220_v25, %v1218_v33  ;;  %v3110_v50 = vadd.f32 %v1221_v34, %v1219_v45 }
 0x13e   :  { %v1311_v0 = vmul.f32 %v3930_v16, %v2063_v2  ;;  %v1312_v59 = vadd.f32 %v1310_v52, %v1308_v18  ;;  %v1355_v49 = vmul.f32 %v3932_v7, %v1996_v8  ;;  %v1356_v3 = vmul.f32 %v3932_v7, %v2233_v41 }
 0x13f   :  { %3931 = vst [vmem:[#allocation54_spill] sm:$0xff] %v3110_v50  ;;  %v1357_v31 = vmul.f32 %v3933_v57, %v3799_v51  ;;  %v1358_v56 = vmul.f32 %v3933_v57, %v2063_v2  ;;  %v1402_v33 = vmul.f32 %v3841_v11, %v1996_v8  ;;  %v1403_v45 = vmul.f32 %v3841_v11, %v2233_v41 }
 0x140   :  { %v1313_v58 = vadd.f32 %v1311_v0, %v1309_v10  ;;  %v1404_v28 = vmul.f32 %v3934_v47, %v3799_v51  ;;  %v1405_v37 = vmul.f32 %v3934_v47, %v2063_v2  ;;  %v1449_v39 = vmul.f32 %v3842_v35, %v1996_v8  ;;  %v61_v47 = vpop.permute.xlu0 %60 }
 0x141   :  { %v1359_v32 = vadd.f32 %v1357_v31, %v1355_v49  ;;  %v1360_v25 = vadd.f32 %v1358_v56, %v1356_v3  ;;  %v1450_v34 = vmul.f32 %v3842_v35, %v2233_v41  ;;  %v1451_v18 = vmul.f32 %v3935_v14, %v3799_v51  ;;  %v3936_v49 = vld [vmem:[#allocation66_spill] sm:$0xff] }
 0x142   :  { %v1406_v16 = vadd.f32 %v1404_v28, %v1402_v33  ;;  %v1407_v11 = vadd.f32 %v1405_v37, %v1403_v45  ;;  %v1452_v10 = vmul.f32 %v3935_v14, %v2063_v2  ;;  %v1496_v52 = vmul.f32 %v3843_v27, %v1996_v8  ;;  %v3937_v33 = vld [vmem:[#allocation67_spill] sm:$0xff]  ;;  %v3152_v28 = vpop.permute.xlu1 %124 }
 0x143   :  { %v1453_v0 = vadd.f32 %v1451_v18, %v1449_v39  ;;  %v1497_v7 = vmul.f32 %v3843_v27, %v2233_v41  ;;  %v1498_v3 = vmul.f32 %v3936_v49, %v3799_v51  ;;  %v1499_v35 = vmul.f32 %v3936_v49, %v2063_v2 }
 0x144   :  { %v1454_v57 = vadd.f32 %v1452_v10, %v1450_v34  ;;  %v1543_v31 = vmul.f32 %v3846_v54, %v1996_v8  ;;  %v1544_v56 = vmul.f32 %v3846_v54, %v2233_v41  ;;  %v1545_v45 = vmul.f32 %v3937_v33, %v3799_v51  ;;  %v3938_v54 = vld [vmem:[#allocation68_spill] sm:$0xff] }
 0x145   :  { %v1500_v27 = vadd.f32 %v1498_v3, %v1496_v52  ;;  %v1501_v37 = vadd.f32 %v1499_v35, %v1497_v7  ;;  %v1546_v39 = vmul.f32 %v3937_v33, %v2063_v2  ;;  %v1590_v34 = vmul.f32 %v3851_v1, %v1996_v8  ;;  %v3939_v7 = vld [vmem:[#allocation101_spill] sm:$0xff] }
 0x146   :  { %v1547_v14 = vadd.f32 %v1545_v45, %v1543_v31  ;;  %v1591_v18 = vmul.f32 %v3851_v1, %v2233_v41  ;;  %v1592_v10 = vmul.f32 %v3938_v54, %v3799_v51  ;;  %v1593_v49 = vmul.f32 %v3938_v54, %v2063_v2 }
 0x147   :  { %v1548_v50 = vadd.f32 %v1546_v39, %v1544_v56  ;;  %v65_v52 = vsel %vm53_vm1, 0.0, %v61_v47  ;;  %v132_v3 = vadd.f32 %v3152_v28, %v3939_v7  ;;  %v144_v8 = vadd.f32 %v2766_v20, %v3152_v28 }
 0x148   :  { %v1594_v35 = vadd.f32 %v1592_v10, %v1590_v34  ;;  %v1595_v31 = vadd.f32 %v1593_v49, %v1591_v18  ;;  %v1248_v41 = vrot.slane %v65_v52, %v1760_v17  ;;  %v1295_v1 = vrot.slane %v65_v52, %v3741_v4 }
 0x149   :  { %v1342_v51 = vrot.slane %v65_v52, %v3742_v5  ;;  %v1389_v2 = vrot.slane %v65_v52, %v3743_v26  ;;  %v1436_v56 = vrot.slane %v65_v52, %v3744_v9  ;;  %v1483_v38 = vrot.slane %v65_v52, %v3745_v13 }
 0x14a   :  { %v1267_v33 = vmul.f32 %v1248_v41, %v2081_v61  ;;  %v1268_v45 = vmul.f32 %v1248_v41, %v2141_v55  ;;  %v1314_v20 = vmul.f32 %v1295_v1, %v2081_v61  ;;  %v1315_v47 = vmul.f32 %v1295_v1, %v2141_v55 }
 0x14b   :  { %v1361_v17 = vmul.f32 %v1342_v51, %v2081_v61  ;;  %v1362_v4 = vmul.f32 %v1342_v51, %v2141_v55  ;;  %v1408_v5 = vmul.f32 %v1389_v2, %v2081_v61  ;;  %v1409_v26 = vmul.f32 %v1389_v2, %v2141_v55 }
 0x14c   :  { %v3185_v9 = vadd.f32 %v1267_v33, %v3082_v21  ;;  %v3188_v13 = vadd.f32 %v1268_v45, %v3096_v53  ;;  %v3190_v39 = vadd.f32 %v1314_v20, %v1312_v59  ;;  %v3192_v34 = vadd.f32 %v1315_v47, %v1313_v58  ;;  %v3942_v20 = vld [vmem:[#allocation107_spill] sm:$0xff]  ;;  %v3943_v47 = vld [vmem:[#allocation28_spill] sm:$0xff] }
 0x14d   :  { %v3194_v18 = vadd.f32 %v1361_v17, %v1359_v32  ;;  %v3196_v54 = vadd.f32 %v1362_v4, %v1360_v25  ;;  %v3198_v10 = vadd.f32 %v1408_v5, %v1406_v16  ;;  %v3200_v49 = vadd.f32 %v1409_v26, %v1407_v11  ;;  %v3940_v25 = vld [vmem:[#allocation103_spill] sm:$0xff]  ;;  %v3944_v4 = vld [vmem:[#allocation109_spill] sm:$0xff] }
 0x14e   :  { %v1455_v7 = vmul.f32 %v1436_v56, %v2081_v61  ;;  %v1456_v21 = vmul.f32 %v1436_v56, %v2141_v55  ;;  %v1502_v41 = vmul.f32 %v1483_v38, %v2081_v61  ;;  %v1503_v53 = vmul.f32 %v1483_v38, %v2141_v55 }
 0x14f   :  { %v1530_v59 = vrot.slane %v65_v52, %v3746_v15  ;;  %v1577_v58 = vrot.slane %v65_v52, %v3777_v23  ;;  %v146_v32 = vmax.f32 %v132_v3, %v144_v8  ;;  %v178_v1 = vadd.f32 %v3940_v25, %v3152_v28  ;;  %v3949_v25 = vld [vmem:[#allocation24_spill] sm:$0xff] }
 0x150   :  { %v3210_v16 = vadd.f32 %v1455_v7, %v1453_v0  ;;  %v3212_v11 = vadd.f32 %v1456_v21, %v1454_v57  ;;  %v3214_v51 = vadd.f32 %v1502_v41, %v1500_v27  ;;  %v3216_v2 = vadd.f32 %v1503_v53, %v1501_v37  ;;  %v3941_v0 = vld [vmem:[#allocation105_spill] sm:$0xff] }
 0x151   :  { %v1549_v56 = vmul.f32 %v1530_v59, %v2081_v61  ;;  %v1550_v38 = vmul.f32 %v1530_v59, %v2141_v55  ;;  %v1596_v15 = vmul.f32 %v1577_v58, %v2081_v61  ;;  %v1597_v23 = vmul.f32 %v1577_v58, %v2141_v55  ;;  %v3948_v53 = vld [vmem:[#allocation113_spill] sm:$0xff] }
 0x152   :  { %v148_v52 = vmax.f32 %v146_v32, 0.0  ;;  %v190_v3 = vadd.f32 %v2770_v22, %v3152_v28  ;;  %v225_v57 = vadd.f32 %v3941_v0, %v3152_v28  ;;  %v237_v27 = vadd.f32 %v2775_v40, %v3152_v28 }
 0x153   :  { %v3228_v37 = vadd.f32 %v1549_v56, %v1547_v14  ;;  %v3230_v8 = vadd.f32 %v1550_v38, %v1548_v50  ;;  %v3232_v33 = vadd.f32 %v1596_v15, %v1594_v35  ;;  %v3234_v45 = vadd.f32 %v1597_v23, %v1595_v31  ;;  %v3945_v14 = vld [vmem:[#allocation20_spill] sm:$0xff]  ;;  %v3946_v35 = vld [vmem:[#allocation111_spill] sm:$0xff]  ;;  %v3947_v31 = vld [vmem:[#allocation22_spill] sm:$0xff] }
 0x154   :  { %150 = vst [vmem:[#allocation5] sm:$0xff] %v148_v52  ;;  %v192_v55 = vmax.f32 %v178_v1, %v190_v3  ;;  %v239_v61 = vmax.f32 %v225_v57, %v237_v27  ;;  %v272_v22 = vadd.f32 %v3942_v20, %v3152_v28  ;;  %v284_v17 = vadd.f32 %v3943_v47, %v3152_v28  ;;  %v3950_v56 = vld [vmem:[#allocation115_spill] sm:$0xff]  ;;  %v3952_v3 = vld [vmem:[#allocation8_spill] sm:$0xff] }
 0x155   :  { %v319_v40 = vadd.f32 %v3944_v4, %v3152_v28  ;;  %v331_v50 = vadd.f32 %v3945_v14, %v3152_v28  ;;  %v366_v5 = vadd.f32 %v3946_v35, %v3152_v28  ;;  %v378_v26 = vadd.f32 %v3947_v31, %v3152_v28  ;;  %v3951_v23 = vld [vmem:[#allocation27_spill] sm:$0xff]  ;;  %v3953_v57 = vld [vmem:[#allocation32_spill] sm:$0xff] }
 0x156   :  { %v194_v7 = vmax.f32 %v192_v55, 0.0  ;;  %v241_v21 = vmax.f32 %v239_v61, 0.0  ;;  %v286_v41 = vmax.f32 %v272_v22, %v284_v17  ;;  %v413_v59 = vadd.f32 %v3948_v53, %v3152_v28  ;;  %v3954_v22 = vld [vmem:[#allocation10_spill] sm:$0xff]  ;;  %v3957_v31 = vld [vmem:[#allocation40_spill] sm:$0xff] }
 0x157   :  { %v333_v58 = vmax.f32 %v319_v40, %v331_v50  ;;  %v380_v32 = vmax.f32 %v366_v5, %v378_v26  ;;  %v425_v1 = vadd.f32 %v3949_v25, %v3152_v28  ;;  %v460_v38 = vadd.f32 %v3950_v56, %v3152_v28  ;;  %v3955_v40 = vld [vmem:[#allocation36_spill] sm:$0xff]  ;;  %v3960_v25 = vld [vmem:[#allocation79_spill] sm:$0xff] }
 0x158   :  { %197 = vst [vmem:[#allocation5 + $0x10] sm:$0xff] %v194_v7  ;;  %244 = vst [vmem:[#allocation5 + $0x20] sm:$0xff] %v241_v21  ;;  %v288_v15 = vmax.f32 %v286_v41, 0.0  ;;  %v472_v52 = vadd.f32 %v3951_v23, %v3152_v28  ;;  %v507_v0 = vadd.f32 %v3952_v3, %v3152_v28  ;;  %v519_v27 = vadd.f32 %v3953_v57, %v3152_v28  ;;  %v3956_v50 = vld [vmem:[#allocation12_spill] sm:$0xff]  ;;  %v3958_v7 = vld [vmem:[#allocation78_spill] sm:$0xff] }
 0x159   :  { %v335_v55 = vmax.f32 %v333_v58, 0.0  ;;  %v382_v61 = vmax.f32 %v380_v32, 0.0  ;;  %v427_v20 = vmax.f32 %v413_v59, %v425_v1  ;;  %v554_v47 = vadd.f32 %v3954_v22, %v3152_v28  ;;  %v3959_v41 = vld [vmem:[#allocation33_spill] sm:$0xff] }
 0x15a   :  { %291 = vst [vmem:[#allocation5 + $0x30] sm:$0xff] %v288_v15  ;;  %v474_v17 = vmax.f32 %v460_v38, %v472_v52  ;;  %v521_v4 = vmax.f32 %v507_v0, %v519_v27  ;;  %v566_v14 = vadd.f32 %v3955_v40, %v3152_v28  ;;  %v601_v35 = vadd.f32 %v3956_v50, %v3152_v28  ;;  %v3961_v15 = vld [vmem:[#allocation37_spill] sm:$0xff]  ;;  %v3962_v52 = vld [vmem:[#allocation80_spill] sm:$0xff]  ;;  %v3966_v40 = vld [vmem:[#allocation87_spill] sm:$0xff] }
 0x15b   :  { %338 = vst [vmem:[#allocation5 + $0x40] sm:$0xff] %v335_v55  ;;  %385 = vst [vmem:[#allocation5 + $0x50] sm:$0xff] %v382_v61  ;;  %v429_v5 = vmax.f32 %v427_v20, 0.0  ;;  %v613_v26 = vadd.f32 %v3957_v31, %v3152_v28  ;;  %v648_v21 = vadd.f32 %v3958_v7, %v3152_v28  ;;  %v660_v53 = vadd.f32 %v3959_v41, %v3152_v28  ;;  %v3963_v57 = vld [vmem:[#allocation41_spill] sm:$0xff]  ;;  %v3965_v20 = vld [vmem:[#allocation122_spill] sm:$0xff] }
 0x15c   :  { %v476_v59 = vmax.f32 %v474_v17, 0.0  ;;  %v523_v58 = vmax.f32 %v521_v4, 0.0  ;;  %v568_v32 = vmax.f32 %v554_v47, %v566_v14  ;;  %v695_v1 = vadd.f32 %v3960_v25, %v3152_v28  ;;  %v3964_v55 = vld [vmem:[#allocation81_spill] sm:$0xff] }
 0x15d   :  { %432 = vst [vmem:[#allocation5 + $0x60] sm:$0xff] %v429_v5  ;;  %v615_v56 = vmax.f32 %v601_v35, %v613_v26  ;;  %v662_v38 = vmax.f32 %v648_v21, %v660_v53  ;;  %v707_v23 = vadd.f32 %v3961_v15, %v3152_v28  ;;  %v742_v3 = vadd.f32 %v3962_v52, %v3152_v28  ;;  %v3967_v5 = vld [vmem:[#allocation123_spill] sm:$0xff]  ;;  %v3968_v26 = vld [vmem:[#allocation89_spill] sm:$0xff] }
 0x15e   :  { %479 = vst [vmem:[#allocation5 + $0x70] sm:$0xff] %v476_v59  ;;  %526 = vst [vmem:[#allocation5 + $0x80] sm:$0xff] %v523_v58  ;;  %v570_v0 = vmax.f32 %v568_v32, 0.0  ;;  %v754_v27 = vadd.f32 %v3963_v57, %v3152_v28  ;;  %v789_v61 = vadd.f32 %v3964_v55, %v3152_v28  ;;  %v801_v22 = vadd.f32 %v3965_v20, %v3152_v28  ;;  %v3969_v53 = vld [vmem:[#allocation93_spill] sm:$0xff]  ;;  %v3972_v57 = vld [vmem:[#allocation98_spill] sm:$0xff] }
 0x15f   :  { %v617_v47 = vmax.f32 %v615_v56, 0.0  ;;  %v664_v17 = vmax.f32 %v662_v38, 0.0  ;;  %v709_v4 = vmax.f32 %v695_v1, %v707_v23  ;;  %v836_v14 = vadd.f32 %v3966_v40, %v3152_v28  ;;  %v3970_v56 = vld [vmem:[#allocation96_spill] sm:$0xff] }
 0x160   :  { %573 = vst [vmem:[#allocation5 + $0x90] sm:$0xff] %v570_v0  ;;  %v756_v50 = vmax.f32 %v742_v3, %v754_v27  ;;  %v803_v35 = vmax.f32 %v789_v61, %v801_v22  ;;  %v848_v31 = vadd.f32 %v3967_v5, %v3152_v28  ;;  %v883_v7 = vadd.f32 %v3968_v26, %v3152_v28 }
 0x161   :  { %620 = vst [vmem:[#allocation5 + $0xa0] sm:$0xff] %v617_v47  ;;  %667 = vst [vmem:[#allocation5 + $0xb0] sm:$0xff] %v664_v17  ;;  %v711_v21 = vmax.f32 %v709_v4, 0.0  ;;  %v895_v41 = vadd.f32 %v3058_v42, %v3152_v28  ;;  %v930_v59 = vadd.f32 %v3969_v53, %v3152_v28  ;;  %v942_v58 = vadd.f32 %v3062_v29, %v3152_v28  ;;  %v3971_v42 = vld [vmem:[#allocation42_spill] sm:$0xff] }
 0x162   :  { %v758_v32 = vmax.f32 %v756_v50, 0.0  ;;  %v805_v25 = vmax.f32 %v803_v35, 0.0  ;;  %v850_v1 = vmax.f32 %v836_v14, %v848_v31  ;;  %v977_v38 = vadd.f32 %v3970_v56, %v3152_v28  ;;  %v3975_v35 = vld [vmem:[#allocation44_spill] sm:$0xff] }
 0x163   :  { %714 = vst [vmem:[#allocation5 + $0xc0] sm:$0xff] %v711_v21  ;;  %v897_v15 = vmax.f32 %v883_v7, %v895_v41  ;;  %v944_v23 = vmax.f32 %v930_v59, %v942_v58  ;;  %v989_v52 = vadd.f32 %v3066_v19, %v3152_v28  ;;  %v1024_v3 = vadd.f32 %v3971_v42, %v3152_v28  ;;  %v3973_v19 = vld [vmem:[#allocation84_spill] sm:$0xff] }
 0x164   :  { %761 = vst [vmem:[#allocation5 + $0xd0] sm:$0xff] %v758_v32  ;;  %808 = vst [vmem:[#allocation5 + $0xe0] sm:$0xff] %v805_v25  ;;  %v852_v0 = vmax.f32 %v850_v1, 0.0  ;;  %v1036_v29 = vadd.f32 %v3070_v30, %v3152_v28  ;;  %v1071_v27 = vadd.f32 %v3972_v57, %v3152_v28  ;;  %v1083_v55 = vadd.f32 %v3084_v62, %v3152_v28  ;;  %v3974_v30 = vld [vmem:[#allocation99_spill] sm:$0xff]  ;;  %v3978_v1 = vld [vmem:[#allocation118_spill] sm:$0xff] }
 0x165   :  { %v899_v61 = vmax.f32 %v897_v15, 0.0  ;;  %v946_v20 = vmax.f32 %v944_v23, 0.0  ;;  %v991_v22 = vmax.f32 %v977_v38, %v989_v52  ;;  %v1118_v47 = vadd.f32 %v3973_v19, %v3152_v28 }
 0x166   :  { %855 = vst [vmem:[#allocation5 + $0xf0] sm:$0xff] %v852_v0  ;;  %v1038_v17 = vmax.f32 %v1024_v3, %v1036_v29  ;;  %v1085_v4 = vmax.f32 %v1071_v27, %v1083_v55  ;;  %v1130_v40 = vadd.f32 %v3088_v60, %v3152_v28  ;;  %v1165_v14 = vadd.f32 %v3974_v30, %v3152_v28  ;;  %v3976_v60 = vld [vmem:[#allocation73_spill] sm:$0xff]  ;;  %v3981_v55 = vld [vmem:[#allocation120_spill] sm:$0xff] }
 0x167   :  { %902 = vst [vmem:[#allocation5 + $0x100] sm:$0xff] %v899_v61  ;;  %949 = vst [vmem:[#allocation5 + $0x110] sm:$0xff] %v946_v20  ;;  %v993_v50 = vmax.f32 %v991_v22, 0.0  ;;  %v1177_v62 = vadd.f32 %v3104_v36, %v3152_v28  ;;  %v1212_v5 = vadd.f32 %v3975_v35, %v3152_v28  ;;  %v1224_v31 = vadd.f32 %v3108_v48, %v3152_v28  ;;  %v3977_v36 = vld [vmem:[#allocation57_spill] sm:$0xff]  ;;  %v3344_v22 = vpop.permute.xlu0 %129  ;;  %v3984_v35 = vld [vmem:[#allocation102_spill] sm:$0xff] }
 0x168   :  { %v1040_v26 = vmax.f32 %v1038_v17, 0.0  ;;  %v1087_v7 = vmax.f32 %v1085_v4, 0.0  ;;  %v1132_v21 = vmax.f32 %v1118_v47, %v1130_v40  ;;  %v1259_v41 = vadd.f32 %v3976_v60, %v3152_v28  ;;  %v3982_v17 = vld [vmem:[#allocation77_spill] sm:$0xff] }
 0x169   :  { %996 = vst [vmem:[#allocation5 + $0x120] sm:$0xff] %v993_v50  ;;  %v1179_v53 = vmax.f32 %v1165_v14, %v1177_v62  ;;  %v1226_v59 = vmax.f32 %v1212_v5, %v1224_v31  ;;  %v1271_v58 = vadd.f32 %v3185_v9, %v3152_v28  ;;  %v1306_v32 = vadd.f32 %v3977_v36, %v3152_v28  ;;  %v3979_v9 = vld [vmem:[#allocation72_spill] sm:$0xff]  ;;  %v3985_v31 = vld [vmem:[#allocation18_spill] sm:$0xff] }
 0x16a   :  { %1043 = vst [vmem:[#allocation5 + $0x130] sm:$0xff] %v1040_v26  ;;  %1090 = vst [vmem:[#allocation5 + $0x140] sm:$0xff] %v1087_v7  ;;  %v1134_v25 = vmax.f32 %v1132_v21, 0.0  ;;  %v1318_v48 = vadd.f32 %v3190_v39, %v3152_v28  ;;  %v1353_v56 = vadd.f32 %v3978_v1, %v3152_v28  ;;  %v1365_v38 = vadd.f32 %v3194_v18, %v3152_v28  ;;  %v3980_v39 = vld [vmem:[#allocation75_spill] sm:$0xff]  ;;  %v3983_v14 = vld [vmem:[#allocation16_spill] sm:$0xff] }
 0x16b   :  { %v1181_v15 = vmax.f32 %v1179_v53, 0.0  ;;  %v1228_v23 = vmax.f32 %v1226_v59, 0.0  ;;  %v1273_v52 = vmax.f32 %v1259_v41, %v1271_v58  ;;  %v1400_v42 = vadd.f32 %v3979_v9, %v3152_v28  ;;  %v3987_v58 = vld [vmem:[#allocation19_spill] sm:$0xff]  ;;  %v3990_v1 = vld [vmem:[#allocation108_spill] sm:$0xff] }
 0x16c   :  { %1137 = vst [vmem:[#allocation5 + $0x150] sm:$0xff] %v1134_v25  ;;  %v1320_v3 = vmax.f32 %v1306_v32, %v1318_v48  ;;  %v1367_v0 = vmax.f32 %v1353_v56, %v1365_v38  ;;  %v1412_v29 = vadd.f32 %v3198_v10, %v3152_v28  ;;  %v1447_v57 = vadd.f32 %v3980_v39, %v3152_v28  ;;  %v3989_v25 = vld [vmem:[#allocation26_spill] sm:$0xff]  ;;  %v3993_v39 = vld [vmem:[#allocation21_spill] sm:$0xff] }
 0x16d   :  { %1184 = vst [vmem:[#allocation5 + $0x160] sm:$0xff] %v1181_v15  ;;  %1231 = vst [vmem:[#allocation5 + $0x170] sm:$0xff] %v1228_v23  ;;  %v1275_v27 = vmax.f32 %v1273_v52, 0.0  ;;  %v1459_v18 = vadd.f32 %v3210_v16, %v3152_v28  ;;  %v1494_v61 = vadd.f32 %v3981_v55, %v3152_v28  ;;  %v1506_v20 = vadd.f32 %v3214_v51, %v3152_v28  ;;  %v3991_v38 = vld [vmem:[#allocation30_spill] sm:$0xff] }
 0x16e   :  { %v1322_v19 = vmax.f32 %v1320_v3, 0.0  ;;  %v1369_v47 = vmax.f32 %v1367_v0, 0.0  ;;  %v1414_v10 = vmax.f32 %v1400_v42, %v1412_v29  ;;  %v1541_v4 = vadd.f32 %v3982_v17, %v3152_v28  ;;  %v3992_v42 = vld [vmem:[#allocation110_spill] sm:$0xff] }
 0x16f   :  { %1278 = vst [vmem:[#allocation5 + $0x180] sm:$0xff] %v1275_v27  ;;  %v1461_v40 = vmax.f32 %v1447_v57, %v1459_v18  ;;  %v1508_v30 = vmax.f32 %v1494_v61, %v1506_v20  ;;  %v1553_v16 = vadd.f32 %v3228_v37, %v3152_v28  ;;  %v1588_v50 = vadd.f32 %v3983_v14, %v3152_v28  ;;  %v3986_v37 = vld [vmem:[#allocation104_spill] sm:$0xff]  ;;  %v3995_v61 = vld [vmem:[#allocation23_spill] sm:$0xff] }
 0x170   :  { %1325 = vst [vmem:[#allocation5 + $0x190] sm:$0xff] %v1322_v19  ;;  %1372 = vst [vmem:[#allocation5 + $0x1a0] sm:$0xff] %v1369_v47  ;;  %v1416_v51 = vmax.f32 %v1414_v10, 0.0  ;;  %v1600_v62 = vadd.f32 %v3232_v33, %v3152_v28  ;;  %v133_v5 = vadd.f32 %v3344_v22, %v3984_v35  ;;  %v145_v26 = vadd.f32 %v3985_v31, %v3344_v22  ;;  %v3988_v28 = vld [vmem:[#allocation106_spill] sm:$0xff]  ;;  %v3994_v27 = vld [vmem:[#allocation112_spill] sm:$0xff] }
 0x171   :  { %v1463_v7 = vmax.f32 %v1461_v40, 0.0  ;;  %v1510_v21 = vmax.f32 %v1508_v30, 0.0  ;;  %v1555_v60 = vmax.f32 %v1541_v4, %v1553_v16  ;;  %v179_v41 = vadd.f32 %v3986_v37, %v3344_v22  ;;  %v3996_v19 = vld [vmem:[#allocation114_spill] sm:$0xff]  ;;  %v3997_v10 = vld [vmem:[#allocation25_spill] sm:$0xff]  ;;  %v3998_v16 = vld [vmem:[#allocation116_spill] sm:$0xff] }
 0x172   :  { %1419 = vst [vmem:[#allocation5 + $0x1b0] sm:$0xff] %v1416_v51  ;;  %v1602_v53 = vmax.f32 %v1588_v50, %v1600_v62  ;;  %v147_v59 = vmax.f32 %v133_v5, %v145_v26  ;;  %v191_v36 = vadd.f32 %v3987_v58, %v3344_v22  ;;  %v226_v33 = vadd.f32 %v3988_v28, %v3344_v22  ;;  %v3999_v62 = vld [vmem:[#allocation29_spill] sm:$0xff] }
 0x173   :  { %1466 = vst [vmem:[#allocation5 + $0x1c0] sm:$0xff] %v1463_v7  ;;  %1513 = vst [vmem:[#allocation5 + $0x1d0] sm:$0xff] %v1510_v21  ;;  %v1557_v32 = vmax.f32 %v1555_v60, 0.0  ;;  %v238_v48 = vadd.f32 %v3989_v25, %v3344_v22  ;;  %v273_v56 = vadd.f32 %v3990_v1, %v3344_v22  ;;  %v285_v15 = vadd.f32 %v3991_v38, %v3344_v22  ;;  %v4000_v5 = vld [vmem:[#allocation9_spill] sm:$0xff]  ;;  %v4001_v7 = vld [vmem:[#allocation34_spill] sm:$0xff] }
 0x174   :  { %v1604_v23 = vmax.f32 %v1602_v53, 0.0  ;;  %v149_v52 = vmax.f32 %v147_v59, 0.0  ;;  %v193_v9 = vmax.f32 %v179_v41, %v191_v36  ;;  %v320_v3 = vadd.f32 %v3992_v42, %v3344_v22  ;;  %v4002_v60 = vld [vmem:[#allocation11_spill] sm:$0xff]  ;;  %v4003_v41 = vld [vmem:[#allocation38_spill] sm:$0xff]  ;;  %v4004_v28 = vld [vmem:[#allocation13_spill] sm:$0xff] }
 0x175   :  { %1560 = vst [vmem:[#allocation5 + $0x1e0] sm:$0xff] %v1557_v32  ;;  %v240_v0 = vmax.f32 %v226_v33, %v238_v48  ;;  %v287_v29 = vmax.f32 %v273_v56, %v285_v15  ;;  %v332_v57 = vadd.f32 %v3993_v39, %v3344_v22  ;;  %v367_v18 = vadd.f32 %v3994_v27, %v3344_v22  ;;  %v4005_v48 = vld [vmem:[#allocation31_spill] sm:$0xff]  ;;  %v4006_v56 = vld [vmem:[#allocation86_spill] sm:$0xff]  ;;  %v4010_v27 = vld [vmem:[#allocation92_spill] sm:$0xff] }
 0x176   :  { %1607 = vst [vmem:[#allocation5 + $0x1f0] sm:$0xff] %v1604_v23  ;;  %151 = vst [vmem:[#allocation5 + $0x8] sm:$0xff] %v149_v52  ;;  %v195_v55 = vmax.f32 %v193_v9, 0.0  ;;  %v379_v20 = vadd.f32 %v3995_v61, %v3344_v22  ;;  %v414_v47 = vadd.f32 %v3996_v19, %v3344_v22  ;;  %v426_v17 = vadd.f32 %v3997_v10, %v3344_v22  ;;  %v4007_v23 = vld [vmem:[#allocation35_spill] sm:$0xff]  ;;  %v4008_v9 = vld [vmem:[#allocation88_spill] sm:$0xff] }
 0x177   :  { %v242_v4 = vmax.f32 %v240_v0, 0.0  ;;  %v289_v40 = vmax.f32 %v287_v29, 0.0  ;;  %v334_v30 = vmax.f32 %v320_v3, %v332_v57  ;;  %v461_v14 = vadd.f32 %v3998_v16, %v3344_v22  ;;  %v4009_v3 = vld [vmem:[#allocation39_spill] sm:$0xff] }
 0x178   :  { %198 = vst [vmem:[#allocation5 + $0x18] sm:$0xff] %v195_v55  ;;  %v381_v50 = vmax.f32 %v367_v18, %v379_v20  ;;  %v428_v51 = vmax.f32 %v414_v47, %v426_v17  ;;  %v473_v35 = vadd.f32 %v3999_v62, %v3344_v22  ;;  %v508_v31 = vadd.f32 %v4000_v5, %v3344_v22  ;;  %v4011_v20 = vld [vmem:[#allocation43_spill] sm:$0xff] }
 0x179   :  { %245 = vst [vmem:[#allocation5 + $0x28] sm:$0xff] %v242_v4  ;;  %292 = vst [vmem:[#allocation5 + $0x38] sm:$0xff] %v289_v40  ;;  %v336_v26 = vmax.f32 %v334_v30, 0.0  ;;  %v520_v21 = vadd.f32 %v4001_v7, %v3344_v22  ;;  %v555_v37 = vadd.f32 %v4002_v60, %v3344_v22  ;;  %v567_v53 = vadd.f32 %v4003_v41, %v3344_v22  ;;  %v4012_v47 = vld [vmem:[#allocation95_spill] sm:$0xff]  ;;  %v4013_v4 = vld [vmem:[#allocation53_spill] sm:$0xff] }
 0x17a   :  { %v383_v59 = vmax.f32 %v381_v50, 0.0  ;;  %v430_v58 = vmax.f32 %v428_v51, 0.0  ;;  %v475_v36 = vmax.f32 %v461_v14, %v473_v35  ;;  %v602_v33 = vadd.f32 %v4004_v28, %v3344_v22  ;;  %v4014_v30 = vld [vmem:[#allocation90_spill] sm:$0xff]  ;;  %v4015_v14 = vld [vmem:[#allocation45_spill] sm:$0xff]  ;;  %v4016_v5 = vld [vmem:[#allocation91_spill] sm:$0xff] }
 0x17b   :  { %339 = vst [vmem:[#allocation5 + $0x48] sm:$0xff] %v336_v26  ;;  %v522_v32 = vmax.f32 %v508_v31, %v520_v21  ;;  %v569_v25 = vmax.f32 %v555_v37, %v567_v53  ;;  %v614_v1 = vadd.f32 %v4005_v48, %v3344_v22  ;;  %v649_v38 = vadd.f32 %v4006_v56, %v3344_v22  ;;  %v4017_v60 = vld [vmem:[#allocation94_spill] sm:$0xff] }
 0x17c   :  { %386 = vst [vmem:[#allocation5 + $0x58] sm:$0xff] %v383_v59  ;;  %433 = vst [vmem:[#allocation5 + $0x68] sm:$0xff] %v430_v58  ;;  %v477_v15 = vmax.f32 %v475_v36, 0.0  ;;  %v661_v52 = vadd.f32 %v4007_v23, %v3344_v22  ;;  %v696_v42 = vadd.f32 %v4008_v9, %v3344_v22  ;;  %v708_v0 = vadd.f32 %v4009_v3, %v3344_v22  ;;  %v4018_v59 = vld [vmem:[#allocation97_spill] sm:$0xff]  ;;  %v4021_v23 = vld [vmem:[#allocation14_spill] sm:$0xff] }
 0x17d   :  { %v524_v29 = vmax.f32 %v522_v32, 0.0  ;;  %v571_v39 = vmax.f32 %v569_v25, 0.0  ;;  %v616_v57 = vmax.f32 %v602_v33, %v614_v1  ;;  %v743_v18 = vadd.f32 %v4010_v27, %v3344_v22 }
 0x17e   :  { %480 = vst [vmem:[#allocation5 + $0x78] sm:$0xff] %v477_v15  ;;  %v663_v55 = vmax.f32 %v649_v38, %v661_v52  ;;  %v710_v61 = vmax.f32 %v696_v42, %v708_v0  ;;  %v755_v19 = vadd.f32 %v4011_v20, %v3344_v22  ;;  %v790_v10 = vadd.f32 %v4012_v47, %v3344_v22  ;;  %v4025_v20 = vld [vmem:[#allocation56_spill] sm:$0xff] }
 0x17f   :  { %527 = vst [vmem:[#allocation5 + $0x88] sm:$0xff] %v524_v29  ;;  %574 = vst [vmem:[#allocation5 + $0x98] sm:$0xff] %v571_v39  ;;  %v618_v17 = vmax.f32 %v616_v57, 0.0  ;;  %v802_v40 = vadd.f32 %v4013_v4, %v3344_v22  ;;  %v837_v16 = vadd.f32 %v4014_v30, %v3344_v22  ;;  %v849_v50 = vadd.f32 %v4015_v14, %v3344_v22 }
 0x180   :  { %v665_v51 = vmax.f32 %v663_v55, 0.0  ;;  %v712_v62 = vmax.f32 %v710_v61, 0.0  ;;  %v757_v35 = vmax.f32 %v743_v18, %v755_v19  ;;  %v884_v31 = vadd.f32 %v4016_v5, %v3344_v22 }
 0x181   :  { %621 = vst [vmem:[#allocation5 + $0xa8] sm:$0xff] %v618_v17  ;;  %v804_v26 = vmax.f32 %v790_v10, %v802_v40  ;;  %v851_v7 = vmax.f32 %v837_v16, %v849_v50  ;;  %v896_v21 = vadd.f32 %v3060_v44, %v3344_v22  ;;  %v931_v37 = vadd.f32 %v4017_v60, %v3344_v22  ;;  %v4019_v44 = vld [vmem:[#allocation82_spill] sm:$0xff]  ;;  %v4027_v50 = vld [vmem:[#allocation119_spill] sm:$0xff] }
 0x182   :  { %668 = vst [vmem:[#allocation5 + $0xb8] sm:$0xff] %v665_v51  ;;  %715 = vst [vmem:[#allocation5 + $0xc8] sm:$0xff] %v712_v62  ;;  %v759_v41 = vmax.f32 %v757_v35, 0.0  ;;  %v943_v53 = vadd.f32 %v3064_v46, %v3344_v22  ;;  %v978_v58 = vadd.f32 %v4018_v59, %v3344_v22  ;;  %v990_v36 = vadd.f32 %v3068_v43, %v3344_v22  ;;  %v4020_v46 = vld [vmem:[#allocation83_spill] sm:$0xff]  ;;  %v4028_v35 = vld [vmem:[#allocation74_spill] sm:$0xff] }
 0x183   :  { %v806_v28 = vmax.f32 %v804_v26, 0.0  ;;  %v853_v33 = vmax.f32 %v851_v7, 0.0  ;;  %v898_v32 = vmax.f32 %v884_v31, %v896_v21  ;;  %v1025_v25 = vadd.f32 %v4019_v44, %v3344_v22 }
 0x184   :  { %762 = vst [vmem:[#allocation5 + $0xd8] sm:$0xff] %v759_v41  ;;  %v945_v48 = vmax.f32 %v931_v37, %v943_v53  ;;  %v992_v1 = vmax.f32 %v978_v58, %v990_v36  ;;  %v1037_v56 = vadd.f32 %v3072_v6, %v3344_v22  ;;  %v1072_v38 = vadd.f32 %v4020_v46, %v3344_v22  ;;  %v4022_v6 = vld [vmem:[#allocation100_spill] sm:$0xff]  ;;  %v4031_v36 = vld [vmem:[#allocation15_spill] sm:$0xff] }
 0x185   :  { %809 = vst [vmem:[#allocation5 + $0xe8] sm:$0xff] %v806_v28  ;;  %856 = vst [vmem:[#allocation5 + $0xf8] sm:$0xff] %v853_v33  ;;  %v900_v15 = vmax.f32 %v898_v32, 0.0  ;;  %v1084_v43 = vadd.f32 %v3086_v24, %v3344_v22  ;;  %v1119_v52 = vadd.f32 %v4021_v23, %v3344_v22  ;;  %v1131_v9 = vadd.f32 %v3090_v63, %v3344_v22  ;;  %v4023_v24 = vld [vmem:[#allocation85_spill] sm:$0xff]  ;;  %v4024_v63 = vld [vmem:[#allocation54_spill] sm:$0xff] }
 0x186   :  { %v947_v42 = vmax.f32 %v945_v48, 0.0  ;;  %v994_v3 = vmax.f32 %v992_v1, 0.0  ;;  %v1039_v0 = vmax.f32 %v1025_v25, %v1037_v56  ;;  %v1166_v29 = vadd.f32 %v4022_v6, %v3344_v22  ;;  %v4032_v1 = vld [vmem:[#allocation17_spill] sm:$0xff] }
 0x187   :  { %903 = vst [vmem:[#allocation5 + $0x108] sm:$0xff] %v900_v15  ;;  %v1086_v39 = vmax.f32 %v1072_v38, %v1084_v43  ;;  %v1133_v57 = vmax.f32 %v1119_v52, %v1131_v9  ;;  %v1178_v27 = vadd.f32 %v3106_v12, %v3344_v22  ;;  %v1213_v18 = vadd.f32 %v4023_v24, %v3344_v22  ;;  %v4026_v12 = vld [vmem:[#allocation117_spill] sm:$0xff] }
 0x188   :  { %950 = vst [vmem:[#allocation5 + $0x118] sm:$0xff] %v947_v42  ;;  %997 = vst [vmem:[#allocation5 + $0x128] sm:$0xff] %v994_v3  ;;  %v1041_v55 = vmax.f32 %v1039_v0, 0.0  ;;  %v1225_v61 = vadd.f32 %v4024_v63, %v3344_v22  ;;  %v1260_v19 = vadd.f32 %v4025_v20, %v3344_v22  ;;  %v1272_v47 = vadd.f32 %v3188_v13, %v3344_v22 }
 0x189   :  { %v1088_v10 = vmax.f32 %v1086_v39, 0.0  ;;  %v1135_v17 = vmax.f32 %v1133_v57, 0.0  ;;  %v1180_v4 = vmax.f32 %v1166_v29, %v1178_v27  ;;  %v1307_v40 = vadd.f32 %v4026_v12, %v3344_v22 }
 0x18a   :  { %1044 = vst [vmem:[#allocation5 + $0x138] sm:$0xff] %v1041_v55  ;;  %v1227_v30 = vmax.f32 %v1213_v18, %v1225_v61  ;;  %v1274_v16 = vmax.f32 %v1260_v19, %v1272_v47  ;;  %v1319_v14 = vadd.f32 %v3192_v34, %v3344_v22  ;;  %v1354_v51 = vadd.f32 %v4027_v50, %v3344_v22  ;;  %v4029_v34 = vld [vmem:[#allocation76_spill] sm:$0xff] }
 0x18b   :  { %1091 = vst [vmem:[#allocation5 + $0x148] sm:$0xff] %v1088_v10  ;;  %1138 = vst [vmem:[#allocation5 + $0x158] sm:$0xff] %v1135_v17  ;;  %v1182_v62 = vmax.f32 %v1180_v4, 0.0  ;;  %v1366_v13 = vadd.f32 %v3196_v54, %v3344_v22  ;;  %v1401_v5 = vadd.f32 %v4028_v35, %v3344_v22  ;;  %v1413_v31 = vadd.f32 %v3200_v49, %v3344_v22  ;;  %v4030_v54 = vld [vmem:[#allocation121_spill] sm:$0xff] }
 0x18c   :  { %v1229_v26 = vmax.f32 %v1227_v30, 0.0  ;;  %v1276_v7 = vmax.f32 %v1274_v16, 0.0  ;;  %v1321_v21 = vmax.f32 %v1307_v40, %v1319_v14  ;;  %v1448_v60 = vadd.f32 %v4029_v34, %v3344_v22 }
 0x18d   :  { %1185 = vst [vmem:[#allocation5 + $0x168] sm:$0xff] %v1182_v62  ;;  %v1368_v37 = vmax.f32 %v1354_v51, %v1366_v13  ;;  %v1415_v41 = vmax.f32 %v1401_v5, %v1413_v31  ;;  %v1460_v53 = vadd.f32 %v3212_v11, %v3344_v22  ;;  %v1495_v59 = vadd.f32 %v4030_v54, %v3344_v22 }
 0x18e   :  { %1232 = vst [vmem:[#allocation5 + $0x178] sm:$0xff] %v1229_v26  ;;  %1279 = vst [vmem:[#allocation5 + $0x188] sm:$0xff] %v1276_v7  ;;  %v1323_v58 = vmax.f32 %v1321_v21, 0.0  ;;  %v1507_v49 = vadd.f32 %v3216_v2, %v3344_v22  ;;  %v1542_v28 = vadd.f32 %v4031_v36, %v3344_v22  ;;  %v1554_v33 = vadd.f32 %v3230_v8, %v3344_v22 }
 0x18f   :  { %v1370_v32 = vmax.f32 %v1368_v37, 0.0  ;;  %v1417_v44 = vmax.f32 %v1415_v41, 0.0  ;;  %v1462_v25 = vmax.f32 %v1448_v60, %v1460_v53  ;;  %v1589_v56 = vadd.f32 %v4032_v1, %v3344_v22 }
 0x190   :  { %1326 = vst [vmem:[#allocation5 + $0x198] sm:$0xff] %v1323_v58  ;;  %v1509_v11 = vmax.f32 %v1495_v59, %v1507_v49  ;;  %v1556_v48 = vmax.f32 %v1542_v28, %v1554_v33  ;;  %v1601_v46 = vadd.f32 %v3234_v45, %v3344_v22 }
 0x191   :  { %1373 = vst [vmem:[#allocation5 + $0x1a8] sm:$0xff] %v1370_v32  ;;  %1420 = vst [vmem:[#allocation5 + $0x1b8] sm:$0xff] %v1417_v44  ;;  %v1464_v2 = vmax.f32 %v1462_v25, 0.0 }
 0x192   :  { %v1511_v38 = vmax.f32 %v1509_v11, 0.0  ;;  %v1558_v15 = vmax.f32 %v1556_v48, 0.0  ;;  %v1603_v8 = vmax.f32 %v1589_v56, %v1601_v46 }
 0x193   :  { %1467 = vst [vmem:[#allocation5 + $0x1c8] sm:$0xff] %v1464_v2 }
 0x194   :  { %1514 = vst [vmem:[#allocation5 + $0x1d8] sm:$0xff] %v1511_v38  ;;  %1561 = vst [vmem:[#allocation5 + $0x1e8] sm:$0xff] %v1558_v15  ;;  %v1605_v43 = vmax.f32 %v1603_v8, 0.0 }
 0x196   :  { %1608 = vst [vmem:[#allocation5 + $0x1f8] sm:$0xff] %v1605_v43 }
 0x197   :  { %1674 = shalt.err (!%p1671_p12)
}
 0x198   :  { %s1675_s11 = scalar_lea.hbm %s3500_s3, 8192 }
 0x199   :  { %p1676_p13 = scmp.ne.s32.totalorder %s3500_s3, %s1675_s11  ;;  %p1679_p0 = scmp.lt.u32.totalorder %s1675_s11, %s3500_s3 }
 0x19b   :  { %p1681_p1 = pnand %p1679_p0, %p1676_p13 }
 0x19d   :  { %1684 = shalt.err (!%p1681_p1)
}
 0x19e   :  { %1620 = dma.vmem_to_hbm [thread:$0]  %s1615_s7, 8192, %s3500_s3, [#allocation4], %s1690_s22, %s1690_s22, %s1691_s23  }
 0x19f   :  { %1687 = dma.done.wait [#allocation4], 8192  }
 0x1a0   :  { %1688 = vsyncadd [#allocation4], 4294959104 }
 0x1a1   :  { %1624 = vsyncpa [#allocation3], 1 }
 0x1a2   :  { %1625 = vsyncpa [#allocation4], 1 }

</bundles_post_ra>
